<compile_context>
chip_gen: v6e
topology: v6e:2x2x1
jax: 0.10.0
libtpu: 0.0.40
codegen_flags: <defaults>
</compile_context>

<pallas_src>
import functools

import jax
import jax.numpy as jnp
from jax.experimental import pallas as pl
from jax.experimental.pallas import tpu as pltpu


# ---------------------------------------------------------------------------
# Kernel
# ---------------------------------------------------------------------------
def classic_attention_kernel(x_ref, wqkv_ref, bqkv_ref, wproj_ref, bproj_ref,
                             o_ref, *, num_heads):
    TB, N, C = x_ref.shape
    H = num_heads
    hd = C // H

    x2 = x_ref[...].reshape(TB * N, C)              # lane-dense slab, M = TB*N

    # Fused QKV projection (q/k/v and all heads in one matmul): width 3C.
    qkv = jnp.dot(x2, wqkv_ref[...], preferred_element_type=jnp.float32)
    # Bias carries the folded positional encoding and qk scale; (N, 3C)
    # broadcasts over the TB windows.
    qkv = (qkv.reshape(TB, N, 3 * C) + bqkv_ref[...]).reshape(TB * N, 3 * C)

    # Attention core per head (H is small and static); fused-qkv column layout
    # matches PyTorch: col = s*(H*hd) + h*hd + d.
    o_heads = []
    for h in range(H):
        q = qkv[:, h * hd:(h + 1) * hd].reshape(TB, N, hd)
        k = qkv[:, C + h * hd:C + (h + 1) * hd].reshape(TB, N, hd)
        v = qkv[:, 2 * C + h * hd:2 * C + (h + 1) * hd].reshape(TB, N, hd)

        # scores: contract last-dim vs last-dim (no explicit k.T)
        s = jnp.einsum('bqd,bkd->bqk', q, k,
                       preferred_element_type=jnp.float32)       # (TB, N, N)

        # numerically-stable softmax along the last axis
        s = s - jnp.max(s, axis=-1, keepdims=True)
        p = jnp.exp(s)
        p = p * pl.reciprocal(jnp.sum(p, axis=-1, keepdims=True), approx=True)

        o = jnp.einsum('bqk,bkd->bqd', p, v,
                       preferred_element_type=jnp.float32)       # (TB, N, hd)
        o_heads.append(o.reshape(TB * N, hd))

    # Concatenated head outputs have column = h*hd + d, exactly the layout the
    # PyTorch proj consumes -> one full-depth (K = C) output projection.
    o_cat = o_heads[0] if H == 1 else jnp.concatenate(o_heads, axis=-1)
    out = jnp.dot(o_cat, wproj_ref[...],
                  preferred_element_type=jnp.float32) + bproj_ref[...]
    o_ref[...] = out.reshape(TB, N, C).astype(o_ref.dtype)


# ---------------------------------------------------------------------------
# Window-batch picker: budget the *real* per-step VMEM, keep the grid deep
# enough to pipeline DMA and feed both v7x TensorCores.
# ---------------------------------------------------------------------------
def _pick_window_batch(B_, N, C, itemsize, *, budget_bytes=24 * 1024 * 1024,
                       min_grid_steps=4):
    def vmem_est(tb):
        blk = N * C * itemsize
        per_win = 4 * blk                      # x + out blocks, double-buffered
        per_win += N * 3 * C * 4               # fused qkv (f32)
        per_win += 2 * N * N * 4               # scores + probs (one head live)
        per_win += 2 * N * C * 4               # head outputs + projected out
        resident = 2 * (C * 3 * C + C * C + N * 3 * C + C) * itemsize
        return tb * per_win + resident

    if B_ >= min_grid_steps:
        max_tb = max(1, B_ // min_grid_steps)
    elif B_ >= 2:
        max_tb = max(1, B_ // 2)               # at least 2 grid steps (v7x 2 TC)
    else:
        max_tb = 1
    tb = max_tb
    while tb > 1 and (B_ % tb != 0 or vmem_est(tb) > budget_bytes):
        tb -= 1
    return max(tb, 1)


# ---------------------------------------------------------------------------
# Wrapper
# ---------------------------------------------------------------------------
def classic_attention(x, pe, wqkv_t, bqkv, wproj_t, bproj, *,
                      num_heads, qk_scale=None, window_batch=None):
    """x: (B_, N, C); pe: (h, w, g, c) with h*w*g == N, c == C.
    wqkv_t = Wqkv.T (C, 3C), wproj_t = Wproj.T (C, C) — PyTorch weights pre-transposed."""
    B_, N, C = x.shape
    H = num_heads
    hd = C // H
    scale = qk_scale if qk_scale is not None else hd ** (-0.5)

    # glue: rearrange 'h w g c -> (h w g) c'
    pe_flat = pe.reshape(-1, C)
    assert pe_flat.shape[0] == N

    # ---- one-time static weight prep ----------------------------------------
    # fold the qk scale into the q columns of the fused weight/bias
    col_scale = jnp.concatenate([jnp.full((C,), scale, wqkv_t.dtype),
                                 jnp.ones((2 * C,), wqkv_t.dtype)])
    wqkv_s = wqkv_t * col_scale[None, :]                          # (C, 3C)
    bqkv_s = bqkv * col_scale                                     # (3C,)
    # fold the positional encoding into a per-token bias:
    #   qkv(x + pe) = x @ W + (pe @ W + b)
    bqkv_eff = (jnp.dot(pe_flat, wqkv_s,
                        precision=jax.lax.Precision.HIGHEST)
                + bqkv_s[None, :])                                # (N, 3C)
    bproj2 = bproj.reshape(1, C)

    TB = window_batch or _pick_window_batch(B_, N, C, x.dtype.itemsize)
    assert B_ % TB == 0, (B_, TB)

    kernel = functools.partial(classic_attention_kernel, num_heads=H)

    return pl.pallas_call(
        kernel,
        out_shape=jax.ShapeDtypeStruct((B_, N, C), x.dtype),
        grid_spec=pltpu.PrefetchScalarGridSpec(
            num_scalar_prefetch=0,
            grid=(B_ // TB,),
            in_specs=[
                pl.BlockSpec((TB, N, C), lambda b: (b, 0, 0)),    # x (per step)
                pl.BlockSpec((C, 3 * C), lambda b: (0, 0)),       # fused Wqkv (resident)
                pl.BlockSpec((N, 3 * C), lambda b: (0, 0)),       # pe-folded bias
                pl.BlockSpec((C, C), lambda b: (0, 0)),           # Wproj
                pl.BlockSpec((1, C), lambda b: (0, 0)),           # bproj
            ],
            out_specs=pl.BlockSpec((TB, N, C), lambda b: (b, 0, 0)),
        ),
        compiler_params=pltpu.CompilerParams(
            dimension_semantics=("parallel",),
            vmem_limit_bytes=32 * 1024 * 1024),
    )(x, wqkv_s, bqkv_eff, wproj_t, bproj2)


# ---------------------------------------------------------------------------
# Plain-JAX reference (mirrors the PyTorch ClassicAttention.forward exactly)
# ---------------------------------------------------------------------------
def classic_attention_ref(x, pe, wqkv_t, bqkv, wproj_t, bproj, *,
                          num_heads, qk_scale=None):
    B_, N, C = x.shape
    hd = C // num_heads
    scale = qk_scale if qk_scale is not None else hd ** (-0.5)
    hp = jax.lax.Precision.HIGHEST
    pe_flat = pe.reshape(-1, C)
    x = x + pe_flat[None, ...]
    qkv = (jnp.einsum('bnc,cd->bnd', x, wqkv_t, precision=hp) + bqkv)
    qkv = qkv.reshape(B_, N, 3, num_heads, hd)
    qkv = jnp.transpose(qkv, (2, 0, 3, 1, 4))
    q, k, v = qkv[0], qkv[1], qkv[2]
    q = q * scale
    attn = jnp.einsum('bhnd,bhmd->bhnm', q, k, precision=hp)
    attn = jax.nn.softmax(attn, axis=-1)
    out = jnp.einsum('bhnm,bhmd->bhnd', attn, v, precision=hp)
    out = jnp.transpose(out, (0, 2, 1, 3)).reshape(B_, N, C)
    return jnp.einsum('bnc,cd->bnd', out, wproj_t, precision=hp) + bproj


# ---------------------------------------------------------------------------
if __name__ == "__main__":
    key = jax.random.PRNGKey(0)

    # shapes consistent with SegFormerGTZeta stage 2: C = embed_dims[1] = 128,
    # num_heads = 2; pe grid (h, w, gt_num) = (4, 4, 8) -> N = 128 gt tokens.
    # B_ = 8 windows -> grid = (4,) at TB = 2: pipeline overlap + both v7x TCs.
    B_, C, num_heads = 8, 128, 2
    h, w, g = 4, 4, 8
    N = h * w * g

    ks = jax.random.split(key, 6)
    x = jax.random.normal(ks[0], (B_, N, C), dtype=jnp.float32)
    pe = jax.random.normal(ks[1], (h, w, g, C), dtype=jnp.float32) * 0.1

    # deterministic nn.Linear-like parameters, stored pre-transposed (in, out)
    wqkv_t = jax.random.normal(ks[2], (C, 3 * C), dtype=jnp.float32) * (1.0 / jnp.sqrt(C))
    bqkv = jax.random.normal(ks[3], (3 * C,), dtype=jnp.float32) * 0.02
    wproj_t = jax.random.normal(ks[4], (C, C), dtype=jnp.float32) * (1.0 / jnp.sqrt(C))
    bproj = jax.random.normal(ks[5], (C,), dtype=jnp.float32) * 0.02

    out = classic_attention(x, pe, wqkv_t, bqkv, wproj_t, bproj, num_heads=num_heads)
    out = jax.block_until_ready(out)

    ref = classic_attention_ref(x, pe, wqkv_t, bqkv, wproj_t, bproj, num_heads=num_heads)
    assert out.shape == (B_, N, C)
    # tolerance accounts for the EUP approximate reciprocal in the softmax denom
    # and the default (bf16-pass) MXU precision for f32 inputs vs HIGHEST in the ref
    assert jnp.allclose(out, ref, atol=2e-3, rtol=2e-3), "mismatch vs reference"

    print("KERNEL_OK")
</pallas_src>

<mosaic_0001>
module attributes {stable_mosaic.version = 11 : i64} {
  func.func @classic_attention_kernel(%arg0: i32, %arg1: memref<2x128x128xf32, #tpu.memory_space<vmem>>, %arg2: memref<128x384xf32, #tpu.memory_space<vmem>>, %arg3: memref<128x384xf32, #tpu.memory_space<vmem>>, %arg4: memref<128x128xf32, #tpu.memory_space<vmem>>, %arg5: memref<1x128xf32, #tpu.memory_space<vmem>>, %arg6: memref<2x128x128xf32, #tpu.memory_space<vmem>>) attributes {dimension_semantics = [#tpu.dimension_semantics<parallel>], iteration_bounds = array<i64: 4>, scalar_prefetch = 0 : i64, scratch_operands = 0 : i64, tpu.core_type = #tpu.core_type<tc>, window_params = [{transform_indices = @transform_0, window_bounds = array<i64: 2, 128, 128>}, {pipeline_mode = #tpu.pipeline_mode<synchronous>, transform_indices = @transform_1, window_bounds = array<i64: 128, 384>}, {pipeline_mode = #tpu.pipeline_mode<synchronous>, transform_indices = @transform_2, window_bounds = array<i64: 128, 384>}, {pipeline_mode = #tpu.pipeline_mode<synchronous>, transform_indices = @transform_3, window_bounds = array<i64: 128, 128>}, {pipeline_mode = #tpu.pipeline_mode<synchronous>, transform_indices = @transform_4, window_bounds = array<i64: 1, 128>}, {transform_indices = @transform_5, window_bounds = array<i64: 2, 128, 128>}]} {
    %c0 = arith.constant 0 : index
    %c0_0 = arith.constant 0 : index
    %c0_1 = arith.constant 0 : index
    %0 = vector.load %arg1[%c0, %c0_0, %c0_1] : memref<2x128x128xf32, #tpu.memory_space<vmem>>, vector<2x128x128xf32>
    %1 = vector.shape_cast %0 : vector<2x128x128xf32> to vector<256x128xf32>
    %c0_2 = arith.constant 0 : index
    %c0_3 = arith.constant 0 : index
    %2 = vector.load %arg2[%c0_2, %c0_3] : memref<128x384xf32, #tpu.memory_space<vmem>>, vector<128x384xf32>
    %cst = arith.constant dense<0.000000e+00> : vector<256x384xf32>
    %3 = tpu.matmul %1, %2, %cst {dimension_numbers = #tpu.dot_dimension_numbers<[1], [0], [0], [1], [0, 0, 1, 1], [], []>} : vector<256x128xf32>, vector<128x384xf32>, vector<256x384xf32> -> vector<256x384xf32>
    %4 = vector.shape_cast %3 : vector<256x384xf32> to vector<2x128x384xf32>
    %c0_4 = arith.constant 0 : index
    %c0_5 = arith.constant 0 : index
    %5 = vector.load %arg3[%c0_4, %c0_5] : memref<128x384xf32, #tpu.memory_space<vmem>>, vector<128x384xf32>
    %6 = vector.shape_cast %5 : vector<128x384xf32> to vector<1x128x384xf32>
    %7 = vector.broadcast %6 : vector<1x128x384xf32> to vector<2x128x384xf32>
    %8 = arith.addf %4, %7 : vector<2x128x384xf32>
    %9 = vector.shape_cast %8 : vector<2x128x384xf32> to vector<256x384xf32>
    %10 = vector.extract_strided_slice %9 {offsets = [0, 0], sizes = [256, 64], strides = [1, 1]} : vector<256x384xf32> to vector<256x64xf32>
    %11 = vector.shape_cast %10 : vector<256x64xf32> to vector<2x128x64xf32>
    %12 = vector.extract_strided_slice %9 {offsets = [0, 128], sizes = [256, 64], strides = [1, 1]} : vector<256x384xf32> to vector<256x64xf32>
    %13 = vector.shape_cast %12 : vector<256x64xf32> to vector<2x128x64xf32>
    %14 = vector.extract_strided_slice %9 {offsets = [0, 256], sizes = [256, 64], strides = [1, 1]} : vector<256x384xf32> to vector<256x64xf32>
    %15 = vector.shape_cast %14 : vector<256x64xf32> to vector<2x128x64xf32>
    "tpu.trace_start"() <{level = 10 : i32, message = "bqd,bkd->bqk"}> : () -> ()
    %cst_6 = arith.constant dense<0.000000e+00> : vector<2x128x128xf32>
    %16 = tpu.matmul %11, %13, %cst_6 {dimension_numbers = #tpu.dot_dimension_numbers<[2], [2], [1], [1], [0, 0, 0, 1, 1, 1], [0], [0]>} : vector<2x128x64xf32>, vector<2x128x64xf32>, vector<2x128x128xf32> -> vector<2x128x128xf32>
    "tpu.trace_stop"() : () -> ()
    %cst_7 = arith.constant dense<0xFF800000> : vector<2x128xf32>
    %17 = vector.multi_reduction <maximumf>, %16, %cst_7 [2] : vector<2x128x128xf32> to vector<2x128xf32>
    %18 = vector.shape_cast %17 : vector<2x128xf32> to vector<2x128x1xf32>
    %19 = vector.broadcast %18 : vector<2x128x1xf32> to vector<2x128x128xf32>
    %20 = arith.subf %16, %19 : vector<2x128x128xf32>
    %21 = math.exp %20 : vector<2x128x128xf32>
    %cst_8 = arith.constant dense<0.000000e+00> : vector<2x128xf32>
    %22 = vector.multi_reduction <add>, %21, %cst_8 [2] : vector<2x128x128xf32> to vector<2x128xf32>
    %23 = vector.shape_cast %22 : vector<2x128xf32> to vector<2x128x1xf32>
    %24 = tpu.reciprocal %23 {approx = true} : vector<2x128x1xf32> -> vector<2x128x1xf32>
    %25 = vector.broadcast %24 : vector<2x128x1xf32> to vector<2x128x128xf32>
    %26 = arith.mulf %21, %25 : vector<2x128x128xf32>
    "tpu.trace_start"() <{level = 10 : i32, message = "bqk,bkd->bqd"}> : () -> ()
    %cst_9 = arith.constant dense<0.000000e+00> : vector<2x128x64xf32>
    %27 = tpu.matmul %26, %15, %cst_9 {dimension_numbers = #tpu.dot_dimension_numbers<[2], [1], [1], [2], [0, 0, 0, 1, 1, 2], [0], [0]>} : vector<2x128x128xf32>, vector<2x128x64xf32>, vector<2x128x64xf32> -> vector<2x128x64xf32>
    "tpu.trace_stop"() : () -> ()
    %28 = vector.shape_cast %27 : vector<2x128x64xf32> to vector<256x64xf32>
    %29 = vector.extract_strided_slice %9 {offsets = [0, 64], sizes = [256, 64], strides = [1, 1]} : vector<256x384xf32> to vector<256x64xf32>
    %30 = vector.shape_cast %29 : vector<256x64xf32> to vector<2x128x64xf32>
    %31 = vector.extract_strided_slice %9 {offsets = [0, 192], sizes = [256, 64], strides = [1, 1]} : vector<256x384xf32> to vector<256x64xf32>
    %32 = vector.shape_cast %31 : vector<256x64xf32> to vector<2x128x64xf32>
    %33 = vector.extract_strided_slice %9 {offsets = [0, 320], sizes = [256, 64], strides = [1, 1]} : vector<256x384xf32> to vector<256x64xf32>
    %34 = vector.shape_cast %33 : vector<256x64xf32> to vector<2x128x64xf32>
    "tpu.trace_start"() <{level = 10 : i32, message = "bqd,bkd->bqk"}> : () -> ()
    %cst_10 = arith.constant dense<0.000000e+00> : vector<2x128x128xf32>
    %35 = tpu.matmul %30, %32, %cst_10 {dimension_numbers = #tpu.dot_dimension_numbers<[2], [2], [1], [1], [0, 0, 0, 1, 1, 1], [0], [0]>} : vector<2x128x64xf32>, vector<2x128x64xf32>, vector<2x128x128xf32> -> vector<2x128x128xf32>
    "tpu.trace_stop"() : () -> ()
    %cst_11 = arith.constant dense<0xFF800000> : vector<2x128xf32>
    %36 = vector.multi_reduction <maximumf>, %35, %cst_11 [2] : vector<2x128x128xf32> to vector<2x128xf32>
    %37 = vector.shape_cast %36 : vector<2x128xf32> to vector<2x128x1xf32>
    %38 = vector.broadcast %37 : vector<2x128x1xf32> to vector<2x128x128xf32>
    %39 = arith.subf %35, %38 : vector<2x128x128xf32>
    %40 = math.exp %39 : vector<2x128x128xf32>
    %cst_12 = arith.constant dense<0.000000e+00> : vector<2x128xf32>
    %41 = vector.multi_reduction <add>, %40, %cst_12 [2] : vector<2x128x128xf32> to vector<2x128xf32>
    %42 = vector.shape_cast %41 : vector<2x128xf32> to vector<2x128x1xf32>
    %43 = tpu.reciprocal %42 {approx = true} : vector<2x128x1xf32> -> vector<2x128x1xf32>
    %44 = vector.broadcast %43 : vector<2x128x1xf32> to vector<2x128x128xf32>
    %45 = arith.mulf %40, %44 : vector<2x128x128xf32>
    "tpu.trace_start"() <{level = 10 : i32, message = "bqk,bkd->bqd"}> : () -> ()
    %cst_13 = arith.constant dense<0.000000e+00> : vector<2x128x64xf32>
    %46 = tpu.matmul %45, %34, %cst_13 {dimension_numbers = #tpu.dot_dimension_numbers<[2], [1], [1], [2], [0, 0, 0, 1, 1, 2], [0], [0]>} : vector<2x128x128xf32>, vector<2x128x64xf32>, vector<2x128x64xf32> -> vector<2x128x64xf32>
    "tpu.trace_stop"() : () -> ()
    %47 = vector.shape_cast %46 : vector<2x128x64xf32> to vector<256x64xf32>
    %48 = tpu.concatenate %28, %47 in 1 : vector<256x64xf32>, vector<256x64xf32> -> vector<256x128xf32>
    %c0_14 = arith.constant 0 : index
    %c0_15 = arith.constant 0 : index
    %49 = vector.load %arg4[%c0_14, %c0_15] : memref<128x128xf32, #tpu.memory_space<vmem>>, vector<128x128xf32>
    %cst_16 = arith.constant dense<0.000000e+00> : vector<256x128xf32>
    %50 = tpu.matmul %48, %49, %cst_16 {dimension_numbers = #tpu.dot_dimension_numbers<[1], [0], [0], [1], [0, 0, 1, 1], [], []>} : vector<256x128xf32>, vector<128x128xf32>, vector<256x128xf32> -> vector<256x128xf32>
    %c0_17 = arith.constant 0 : index
    %c0_18 = arith.constant 0 : index
    %51 = vector.load %arg5[%c0_17, %c0_18] : memref<1x128xf32, #tpu.memory_space<vmem>>, vector<1x128xf32>
    %52 = vector.broadcast %51 : vector<1x128xf32> to vector<256x128xf32>
    %53 = arith.addf %50, %52 : vector<256x128xf32>
    %54 = vector.shape_cast %53 : vector<256x128xf32> to vector<2x128x128xf32>
    %c0_19 = arith.constant 0 : index
    %c0_20 = arith.constant 0 : index
    %c0_21 = arith.constant 0 : index
    %55 = vector.load %arg6[%c0_19, %c0_20, %c0_21] : memref<2x128x128xf32, #tpu.memory_space<vmem>>, vector<2x128x128xf32>
    tpu.vector_store %arg6[%c0_19, %c0_20, %c0_21], %54 {strides = array<i32>} : memref<2x128x128xf32, #tpu.memory_space<vmem>>, vector<2x128x128xf32>,
    return
  }
  func.func @transform_0(%arg0: i32) -> (i32, i32, i32) {
    %c0_i32 = arith.constant 0 : i32
    %c0_i32_0 = arith.constant 0 : i32
    %c0_i32_1 = arith.constant 0 : i32
    return %arg0, %c0_i32, %c0_i32_0 : i32, i32, i32
  }
  func.func @transform_1(%arg0: i32) -> (i32, i32) {
    %c0_i32 = arith.constant 0 : i32
    %c0_i32_0 = arith.constant 0 : i32
    %c0_i32_1 = arith.constant 0 : i32
    return %c0_i32, %c0_i32_0 : i32, i32
  }
  func.func @transform_2(%arg0: i32) -> (i32, i32) {
    %c0_i32 = arith.constant 0 : i32
    %c0_i32_0 = arith.constant 0 : i32
    %c0_i32_1 = arith.constant 0 : i32
    return %c0_i32, %c0_i32_0 : i32, i32
  }
  func.func @transform_3(%arg0: i32) -> (i32, i32) {
    %c0_i32 = arith.constant 0 : i32
    %c0_i32_0 = arith.constant 0 : i32
    %c0_i32_1 = arith.constant 0 : i32
    return %c0_i32, %c0_i32_0 : i32, i32
  }
  func.func @transform_4(%arg0: i32) -> (i32, i32) {
    %c0_i32 = arith.constant 0 : i32
    %c0_i32_0 = arith.constant 0 : i32
    %c0_i32_1 = arith.constant 0 : i32
    return %c0_i32, %c0_i32_0 : i32, i32
  }
  func.func @transform_5(%arg0: i32) -> (i32, i32, i32) {
    %c0_i32 = arith.constant 0 : i32
    %c0_i32_0 = arith.constant 0 : i32
    %c0_i32_1 = arith.constant 0 : i32
    return %arg0, %c0_i32, %c0_i32_0 : i32, i32, i32
  }
}

</mosaic_0001>

<bundles_post_ra>
// kernel: tpu_custom_call.1
= control target key start
LH: loop header
LB: loop body
LE: loop exit
PB: predicated region body
PF: predicated region fallthrough
CT: control target
= control target key end

     0   :  { %10 = vsyncpa [#allocation3], 0  ;;  %s8009_s0 = inlined_call_operand.hbm [shape: f32[8,128,128], index: 0, kind: input, shape index: {}]   ;;  %s8010_s1 = inlined_call_operand.hbm [shape: f32[128,384], index: 1, kind: input, shape index: {}]   ;;  %s8011_s2 = inlined_call_operand.hbm [shape: f32[128,384], index: 2, kind: input, shape index: {}]   ;;  %s8012_s3 = inlined_call_operand.hbm [shape: f32[128,128], index: 3, kind: input, shape index: {}]   ;;  %s8013_s4 = inlined_call_operand.vmem [shape: f32[1,128], index: 4, kind: input, shape index: {}]   ;;  %s8014_s5 = inlined_call_operand.hbm [shape: f32[8,128,128], index: 5, kind: output, shape index: {}]  }
   0x1   :  { %12 = vsyncpa [#allocation3 + $0x1], 0 }
   0x2   :  { %13 = vsyncpa [#allocation6], 0 }
   0x3   :  { %14 = vsyncpa [#allocation9], 0 }
   0x4   :  { %15 = vsyncpa [#allocation4], 0 }
   0x5   :  { %17 = vsyncpa [#allocation4 + $0x1], 0  ;;  %s5672_s18 = smov 0   ;;  %s5674_s19 = smov 0  }
   0x6   :  { %s5676_s20 = smov 0   ;;  %s5678_s21 = smov 0  }
   0x7 LB: > { %s5693_s22 = sadd.s32 4294967295, %s5627_s21   ;;  %s3866_s23 = sadd.s32 4294967294, %s5627_s21   ;;  %s5627_s21 = sphi %s5678_s21, %s8332_s21   ;;  %s5623_s20 = sphi %s5676_s20, %s8331_s20   ;;  %s5619_s19 = sphi %s5674_s19, %s8330_s19   ;;  %s5615_s18 = sphi %s5672_s18, %s8329_s18  }
   0x8   : > { %p43_p0 = scmp.ne.s32.totalorder %s5619_s19, %s5615_s18  ;;  %p8015_p1 = scmp.eq.s32.totalorder %s5693_s22, 0 }
   0x9   : > { %p157_p3 = scmp.eq.s32.totalorder %s3866_s23, 3  ;;  %p3867_p5 = scmp.ge.s32.totalorder %s5627_s21, 1 }
   0xa   : > { %p5702_p4 = por %p8015_p1, %p43_p0  ;;  %p164_p7 = scmp.lt.s32.totalorder %s5627_s21, 5 }
   0xb   : > { %p5707_p6 = por %p157_p3, %p43_p0  ;;  %s5629_s27 = smov [#allocation5]  }
   0xc   : > { %s8081_s24 = scalar_select %p5702_p4, 1, 0 }
   0xd   : > { %s8082_s25 = scalar_select %p5707_p6, 1, 0 }
   0xe   : > { %p5712_p8 = pnand %p3867_p5, %p164_p7  ;;  %s176_s28 = sshll.u32 %s5629_s27, 4  ;;  %s177_s28 = int_to_ptr.vmem [resolvable:$true] %s176_s28 }
   0xf   : > { %s5630_s30 = smov [#allocation7]   ;;  %s5631_s7 = smov [#allocation8]  }
  0x10   : > { %s8083_s26 = scalar_select %p5712_p8, 1, 0 }
  0x11   : > { %p5029_p9 = pneg %p5712_p8  ;;  %s189_s6 = sshll.u32 %s5630_s30, 4  ;;  %s190_s6 = int_to_ptr.vmem [resolvable:$true] %s189_s6 }
  0x12   : > { %s202_s8 = sshll.u32 %s5631_s7, 4  ;;  %s5460_s9 = scalar_lea.vmem %s177_s28, 6144  ;;  %s203_s8 = int_to_ptr.vmem [resolvable:$true] %s202_s8 }
  0x13   : > { %p5720_p10 = pnand %p5029_p9, %p8015_p1  ;;  %p5461_p12 = scmp.ne.s32.totalorder %s177_s28, %s5460_s9 }
  0x14   : > { %p5468_p3 = scmp.lt.s32.totalorder %s177_s28, %s177_s28  ;;  %p5469_p5 = scmp.lt.s32.totalorder %s5460_s9, %s5460_s9 }
  0x15   : > { %p5451_p11 = pneg %p5720_p10 }
  0x16   : > { %p5470_p7 = por %p5469_p5, %p5468_p3 }
  0x17   : > { %p5463_p13 = pnand %p5461_p12, %p5451_p11 }
  0x19   : > { %p5464_p0 = pneg %p5463_p13 }
  0x1b   : > { %p5471_p9 = pnand %p5470_p7, %p5464_p0 }
  0x1d   : > { %5474 = shalt.err (!%p5471_p9)
}
  0x1e   : > { %s5632_s10 = smov 384   ;;  %s5633_s11 = smov 24  }
  0x1f   : > { %5032 = dma.hbm_to_vmem [thread:$0]  (!%p5720_p10), %s8010_s1, 6144, %s177_s28, [#allocation6], %s5632_s10, %s5632_s10, %s5633_s11  }
  0x20   : > { %s5486_s14 = scalar_lea.vmem %s190_s6, 6144  ;;  %p5494_p2 = scmp.lt.s32.totalorder %s190_s6, %s190_s6 }
  0x21   : > { %p5487_p1 = scmp.ne.s32.totalorder %s190_s6, %s5486_s14  ;;  %p5495_p6 = scmp.lt.s32.totalorder %s5486_s14, %s5486_s14 }
  0x23   : > { %p5489_p12 = pnand %p5487_p1, %p5451_p11  ;;  %p5496_p3 = por %p5495_p6, %p5494_p2 }
  0x25   : > { %p5490_p13 = pneg %p5489_p12 }
  0x27   : > { %p5497_p0 = pnand %p5496_p3, %p5490_p13 }
  0x29   : > { %5500 = shalt.err (!%p5497_p0)
}
  0x2a   : > { %5035 = dma.hbm_to_vmem [thread:$0]  (!%p5720_p10), %s8011_s2, 6144, %s190_s6, [#allocation6], %s5632_s10, %s5632_s10, %s5633_s11  }
  0x2b   : > { %s5512_s17 = scalar_lea.vmem %s203_s8, 2048  ;;  %p5520_p9 = scmp.lt.s32.totalorder %s203_s8, %s203_s8 }
  0x2c   : > { %p5513_p5 = scmp.ne.s32.totalorder %s203_s8, %s5512_s17  ;;  %p5521_p12 = scmp.lt.s32.totalorder %s5512_s17, %s5512_s17 }
  0x2e   : > { %p5515_p7 = pnand %p5513_p5, %p5451_p11  ;;  %p5522_p4 = por %p5521_p12, %p5520_p9 }
  0x30   : > { %p5516_p1 = pneg %p5515_p7 }
  0x32   : > { %p5523_p2 = pnand %p5522_p4, %p5516_p1 }
  0x34   : > { %5526 = shalt.err (!%p5523_p2)
}
  0x35   : > { %s8017_s23 = smov 128   ;;  %s5635_s27 = smov 8  }
  0x36   : > { %5038 = dma.hbm_to_vmem [thread:$0]  (!%p5720_p10), %s8012_s3, 2048, %s203_s8, [#allocation9], %s8017_s23, %s8017_s23, %s5635_s27  }
  0x37   : > { %s5754_s6 = sadd.s32 1, %s5627_s21   ;;  %s30_s9 = sadd.s32 1, %s5623_s20 }
  0x38   : > { %s27_s7 = ssub.s32 %s5627_s21, %s5754_s6  ;;  %p37_p6 = scmp.ne.s32.totalorder %s5623_s20, %s5619_s19 }
  0x39   : > { %p28_p4 = scmp.eq.s32.totalorder %s27_s7, 0  ;;  %p38_p11 = scmp.eq.s32.totalorder %s5627_s21, 0 }
  0x3a   : > { %p5050_p13 = scmp.lt.s32.totalorder %s5627_s21, 4  ;;  %p8085_p0 = scmp.eq.s32.totalorder %s5693_s22, 3 }
  0x3b   : > { %s5764_s10 = scalar_select %p28_p4, %s5623_s20, %s30_s9  }
  0x3c   : > { %p39_p3 = por %p38_p11, %p37_p6  ;;  %p5768_p5 = por %p8085_p0, %p37_p6 }
  0x3d   : > { %s219_s11 = sand.u32 1, %s5623_s20   ;;  %s4018_s12 = sshll.u32 %s5627_s21, 12 }
  0x3e   : > { %s8086_s29 = scalar_select %p5768_p5, 1, 0 }
  0x3f   : > { %s3872_s8 = sshll.u32 %s219_s11, 8  ;;  %s5777_s15 = scalar_lea.hbm %s8009_s0, %s4018_s12 }
  0x40   : > { %s223_s16 = scalar_lea.vmem [#allocation2], %s3872_s8  ;;  %p5779_p10 = pnand %p5050_p13, %p39_p3 }
  0x41   : > { %s231_s17 = sshll.u32 %s223_s16, 4  ;;  %s5785_s30 = scalar_lea.sflag [#allocation3], %s219_s11  ;;  %s5783_s17 = int_to_ptr.vmem [resolvable:$true] %s231_s17 }
  0x42   : > { %s5527_s7 = scalar_lea.hbm %s5777_s15, 4096  ;;  %p5529_p1 = pneg %p5779_p10 }
  0x43   : > { %p5528_p7 = scmp.ne.s32.totalorder %s5777_s15, %s5527_s7  ;;  %s5532_s8 = scalar_lea.hbm %s8009_s0, 16384 }
  0x44   : > { %p5533_p2 = scmp.lt.s32.totalorder %s5777_s15, %s8009_s0  ;;  %p5534_p4 = scmp.lt.s32.totalorder %s5532_s8, %s5527_s7 }
  0x45   : > { %p5530_p9 = pnand %p5529_p1, %p5528_p7 }
  0x46   : > { %p5535_p6 = por %p5534_p4, %p5533_p2 }
  0x47   : > { %p5531_p12 = pneg %p5530_p9 }
  0x49   : > { %p5536_p11 = pnand %p5535_p6, %p5531_p12 }
  0x4b   : > { %5539 = shalt.err (!%p5536_p11)
}
  0x4c   : > { %s5540_s11 = scalar_lea.vmem %s5783_s17, 4096  ;;  %s5636_s16 = smov [#allocation2]  }
  0x4d   : > { %p5541_p13 = scmp.ne.s32.totalorder %s5783_s17, %s5540_s11  ;;  %s5545_s23 = sshll.u32 %s5636_s16, 4  ;;  %s5546_s23 = int_to_ptr.vmem [resolvable:$false] %s5545_s23 }
  0x4e   : > { %s5547_s9 = scalar_lea.vmem %s5546_s23, 8192  ;;  %p5548_p7 = scmp.lt.s32.totalorder %s5783_s17, %s5546_s23 }
  0x4f   : > { %p5543_p3 = pnand %p5541_p13, %p5529_p1  ;;  %p5549_p9 = scmp.lt.s32.totalorder %s5547_s9, %s5540_s11 }
  0x51   : > { %p5544_p0 = pneg %p5543_p3  ;;  %p5550_p5 = por %p5549_p9, %p5548_p7 }
  0x53   : > { %p5551_p8 = pnand %p5550_p5, %p5544_p0 }
  0x55   : > { %5554 = shalt.err (!%p5551_p8)
}
  0x56   : > { %s8088_s7 = smov 128   ;;  %p8089_p1 = scmp.ne.s32.totalorder %s8083_s26, 0 }
  0x57   : > { %5042 = dma.hbm_to_vmem [thread:$0]  (!%p5779_p10), %s5777_s15, 4096, %s5783_s17, %s5785_s30, %s8088_s7, %s8088_s7, %s5635_s27  }
  0x58   : > { %243 = sbr.rel (%p8089_p1) target bundleno = 2386 (0x952), region = 40 }
  0x5d   : > { %s5812_s12 = sand.u32 1, %s5619_s19   ;;  %p8090_p8 = scmp.ne.s32.totalorder %s8081_s24, 0 }
  0x5e   : > { %s3877_s23 = sshll.u32 %s5812_s12, 8  ;;  %s246_s8 = scalar_lea.sflag [#allocation3], %s5812_s12 }
  0x5f   : > { %s5818_s28 = scalar_lea.vmem [#allocation2], %s3877_s23 }
  0x60   : > { %5598 = dma.done.wait (%p8090_p8), %s246_s8, 4096  }
  0x61   : > { %5600 = vsyncadd (%p8090_p8), %s246_s8, 4294963200  ;;  %p8091_p5 = scmp.eq.s32.totalorder %s5693_s22, 0 }
  0x63   : > { %5602 = dma.done.wait (%p8091_p5), [#allocation6], 12288   ;;  %p8092_p10 = pmov %p8091_p5 }
  0x64   : > { %p8093_p12 = pmov %p8091_p5 }
  0x65   : > { %5604 = vsyncadd (%p8092_p10), [#allocation6], 4294955008 }
  0x66   : > { %5606 = dma.done.wait (%p8093_p12), [#allocation9], 2048   ;;  %p8094_p2 = pmov %p8091_p5 }
  0x67   : > { %v5637_v0 = vmov 0.0   ;;  %v368_v1 = vld [vmem:[#allocation5 + $0x170] sm:$0xff]  ;;  %v367_v2 = vld [vmem:[#allocation5 + $0x168] sm:$0xff]  ;;  %v365_v3 = vld [vmem:[#allocation5 + $0x158] sm:$0xff]  ;;  %vm996_vm0 = vcmask 523264   ;;  %s5638_s24 = smov 64  }
  0x68   : > { %5608 = vsyncadd (%p8094_p2), [#allocation9], 4294965248  ;;  %434 = vmatprep.mubr.f32.mxu0 %v5637_v0  ;;  %578 = vmatprep.mubr.f32.mxu1 %v5637_v0  ;;  %v364_v4 = vld [vmem:[#allocation5 + $0x150] sm:$0xff]  ;;  %v362_v5 = vld [vmem:[#allocation5 + $0x140] sm:$0xff]  ;;  %s7862_s15 = scalar_lea.vmem [#allocation10], %s3877_s23  ;;  %s4020_s17 = sshll.u32 %s5693_s22, 12 }
  0x69   : > { %370 = vmatprep.subr.mxu0 %v368_v1  ;;  %4981 = vmatprep.subr.mxu1 %v368_v1  ;;  %v361_v6 = vld [vmem:[#allocation5 + $0x138] sm:$0xff]  ;;  %v359_v7 = vld [vmem:[#allocation5 + $0x128] sm:$0xff]  ;;  %v358_v8 = vld [vmem:[#allocation5 + $0x120] sm:$0xff]  ;;  %s3764_s30 = sshll.u32 %s7862_s15, 4  ;;  %s7962_s11 = scalar_lea.hbm %s8014_s5, %s4020_s17  ;;  %s7964_s30 = int_to_ptr.vmem [resolvable:$true] %s3764_s30 }
  0x6a   : > { %371 = vmatpush1.msra.mxu0 %v367_v2  ;;  %4997 = vmatpush1.msra.mxu1 %v367_v2  ;;  %v356_v9 = vld [vmem:[#allocation5 + $0x110] sm:$0xff]  ;;  %v355_v10 = vld [vmem:[#allocation5 + $0x108] sm:$0xff]  ;;  %v353_v11 = vld [vmem:[#allocation5 + $0xf8] sm:$0xff]  ;;  %s3750_s22 = scalar_lea.sflag [#allocation4], %s5812_s12  ;;  %s5555_s16 = scalar_lea.vmem %s7964_s30, 4096 }
  0x6b   : > { %372 = vmatprep.subr.mxu0 %v365_v3  ;;  %4982 = vmatprep.subr.mxu1 %v365_v3  ;;  %v352_v12 = vld [vmem:[#allocation5 + $0xf0] sm:$0xff]  ;;  %v350_v13 = vld [vmem:[#allocation5 + $0xe0] sm:$0xff]  ;;  %v349_v14 = vld [vmem:[#allocation5 + $0xd8] sm:$0xff]  ;;  %p5556_p4 = scmp.ne.s32.totalorder %s7964_s30, %s5555_s16  ;;  %p8327_p6 = scmp.ne.s32.totalorder %s8086_s29, 0 }
  0x6c   : > { %373 = vmatpush1.msra.mxu0 %v364_v4  ;;  %4998 = vmatpush1.msra.mxu1 %v364_v4  ;;  %v347_v15 = vld [vmem:[#allocation5 + $0xc8] sm:$0xff]  ;;  %v346_v16 = vld [vmem:[#allocation5 + $0xc0] sm:$0xff]  ;;  %v344_v17 = vld [vmem:[#allocation5 + $0xb0] sm:$0xff]  ;;  %s5639_s9 = smov [#allocation10]  }
  0x6d   : > { %374 = vmatprep.subr.mxu0 %v362_v5  ;;  %4983 = vmatprep.subr.mxu1 %v362_v5  ;;  %v343_v18 = vld [vmem:[#allocation5 + $0xa8] sm:$0xff]  ;;  %v341_v19 = vld [vmem:[#allocation5 + $0x98] sm:$0xff]  ;;  %v340_v20 = vld [vmem:[#allocation5 + $0x90] sm:$0xff]  ;;  %p5557_p11 = pnand %p5556_p4, %p8327_p6  ;;  %s5559_s7 = sshll.u32 %s5639_s9, 4  ;;  %s5560_s7 = int_to_ptr.vmem [resolvable:$false] %s5559_s7 }
  0x6e   : > { %375 = vmatpush1.msra.mxu0 %v361_v6  ;;  %4999 = vmatpush1.msra.mxu1 %v361_v6  ;;  %v338_v21 = vld [vmem:[#allocation5 + $0x80] sm:$0xff]  ;;  %v337_v22 = vld [vmem:[#allocation5 + $0x78] sm:$0xff]  ;;  %v335_v23 = vld [vmem:[#allocation5 + $0x68] sm:$0xff]  ;;  %s5561_s23 = scalar_lea.vmem %s5560_s7, 8192  ;;  %p5562_p3 = scmp.lt.s32.totalorder %s7964_s30, %s5560_s7 }
  0x6f   : > { %376 = vmatprep.subr.mxu0 %v359_v7  ;;  %4984 = vmatprep.subr.mxu1 %v359_v7  ;;  %v334_v24 = vld [vmem:[#allocation5 + $0x60] sm:$0xff]  ;;  %v332_v25 = vld [vmem:[#allocation5 + $0x50] sm:$0xff]  ;;  %v331_v26 = vld [vmem:[#allocation5 + $0x48] sm:$0xff]  ;;  %p5558_p13 = pneg %p5557_p11  ;;  %p5563_p0 = scmp.lt.s32.totalorder %s5561_s23, %s5555_s16 }
  0x70   : > { %377 = vmatpush1.msra.mxu0 %v358_v8  ;;  %5000 = vmatpush1.msra.mxu1 %v358_v8  ;;  %v329_v27 = vld [vmem:[#allocation5 + $0x38] sm:$0xff]  ;;  %v328_v28 = vld [vmem:[#allocation5 + $0x30] sm:$0xff]  ;;  %v326_v29 = vld [vmem:[#allocation5 + $0x20] sm:$0xff] }
  0x71   : > { %378 = vmatprep.subr.mxu0 %v356_v9  ;;  %4985 = vmatprep.subr.mxu1 %v356_v9  ;;  %v325_v30 = vld [vmem:[#allocation5 + $0x18] sm:$0xff]  ;;  %v323_v31 = vld [vmem:[#allocation5 + $0x8] sm:$0xff]  ;;  %v322_v32 = vld [vmem:[#allocation5] sm:$0xff]  ;;  %p5564_p7 = por %p5563_p0, %p5562_p3 }
  0x72   : > { %379 = vmatpush1.msra.mxu0 %v355_v10  ;;  %5001 = vmatpush1.msra.mxu1 %v355_v10  ;;  %v5835_v33 = vld [vmem:[%s5818_s28] sm:$0xff]  ;;  %v369_v35 = vld [vmem:[#allocation5 + $0x178] sm:$0xff]  ;;  %v5845_v36 = vld [vmem:[%s5818_s28 + $0x8] sm:$0xff] }
  0x73   : > { %380 = vmatprep.subr.mxu0 %v353_v11  ;;  %4986 = vmatprep.subr.mxu1 %v353_v11  ;;  %v5838_v34 = vld [vmem:[%s5818_s28 + $0xc0] sm:$0xff]  ;;  %v5848_v37 = vld [vmem:[%s5818_s28 + $0xc8] sm:$0xff]  ;;  %v5855_v39 = vld [vmem:[%s5818_s28 + $0x10] sm:$0xff]  ;;  %p5565_p9 = pnand %p5564_p7, %p5558_p13 }
  0x74   : > { %381 = vmatpush1.msra.mxu0 %v352_v12  ;;  %5002 = vmatpush1.msra.mxu1 %v352_v12  ;;  %v366_v38 = vld [vmem:[#allocation5 + $0x160] sm:$0xff]  ;;  %v5858_v40 = vld [vmem:[%s5818_s28 + $0xd0] sm:$0xff]  ;;  %v363_v41 = vld [vmem:[#allocation5 + $0x148] sm:$0xff] }
  0x75   : > { %382 = vmatprep.subr.mxu0 %v350_v13  ;;  %4987 = vmatprep.subr.mxu1 %v350_v13  ;;  %v5865_v42 = vld [vmem:[%s5818_s28 + $0x18] sm:$0xff]  ;;  %v360_v44 = vld [vmem:[#allocation5 + $0x130] sm:$0xff]  ;;  %v5875_v45 = vld [vmem:[%s5818_s28 + $0x20] sm:$0xff] }
  0x76   : > { %383 = vmatpush1.msra.mxu0 %v349_v14  ;;  %5003 = vmatpush1.msra.mxu1 %v349_v14  ;;  %v5868_v43 = vld [vmem:[%s5818_s28 + $0xd8] sm:$0xff]  ;;  %v5878_v46 = vld [vmem:[%s5818_s28 + $0xe0] sm:$0xff]  ;;  %v5885_v48 = vld [vmem:[%s5818_s28 + $0x28] sm:$0xff] }
  0x77   : > { %384 = vmatprep.subr.mxu0 %v347_v15  ;;  %4988 = vmatprep.subr.mxu1 %v347_v15  ;;  %v357_v47 = vld [vmem:[#allocation5 + $0x118] sm:$0xff]  ;;  %v5888_v49 = vld [vmem:[%s5818_s28 + $0xe8] sm:$0xff]  ;;  %v354_v50 = vld [vmem:[#allocation5 + $0x100] sm:$0xff] }
  0x78   : > { %385 = vmatpush1.msra.mxu0 %v346_v16  ;;  %5004 = vmatpush1.msra.mxu1 %v346_v16  ;;  %v5895_v51 = vld [vmem:[%s5818_s28 + $0x30] sm:$0xff]  ;;  %v351_v53 = vld [vmem:[#allocation5 + $0xe8] sm:$0xff]  ;;  %v297_v54 = vld [vmem:[%s5818_s28 + $0x38] sm:$0xff] }
  0x79   : > { %386 = vmatprep.subr.mxu0 %v344_v17  ;;  %4989 = vmatprep.subr.mxu1 %v344_v17  ;;  %v5898_v52 = vld [vmem:[%s5818_s28 + $0xf0] sm:$0xff]  ;;  %v5906_v55 = vld [vmem:[%s5818_s28 + $0xf8] sm:$0xff]  ;;  %v298_v58 = vld [vmem:[%s5818_s28 + $0x40] sm:$0xff] }
  0x7a   : > { %387 = vmatpush1.msra.mxu0 %v343_v18  ;;  %5005 = vmatpush1.msra.mxu1 %v343_v18  ;;  %v348_v56 = vld [vmem:[#allocation5 + $0xd0] sm:$0xff]  ;;  %v345_v57 = vld [vmem:[#allocation5 + $0xb8] sm:$0xff]  ;;  %v342_v59 = vld [vmem:[#allocation5 + $0xa0] sm:$0xff] }
  0x7b   : > { %388 = vmatprep.subr.mxu0 %v341_v19  ;;  %4990 = vmatprep.subr.mxu1 %v341_v19  ;;  %v339_v60 = vld [vmem:[#allocation5 + $0x88] sm:$0xff]  ;;  %v336_v62 = vld [vmem:[#allocation5 + $0x70] sm:$0xff]  ;;  %v333_v63 = vld [vmem:[#allocation5 + $0x58] sm:$0xff] }
  0x7c   : > { %389 = vmatpush1.msra.mxu0 %v340_v20  ;;  %5006 = vmatpush1.msra.mxu1 %v340_v20  ;;  %v299_v61 = vld [vmem:[%s5818_s28 + $0x48] sm:$0xff]  ;;  %v300_v1 = vld [vmem:[%s5818_s28 + $0x50] sm:$0xff]  ;;  %v330_v2 = vld [vmem:[#allocation5 + $0x40] sm:$0xff] }
  0x7d   : > { %390 = vmatprep.subr.mxu0 %v338_v21  ;;  %4991 = vmatprep.subr.mxu1 %v338_v21  ;;  %v327_v3 = vld [vmem:[#allocation5 + $0x28] sm:$0xff]  ;;  %v301_v4 = vld [vmem:[%s5818_s28 + $0x58] sm:$0xff]  ;;  %v324_v5 = vld [vmem:[#allocation5 + $0x10] sm:$0xff] }
  0x7e   : > { %391 = vmatpush1.msra.mxu0 %v337_v22  ;;  %5007 = vmatpush1.msra.mxu1 %v337_v22  ;;  %v302_v6 = vld [vmem:[%s5818_s28 + $0x60] sm:$0xff]  ;;  %v303_v7 = vld [vmem:[%s5818_s28 + $0x68] sm:$0xff]  ;;  %v304_v8 = vld [vmem:[%s5818_s28 + $0x70] sm:$0xff] }
  0x7f   : > { %392 = vmatprep.subr.mxu0 %v335_v23  ;;  %4992 = vmatprep.subr.mxu1 %v335_v23  ;;  %v305_v9 = vld [vmem:[%s5818_s28 + $0x78] sm:$0xff]  ;;  %v306_v10 = vld [vmem:[%s5818_s28 + $0x80] sm:$0xff]  ;;  %v307_v11 = vld [vmem:[%s5818_s28 + $0x88] sm:$0xff] }
  0x80   : > { %393 = vmatpush1.msra.mxu0 %v334_v24  ;;  %5008 = vmatpush1.msra.mxu1 %v334_v24  ;;  %v308_v12 = vld [vmem:[%s5818_s28 + $0x90] sm:$0xff]  ;;  %v309_v13 = vld [vmem:[%s5818_s28 + $0x98] sm:$0xff]  ;;  %v310_v14 = vld [vmem:[%s5818_s28 + $0xa0] sm:$0xff] }
  0x81   : > { %394 = vmatprep.subr.mxu0 %v332_v25  ;;  %4993 = vmatprep.subr.mxu1 %v332_v25  ;;  %v311_v15 = vld [vmem:[%s5818_s28 + $0xa8] sm:$0xff]  ;;  %v312_v16 = vld [vmem:[%s5818_s28 + $0xb0] sm:$0xff]  ;;  %v313_v17 = vld [vmem:[%s5818_s28 + $0xb8] sm:$0xff] }
  0x82   : > { %395 = vmatpush1.msra.mxu0 %v331_v26  ;;  %5009 = vmatpush1.msra.mxu1 %v331_v26  ;;  %v5958_v18 = vld [vmem:[#allocation7 + $0xc0] sm:$0xff]  ;;  %v5964_v24 = vld [vmem:[#allocation7 + $0x8] sm:$0xff] }
  0x83   : > { %396 = vmatprep.subr.mxu0 %v329_v27  ;;  %4994 = vmatprep.subr.mxu1 %v329_v27  ;;  %v5966_v26 = vld [vmem:[#allocation7 + $0xc8] sm:$0xff] }
  0x84   : > { %397 = vmatpush1.msra.mxu0 %v328_v28  ;;  %5010 = vmatpush1.msra.mxu1 %v328_v28  ;;  %v5971_v28 = vld [vmem:[#allocation7 + $0x18] sm:$0xff] }
  0x85   : > { %398 = vmatprep.subr.mxu0 %v326_v29  ;;  %4995 = vmatprep.subr.mxu1 %v326_v29 }
  0x86   : > { %399 = vmatpush1.msra.mxu0 %v325_v30  ;;  %5011 = vmatpush1.msra.mxu1 %v325_v30  ;;  %v5973_v30 = vld [vmem:[#allocation7 + $0xd8] sm:$0xff] }
  0x87   : > { %400 = vmatprep.subr.mxu0 %v323_v31  ;;  %4996 = vmatprep.subr.mxu1 %v323_v31 }
  0x88   : > { %401 = vmatpush1.msra.mxu0 %v322_v32  ;;  %5012 = vmatpush1.msra.mxu1 %v322_v32 }
  0x89   : > { %435 = vmatmul.mubr.f32.vlgmr.msra.gmra.mxu0 %v5835_v33  ;;  %579 = vmatmul.mubr.f32.vlgmr.msra.gmra.mxu1 %v5838_v34 }
  0x8a   : > { %440 = vmatprep.mubr.f32.mxu0 %v5637_v0  ;;  %584 = vmatprep.mubr.f32.mxu1 %v5637_v0 }
  0x8b   : > { %4373 = vmatprep.subr.mxu1 %v369_v35 }
  0x8c   : > { %4374 = vmatpush3.msra.mxu1 %v369_v35 }
  0x8d   : > { %441 = vmatmul.mubr.f32.gmra.mxu0 %v5845_v36  ;;  %585 = vmatmul.mubr.f32.gmra.mxu1 %v5848_v37 }
  0x8e   : > { %446 = vmatprep.mubr.f32.mxu0 %v5637_v0  ;;  %590 = vmatprep.mubr.f32.mxu1 %v5637_v0 }
  0x8f   : > { %4375 = vmatprep.subr.mxu1 %v366_v38 }
  0x90   : > { %4376 = vmatpush3.msra.mxu1 %v366_v38 }
  0x91   : > { %447 = vmatmul.mubr.f32.gmra.mxu0 %v5855_v39  ;;  %591 = vmatmul.mubr.f32.gmra.mxu1 %v5858_v40 }
  0x92   : > { %452 = vmatprep.mubr.f32.mxu0 %v5637_v0  ;;  %596 = vmatprep.mubr.f32.mxu1 %v5637_v0 }
  0x93   : > { %4377 = vmatprep.subr.mxu1 %v363_v41 }
  0x94   : > { %4378 = vmatpush3.msra.mxu1 %v363_v41 }
  0x95   : > { %453 = vmatmul.mubr.f32.gmra.mxu0 %v5865_v42  ;;  %597 = vmatmul.mubr.f32.gmra.mxu1 %v5868_v43 }
  0x96   : > { %458 = vmatprep.mubr.f32.mxu0 %v5637_v0  ;;  %602 = vmatprep.mubr.f32.mxu1 %v5637_v0 }
  0x97   : > { %4379 = vmatprep.subr.mxu1 %v360_v44 }
  0x98   : > { %4380 = vmatpush3.msra.mxu1 %v360_v44  ;;  %v6003_v44 = vld [vmem:[#allocation7 + $0x30] sm:$0xff] }
  0x99   : > { %459 = vmatmul.mubr.f32.gmra.mxu0 %v5875_v45  ;;  %603 = vmatmul.mubr.f32.gmra.mxu1 %v5878_v46 }
  0x9a   : > { %464 = vmatprep.mubr.f32.mxu0 %v5637_v0  ;;  %608 = vmatprep.mubr.f32.mxu1 %v5637_v0 }
  0x9b   : > { %4381 = vmatprep.subr.mxu1 %v357_v47 }
  0x9c   : > { %4382 = vmatpush3.msra.mxu1 %v357_v47 }
  0x9d   : > { %465 = vmatmul.mubr.f32.gmra.mxu0 %v5885_v48  ;;  %609 = vmatmul.mubr.f32.gmra.mxu1 %v5888_v49 }
  0x9e   : > { %470 = vmatprep.mubr.f32.mxu0 %v5637_v0  ;;  %614 = vmatprep.mubr.f32.mxu1 %v5637_v0 }
  0x9f   : > { %4383 = vmatprep.subr.mxu1 %v354_v50 }
  0xa0   : > { %4384 = vmatpush3.msra.mxu1 %v354_v50 }
  0xa1   : > { %471 = vmatmul.mubr.f32.gmra.mxu0 %v5895_v51  ;;  %615 = vmatmul.mubr.f32.gmra.mxu1 %v5898_v52 }
  0xa2   : > { %476 = vmatprep.mubr.f32.mxu0 %v5637_v0  ;;  %620 = vmatprep.mubr.f32.mxu1 %v5637_v0 }
  0xa3   : > { %4385 = vmatprep.subr.mxu1 %v351_v53 }
  0xa4   : > { %4386 = vmatpush3.msra.mxu1 %v351_v53  ;;  %v6020_v53 = vld [vmem:[#allocation7 + $0xf0] sm:$0xff] }
  0xa5   : > { %477 = vmatmul.mubr.f32.gmra.mxu0 %v297_v54  ;;  %621 = vmatmul.mubr.f32.gmra.mxu1 %v5906_v55 }
  0xa6   : > { %4387 = vmatprep.subr.mxu1 %v348_v56  ;;  %482 = vmatprep.mubr.f32.mxu0 %v5637_v0 }
  0xa7   : > { %4388 = vmatpush3.msra.mxu1 %v348_v56  ;;  %4405 = vmatprep.mubr.f32.mxu1 %v5835_v33 }
  0xa8   : > { %4389 = vmatprep.subr.mxu1 %v345_v57 }
  0xa9   : > { %483 = vmatmul.mubr.f32.gmra.mxu0 %v298_v58  ;;  %4390 = vmatpush3.msra.mxu1 %v345_v57 }
  0xaa   : > { %4391 = vmatprep.subr.mxu1 %v342_v59  ;;  %488 = vmatprep.mubr.f32.mxu0 %v5637_v0 }
  0xab   : > { %4392 = vmatpush3.msra.mxu1 %v342_v59 }
  0xac   : > { %4393 = vmatprep.subr.mxu1 %v339_v60 }
  0xad   : > { %489 = vmatmul.mubr.f32.gmra.mxu0 %v299_v61  ;;  %4394 = vmatpush3.msra.mxu1 %v339_v60 }
  0xae   : > { %4395 = vmatprep.subr.mxu1 %v336_v62  ;;  %494 = vmatprep.mubr.f32.mxu0 %v5637_v0 }
  0xaf   : > { %4396 = vmatpush3.msra.mxu1 %v336_v62 }
  0xb0   : > { %4397 = vmatprep.subr.mxu1 %v333_v63 }
  0xb1   : > { %495 = vmatmul.mubr.f32.gmra.mxu0 %v300_v1  ;;  %4398 = vmatpush3.msra.mxu1 %v333_v63 }
  0xb2   : > { %4399 = vmatprep.subr.mxu1 %v330_v2  ;;  %500 = vmatprep.mubr.f32.mxu0 %v5637_v0 }
  0xb3   : > { %4400 = vmatpush3.msra.mxu1 %v330_v2 }
  0xb4   : > { %4401 = vmatprep.subr.mxu1 %v327_v3 }
  0xb5   : > { %501 = vmatmul.mubr.f32.gmra.mxu0 %v301_v4  ;;  %4402 = vmatpush3.msra.mxu1 %v327_v3 }
  0xb6   : > { %4403 = vmatprep.subr.mxu1 %v324_v5  ;;  %506 = vmatprep.mubr.f32.mxu0 %v5637_v0 }
  0xb7   : > { %4404 = vmatpush3.msra.mxu1 %v324_v5  ;;  %v6049_v5 = vld [vmem:[#allocation7 + $0x48] sm:$0xff] }
  0xb8   : > { %4406 = vmatmul.mubr.f32.vlgmr.msra.gmra.mxu1 %v5845_v36 }
  0xb9   : > { %507 = vmatmul.mubr.f32.gmra.mxu0 %v302_v6  ;;  %4408 = vmatprep.mubr.f32.mxu1 %v5855_v39 }
  0xba   : > { %512 = vmatprep.mubr.f32.mxu0 %v5637_v0 }
  0xbc   : > { %4409 = vmatmul.mubr.f32.gmra.mxu1 %v5865_v42 }
  0xbd   : > { %513 = vmatmul.mubr.f32.gmra.mxu0 %v303_v7  ;;  %4411 = vmatprep.mubr.f32.mxu1 %v5875_v45  ;;  %v6005_v45 = vld [vmem:[#allocation7 + $0xf8] sm:$0xff] }
  0xbe   : > { %518 = vmatprep.mubr.f32.mxu0 %v5637_v0 }
  0xc0   : > { %4412 = vmatmul.mubr.f32.gmra.mxu1 %v5885_v48 }
  0xc1   : > { %519 = vmatmul.mubr.f32.gmra.mxu0 %v304_v8  ;;  %4414 = vmatprep.mubr.f32.mxu1 %v5895_v51 }
  0xc2   : > { %524 = vmatprep.mubr.f32.mxu0 %v5637_v0 }
  0xc4   : > { %4415 = vmatmul.mubr.f32.gmra.mxu1 %v297_v54  ;;  %v6022_v54 = vld [vmem:[#allocation7 + $0x108] sm:$0xff] }
  0xc5   : > { %525 = vmatmul.mubr.f32.gmra.mxu0 %v305_v9  ;;  %4417 = vmatprep.mubr.f32.mxu1 %v298_v58 }
  0xc6   : > { %530 = vmatprep.mubr.f32.mxu0 %v5637_v0 }
  0xc8   : > { %4418 = vmatmul.mubr.f32.gmra.mxu1 %v299_v61  ;;  %v6036_v61 = vld [vmem:[#allocation7 + $0x110] sm:$0xff] }
  0xc9   : > { %531 = vmatmul.mubr.f32.gmra.mxu0 %v306_v10  ;;  %4420 = vmatprep.mubr.f32.mxu1 %v300_v1  ;;  %v6038_v1 = vld [vmem:[#allocation7 + $0x38] sm:$0xff] }
  0xca   : > { %536 = vmatprep.mubr.f32.mxu0 %v5637_v0 }
  0xcc   : > { %4421 = vmatmul.mubr.f32.gmra.mxu1 %v301_v4 }
  0xcd   : > { %537 = vmatmul.mubr.f32.gmra.mxu0 %v307_v11  ;;  %4423 = vmatprep.mubr.f32.mxu1 %v302_v6  ;;  %v6051_v6 = vld [vmem:[#allocation7 + $0x128] sm:$0xff] }
  0xce   : > { %542 = vmatprep.mubr.f32.mxu0 %v5637_v0 }
  0xd0   : > { %4424 = vmatmul.mubr.f32.gmra.mxu1 %v303_v7 }
  0xd1   : > { %543 = vmatmul.mubr.f32.gmra.mxu0 %v308_v12  ;;  %4426 = vmatprep.mubr.f32.mxu1 %v304_v8 }
  0xd2   : > { %548 = vmatprep.mubr.f32.mxu0 %v5637_v0 }
  0xd4   : > { %4427 = vmatmul.mubr.f32.gmra.mxu1 %v305_v9 }
  0xd5   : > { %549 = vmatmul.mubr.f32.gmra.mxu0 %v309_v13  ;;  %4429 = vmatprep.mubr.f32.mxu1 %v306_v10 }
  0xd6   : > { %554 = vmatprep.mubr.f32.mxu0 %v5637_v0 }
  0xd8   : > { %4430 = vmatmul.mubr.f32.gmra.mxu1 %v307_v11 }
  0xd9   : > { %555 = vmatmul.mubr.f32.gmra.mxu0 %v310_v14  ;;  %4432 = vmatprep.mubr.f32.mxu1 %v308_v12 }
  0xda   : > { %560 = vmatprep.mubr.f32.mxu0 %v5637_v0 }
  0xdc   : > { %4433 = vmatmul.mubr.f32.gmra.mxu1 %v309_v13 }
  0xdd   : > { %561 = vmatmul.mubr.f32.gmra.mxu0 %v311_v15  ;;  %4435 = vmatprep.mubr.f32.mxu1 %v310_v14  ;;  %v6068_v14 = vld [vmem:[#allocation7 + $0x78] sm:$0xff] }
  0xde   : > { %566 = vmatprep.mubr.f32.mxu0 %v5637_v0 }
  0xe0   : > { %4436 = vmatmul.mubr.f32.gmra.mxu1 %v311_v15 }
  0xe1   : > { %567 = vmatmul.mubr.f32.gmra.mxu0 %v312_v16  ;;  %4438 = vmatprep.mubr.f32.mxu1 %v312_v16 }
  0xe2   : > { %572 = vmatprep.mubr.f32.mxu0 %v5637_v0  ;;  %v5956_v0 = vld [vmem:[#allocation7] sm:$0xff] }
  0xe4   : > { %4439 = vmatmul.mubr.f32.gmra.mxu1 %v313_v17 }
  0xe5   : > { %573 = vmatmul.mubr.f32.gmra.mxu0 %v313_v17  ;;  %4441 = vmatprep.mubr.f32.mxu1 %v5838_v34  ;;  %v6072_v17 = vld [vmem:[#allocation7 + $0x170] sm:$0xff] }
  0xe8   : > { %4442 = vmatmul.mubr.f32.gmra.mxu1 %v5848_v37  ;;  %v5992_v37 = vld [vmem:[#allocation7 + $0xe0] sm:$0xff] }
  0xe9   : > { %4444 = vmatprep.mubr.f32.mxu1 %v5858_v40  ;;  %v5994_v40 = vld [vmem:[#allocation7 + $0x20] sm:$0xff] }
  0xec   : > { %4445 = vmatmul.mubr.f32.gmra.mxu1 %v5868_v43 }
  0xed   : > { %4447 = vmatprep.mubr.f32.mxu1 %v5878_v46 }
  0xf0   : > { %4448 = vmatmul.mubr.f32.gmra.mxu1 %v5888_v49 }
  0xf1   : > { %4450 = vmatprep.mubr.f32.mxu1 %v5898_v52 }
  0xf4   : > { %4451 = vmatmul.mubr.f32.gmra.mxu1 %v5906_v55 }
 0x149   : > { %v436_v19 = vpop.f32.mrf.mxu0  ;;  %v580_v20 = vpop.f32.mrf.mxu1 }
 0x14a   : > { %v900_v21 = vadd.f32 %v5956_v0, %v436_v19  ;;  %v5962_v22 = vadd.f32 %v5958_v18, %v580_v20  ;;  %v6074_v19 = vld [vmem:[#allocation7 + $0x158] sm:$0xff]  ;;  %v6076_v20 = vld [vmem:[#allocation7 + $0x50] sm:$0xff] }
 0x14b   : > { %v438_v23 = vpop.f32.mrf.mxu0  ;;  %v582_v25 = vpop.f32.mrf.mxu1 }
 0x14c   : > { %8095 = vst [vmem:[#allocation15_spill] sm:$0xff] %v5962_v22  ;;  %2346 = vrot.lane.b32.xlu0 %v5962_v22, %s5638_s24  ;;  %2057 = vrot.lane.b32.xlu1 %v900_v21, %s5638_s24  ;;  %v5977_v31 = vadd.f32 %v5964_v24, %v438_v23  ;;  %v5980_v32 = vadd.f32 %v5966_v26, %v582_v25 }
 0x14d   : > { %v442_v27 = vpop.f32.mrf.mxu0  ;;  %v586_v29 = vpop.f32.mrf.mxu1  ;;  %4485 = vmatprep.mubr.msk.f32.mxu1 %vm996_vm0, %v900_v21 }
 0x14e   : > { %v5983_v35 = vadd.f32 %v5971_v28, %v442_v27  ;;  %v5986_v36 = vadd.f32 %v5973_v30, %v586_v29  ;;  %v6089_v29 = vld [vmem:[#allocation7 + $0x60] sm:$0xff] }
 0x14f   : > { %v444_v33 = vpop.f32.mrf.mxu0  ;;  %v588_v34 = vpop.f32.mrf.mxu1 }
 0x150   : > { %8096 = vst [vmem:[#allocation16_spill] sm:$0xff] %v5986_v36  ;;  %2378 = vrot.lane.b32.xlu1 %v5980_v32, %s5638_s24  ;;  %2089 = vrot.lane.b32.xlu0 %v5977_v31, %s5638_s24  ;;  %v5997_v43 = vadd.f32 %v5992_v37, %v588_v34  ;;  %v6008_v48 = vadd.f32 %v5994_v40, %v444_v33  ;;  %v6091_v33 = vld [vmem:[#allocation7 + $0x138] sm:$0xff] }
 0x151   : > { %v448_v38 = vpop.f32.mrf.mxu0  ;;  %v592_v39 = vpop.f32.mrf.mxu1 }
 0x152   : > { %v6011_v51 = vadd.f32 %v6003_v44, %v448_v38  ;;  %v6027_v59 = vadd.f32 %v6020_v53, %v592_v39 }
 0x153   : > { %v450_v41 = vpop.f32.mrf.mxu0  ;;  %v594_v42 = vpop.f32.mrf.mxu1 }
 0x154   : > { %2348 = vrot.lane.b32.xlu1 %v5986_v36, %s5638_s24  ;;  %2059 = vrot.lane.b32.xlu0 %v5983_v35, %s5638_s24  ;;  %v6014_v52 = vadd.f32 %v6005_v45, %v594_v42  ;;  %8097 = vst [vmem:[#allocation17_spill] sm:$0xff] %v6027_v59  ;;  %v6056_v9 = vadd.f32 %v6038_v1, %v450_v41  ;;  %v6101_v41 = vld [vmem:[#allocation7 + $0x140] sm:$0xff] }
 0x155   : > { %v454_v46 = vpop.f32.mrf.mxu0  ;;  %v598_v47 = vpop.f32.mrf.mxu1  ;;  %v6156_v36 = vld [vmem:[#allocation7 + $0x80] sm:$0xff] }
 0x156   : > { %v6030_v60 = vadd.f32 %v6022_v54, %v598_v47  ;;  %v6061_v12 = vadd.f32 %v6049_v5, %v454_v46 }
 0x157   : > { %v456_v49 = vpop.f32.mrf.mxu0  ;;  %v600_v50 = vpop.f32.mrf.mxu1 }
 0x158   : > { %2380 = vrot.lane.b32.xlu1 %v5997_v43, %s5638_s24  ;;  %2091 = vrot.lane.b32.xlu0 %v6008_v48, %s5638_s24  ;;  %8098 = vst [vmem:[#allocation18_spill] sm:$0xff] %v6030_v60  ;;  %v6043_v4 = vadd.f32 %v6036_v61, %v600_v50  ;;  %v6099_v39 = vadd.f32 %v6076_v20, %v456_v49  ;;  %v6117_v49 = vld [vmem:[#allocation7 + $0x120] sm:$0xff] }
 0x159   : > { %v460_v55 = vpop.f32.mrf.mxu0  ;;  %v604_v56 = vpop.f32.mrf.mxu1 }
 0x15a   : > { %v6108_v46 = vadd.f32 %v6089_v29, %v460_v55  ;;  %v6127_v55 = vadd.f32 %v6117_v49, %v604_v56 }
 0x15b   : > { %v6024_v57 = vpop.f32.mrf.mxu0  ;;  %v606_v58 = vpop.f32.mrf.mxu1 }
 0x15c   : > { %2382 = vrot.lane.b32.xlu1 %v6014_v52, %s5638_s24  ;;  %2061 = vrot.lane.b32.xlu0 %v6011_v51, %s5638_s24  ;;  %v985_v13 = vadd.f32 %v6051_v6, %v606_v58  ;;  %8101 = vst [vmem:[#allocation21_spill] sm:$0xff] %v6127_v55 }
 0x15d   : > { %v466_v62 = vpop.f32.mrf.mxu0  ;;  %v610_v63 = vpop.f32.mrf.mxu1 }
 0x15e   : > { %v6081_v25 = vadd.f32 %v6068_v14, %v466_v62  ;;  %v6111_v47 = vadd.f32 %v6091_v33, %v610_v63 }
 0x15f   : > { %v6040_v2 = vpop.f32.mrf.mxu0  ;;  %v612_v3 = vpop.f32.mrf.mxu1 }
 0x160   : > { %2352 = vrot.lane.b32.xlu1 %v6030_v60, %s5638_s24  ;;  %2350 = vrot.lane.b32.xlu0 %v6027_v59, %s5638_s24  ;;  %8099 = vst [vmem:[#allocation19_spill] sm:$0xff] %v6081_v25  ;;  %8100 = vst [vmem:[#allocation20_spill] sm:$0xff] %v6111_v47  ;;  %v988_v50 = vadd.f32 %v6101_v41, %v612_v3  ;;  %v6134_v3 = vld [vmem:[#allocation7 + $0x90] sm:$0xff]  ;;  %v6154_v59 = vld [vmem:[#allocation7 + $0x168] sm:$0xff] }
 0x161   : > { %v472_v7 = vpop.f32.mrf.mxu0  ;;  %v6053_v8 = vpop.f32.mrf.mxu1  ;;  %8102 = vst [vmem:[#allocation22_spill] sm:$0xff] %v6134_v3 }
 0x162   : > { %v6145_v56 = vadd.f32 %v6134_v3, %v472_v7 }
 0x163   : > { %v6058_v10 = vpop.f32.mrf.mxu0  ;;  %v618_v11 = vpop.f32.mrf.mxu1 }
 0x164   : > { %2384 = vrot.lane.b32.xlu1 %v6043_v4, %s5638_s24  ;;  %2093 = vrot.lane.b32.xlu0 %v6056_v9, %s5638_s24  ;;  %v6094_v34 = vadd.f32 %v6074_v19, %v618_v11  ;;  %v6136_v11 = vld [vmem:[#allocation7 + $0x68] sm:$0xff]  ;;  %8103 = vst [vmem:[#allocation23_spill] sm:$0xff] %v6145_v56 }
 0x165   : > { %v6070_v15 = vpop.f32.mrf.mxu0  ;;  %v622_v16 = vpop.f32.mrf.mxu1  ;;  %v6152_v60 = vadd.f32 %v6136_v11, %v6024_v57 }
 0x166   : > { %v6168_v57 = vadd.f32 %v6154_v59, %v622_v16 }
 0x167   : > { %v6078_v21 = vpop.f32.mrf.mxu0  ;;  %v624_v23 = vpop.f32.mrf.mxu1 }
 0x168   : > { %v6084_v27 = vadd.f32 %v6072_v17, %v624_v23  ;;  %2386 = vrot.lane.b32.xlu1 %v985_v13, %s5638_s24  ;;  %2063 = vrot.lane.b32.xlu0 %v6061_v12, %s5638_s24  ;;  %8105 = vst [vmem:[#allocation25_spill] sm:$0xff] %v6168_v57 }
 0x169   : > { %v6096_v38 = vpop.f32.mrf.mxu0 }
 0x16a   : > { %4509 = vmatprep.subr.msk.mxu0 %vm996_vm0, %v6084_v27 }
 0x16b   : > { %v486_v42 = vpop.f32.mrf.mxu0  ;;  %4510 = vmatpush3.xpose.msk.msra.mxu0 %vm996_vm0, %v6084_v27 }
 0x16c   : > { %2095 = vrot.lane.b32.xlu0 %v6099_v39, %s5638_s24  ;;  %2067 = vrot.lane.b32.xlu1 %v6081_v25, %s5638_s24 }
 0x16d   : > { %v490_v58 = vpop.f32.mrf.mxu0  ;;  %4511 = vmatprep.subr.msk.mxu0 %vm996_vm0, %v6094_v34 }
 0x16f   : > { %v6122_v62 = vpop.f32.mrf.mxu0  ;;  %4512 = vmatpush3.xpose.msk.msra.mxu0 %vm996_vm0, %v6094_v34 }
 0x170   : > { %2065 = vrot.lane.b32.xlu0 %v6108_v46, %s5638_s24  ;;  %2356 = vrot.lane.b32.xlu1 %v6111_v47, %s5638_s24 }
 0x171   : > { %v496_v63 = vpop.f32.mrf.mxu0  ;;  %4513 = vmatprep.subr.msk.mxu0 %vm996_vm0, %v988_v50 }
 0x173   : > { %v6138_v23 = vpop.f32.mrf.mxu0  ;;  %4514 = vmatpush3.xpose.msk.msra.mxu0 %vm996_vm0, %v988_v50 }
 0x174   : > { %4515 = vmatprep.subr.msk.mxu0 %vm996_vm0, %v985_v13  ;;  %2354 = vrot.lane.b32.xlu0 %v6127_v55, %s5638_s24 }
 0x175   : > { %2388 = vrot.lane.b32.xlu1 %v988_v50, %s5638_s24  ;;  %v6148_v47 = vpop.f32.mrf.mxu0  ;;  %v894_v50 = vld [vmem:[#allocation7 + $0x150] sm:$0xff] }
 0x177   : > { %v6158_v22 = vpop.f32.mrf.mxu0  ;;  %4516 = vmatpush3.xpose.msk.msra.mxu0 %vm996_vm0, %v985_v13  ;;  %v6176_v13 = vadd.f32 %v6156_v36, %v6040_v2  ;;  %v6192_v2 = vadd.f32 %v5966_v26, %v486_v42  ;;  %v6209_v42 = vadd.f32 %v5973_v30, %v490_v58  ;;  %v6227_v58 = vld [vmem:[#allocation7 + $0xa8] sm:$0xff] }
 0x178   : > { %4517 = vmatprep.subr.msk.mxu0 %vm996_vm0, %v6043_v4  ;;  %2097 = vrot.lane.b32.xlu0 %v6152_v60, %s5638_s24  ;;  %v6165_v7 = vpop.f32.mrf.mxu1 }
 0x179   : > { %8104 = vst [vmem:[#allocation24_spill] sm:$0xff] %v6165_v7  ;;  %2069 = vrot.lane.b32.xlu1 %v6145_v56, %s5638_s24  ;;  %v6172_v55 = vpop.f32.mrf.mxu0  ;;  %v6183_v7 = vadd.f32 %v894_v50, %v6053_v8  ;;  %8111 = vst [vmem:[#allocation31_spill] sm:$0xff] %v6209_v42 }
 0x17a   : > { %v6178_v25 = vpop.f32.mrf.mxu1 }
 0x17b   : > { %8106 = vst [vmem:[#allocation26_spill] sm:$0xff] %v6178_v25  ;;  %v510_v3 = vpop.f32.mrf.mxu0  ;;  %4518 = vmatpush3.xpose.msk.msra.mxu0 %vm996_vm0, %v6043_v4  ;;  %8107 = vst [vmem:[#allocation27_spill] sm:$0xff] %v6183_v7  ;;  %v6198_v4 = vld [vmem:[#allocation7 + $0x98] sm:$0xff] }
 0x17c   : > { %4519 = vmatprep.subr.msk.mxu0 %vm996_vm0, %v6014_v52  ;;  %2099 = vrot.lane.b32.xlu0 %v6176_v13, %s5638_s24  ;;  %v6189_v16 = vpop.f32.mrf.mxu1 }
 0x17d   : > { %8108 = vst [vmem:[#allocation28_spill] sm:$0xff] %v6189_v16  ;;  %2360 = vrot.lane.b32.xlu1 %v6168_v57, %s5638_s24  ;;  %v514_v25 = vpop.f32.mrf.mxu0 }
 0x17e   : > { %v6196_v56 = vpop.f32.mrf.mxu1 }
 0x17f   : > { %8109 = vst [vmem:[#allocation29_spill] sm:$0xff] %v6196_v56  ;;  %v516_v8 = vpop.f32.mrf.mxu0  ;;  %4520 = vmatpush3.xpose.msk.msra.mxu0 %vm996_vm0, %v6014_v52  ;;  %v6215_v56 = vadd.f32 %v6198_v4, %v6058_v10 }
 0x180   : > { %4521 = vmatprep.subr.msk.mxu0 %vm996_vm0, %v5997_v43  ;;  %2358 = vrot.lane.b32.xlu0 %v6183_v7, %s5638_s24  ;;  %v6206_v26 = vpop.f32.mrf.mxu1  ;;  %v6230_v7 = vadd.f32 %v6020_v53, %v496_v63 }
 0x181   : > { %8110 = vst [vmem:[#allocation30_spill] sm:$0xff] %v6206_v26  ;;  %2105 = vrot.lane.b32.xlu1 %v6192_v2, %s5638_s24  ;;  %v520_v57 = vpop.f32.mrf.mxu0  ;;  %v6242_v26 = vadd.f32 %v6227_v58, %v6070_v15 }
 0x182   : > { %v6217_v52 = vpop.f32.mrf.mxu1  ;;  %8114 = vst [vmem:[#allocation34_spill] sm:$0xff] %v6230_v7 }
 0x183   : > { %8112 = vst [vmem:[#allocation32_spill] sm:$0xff] %v6217_v52  ;;  %v522_v16 = vpop.f32.mrf.mxu0  ;;  %4522 = vmatpush3.xpose.msk.msra.mxu0 %vm996_vm0, %v5997_v43  ;;  %8116 = vst [vmem:[#allocation36_spill] sm:$0xff] %v6242_v26 }
 0x184   : > { %4523 = vmatprep.subr.msk.mxu0 %vm996_vm0, %v5980_v32  ;;  %2101 = vrot.lane.b32.xlu0 %v6215_v56, %s5638_s24  ;;  %v6225_v30 = vpop.f32.mrf.mxu1 }
 0x185   : > { %8113 = vst [vmem:[#allocation33_spill] sm:$0xff] %v6225_v30  ;;  %2075 = vrot.lane.b32.xlu1 %v6209_v42, %s5638_s24  ;;  %v6234_v10 = vpop.f32.mrf.mxu0  ;;  %v6245_v30 = vadd.f32 %v6074_v19, %v522_v16  ;;  %v6253_v42 = vadd.f32 %v6091_v33, %v514_v25 }
 0x186   : > { %v6236_v52 = vpop.f32.mrf.mxu1 }
 0x187   : > { %8115 = vst [vmem:[#allocation35_spill] sm:$0xff] %v6236_v52  ;;  %v528_v43 = vpop.f32.mrf.mxu0  ;;  %4524 = vmatpush3.xpose.msk.msra.mxu0 %vm996_vm0, %v5980_v32  ;;  %8117 = vst [vmem:[#allocation37_spill] sm:$0xff] %v6253_v42  ;;  %v6306_v52 = vld [vmem:[#allocation7 + $0x178] sm:$0xff] }
 0x188   : > { %v946_v53 = vadd.f32 %v6072_v17, %v528_v43  ;;  %2390 = vrot.lane.b32.xlu0 %v6094_v34, %s5638_s24  ;;  %v6250_v63 = vpop.f32.mrf.mxu1  ;;  %v6263_v17 = vld [vmem:[#allocation7 + $0xb0] sm:$0xff]  ;;  %v6267_v34 = vadd.f32 %v6101_v41, %v516_v8  ;;  %v893_v43 = vld [vmem:[#allocation7 + $0x148] sm:$0xff]  ;;  %8120 = vst [vmem:[#allocation40_spill] sm:$0xff] %v6306_v52 }
 0x189   : > { %2077 = vrot.lane.b32.xlu1 %v6230_v7, %s5638_s24  ;;  %v532_v32 = vpop.f32.mrf.mxu0  ;;  %v6283_v41 = vadd.f32 %v6263_v17, %v6078_v21 }
 0x18a   : > { %v6258_v15 = vadd.f32 %v5956_v0, %v532_v32  ;;  %4453 = vmatprep.subr.msk.mxu1 %vm996_vm0, %v946_v53  ;;  %v6261_v19 = vpop.f32.mrf.mxu1  ;;  %v6275_v0 = vadd.f32 %v894_v50, %v520_v57  ;;  %v6292_v50 = vadd.f32 %v6051_v6, %v510_v3  ;;  %v934_v3 = vadd.f32 %v6036_v61, %v6158_v22 }
 0x18b   : > { %8118 = vst [vmem:[#allocation38_spill] sm:$0xff] %v6261_v19  ;;  %v534_v16 = vpop.f32.mrf.mxu0  ;;  %4454 = vmatpush3.xpose.msk.msra.mxu1 %vm996_vm0, %v946_v53  ;;  %v6323_v19 = vadd.f32 %v5958_v18, %v6096_v38  ;;  %v928_v61 = vadd.f32 %v5992_v37, %v6122_v62  ;;  %v931_v18 = vadd.f32 %v6005_v45, %v6138_v23 }
 0x18c   : > { %2071 = vrot.lane.b32.xlu0 %v6242_v26, %s5638_s24  ;;  %v6271_v25 = vpop.f32.mrf.mxu1  ;;  %4455 = vmatprep.subr.msk.mxu1 %vm996_vm0, %v6245_v30  ;;  %8119 = vst [vmem:[#allocation39_spill] sm:$0xff] %v6275_v0  ;;  %v6342_v38 = vadd.f32 %v5964_v24, %v534_v16  ;;  %v6357_v24 = vadd.f32 %v6022_v54, %v6148_v47 }
 0x18d   : > { %2083 = vrot.lane.b32.xlu1 %v6253_v42, %s5638_s24  ;;  %v538_v33 = vpop.f32.mrf.mxu0  ;;  %4541 = vmatprep.mubr.msk.f32.mxu0 %vm996_vm0, %v6258_v15  ;;  %v6382_v16 = vadd.f32 %v6117_v49, %v6172_v55 }
 0x18e   : > { %v6285_v8 = vpop.f32.mrf.mxu1  ;;  %v6349_v37 = vadd.f32 %v5971_v28, %v538_v33 }
 0x18f   : > { %v6287_v32 = vpop.f32.mrf.mxu0  ;;  %4456 = vmatpush3.xpose.msk.msra.mxu1 %vm996_vm0, %v6245_v30 }
 0x190   : > { %2103 = vrot.lane.b32.xlu0 %v6283_v41, %s5638_s24  ;;  %v4425_v57 = vpop.f32.mrf.mxu1  ;;  %4457 = vmatprep.subr.msk.mxu1 %vm996_vm0, %v6267_v34 }
 0x191   : > { %2085 = vrot.lane.b32.xlu1 %v6275_v0, %s5638_s24  ;;  %v6300_v21 = vpop.f32.mrf.mxu0  ;;  %v6302_v42 = vadd.f32 %v4425_v57, %v893_v43 }
 0x192   : > { %v6304_v7 = vpop.f32.mrf.mxu1 }
 0x193   : > { %v546_v6 = vpop.f32.mrf.mxu0  ;;  %4458 = vmatpush3.xpose.msk.msra.mxu1 %vm996_vm0, %v6267_v34 }
 0x194   : > { %2392 = vrot.lane.b32.xlu0 %v6084_v27, %s5638_s24  ;;  %4459 = vmatprep.subr.msk.mxu1 %vm996_vm0, %v6292_v50  ;;  %v4428_v0 = vpop.f32.mrf.mxu1  ;;  %v955_v28 = vadd.f32 %v6038_v1, %v546_v6 }
 0x195   : > { %2933 = vrot.lane.b32.xlu1 %v6302_v42, %s5638_s24  ;;  %v550_v43 = vpop.f32.mrf.mxu0  ;;  %v6319_v57 = vadd.f32 %v4428_v0, %v6306_v52 }
 0x196   : > { %v6376_v47 = vadd.f32 %v6049_v5, %v550_v43  ;;  %v872_v43 = vld [vmem:[#allocation7 + $0xa0] sm:$0xff] }
 0x197   : > { %v552_v26 = vpop.f32.mrf.mxu0  ;;  %4460 = vmatpush3.xpose.msk.msra.mxu1 %vm996_vm0, %v6292_v50 }
 0x198   : > { %2073 = vrot.lane.b32.xlu0 %v6323_v19, %s5638_s24  ;;  %4461 = vmatprep.subr.msk.mxu1 %vm996_vm0, %v934_v3 }
 0x199   : > { %2937 = vrot.lane.b32.xlu1 %v6319_v57, %s5638_s24  ;;  %v6332_v22 = vpop.f32.mrf.mxu0 }
 0x19b   : > { %v558_v27 = vpop.f32.mrf.mxu0  ;;  %4462 = vmatpush3.xpose.msk.msra.mxu1 %vm996_vm0, %v934_v3 }
 0x19c   : > { %2107 = vrot.lane.b32.xlu0 %v928_v61, %s5638_s24  ;;  %4463 = vmatprep.subr.msk.mxu1 %vm996_vm0, %v931_v18  ;;  %v961_v5 = vadd.f32 %v6136_v11, %v558_v27  ;;  %v8138_v27 = vld [vmem:[#allocation16_spill] sm:$0xff] }
 0x19d   : > { %2119 = vrot.lane.b32.xlu1 %v946_v53, %s5638_s24  ;;  %v562_v0 = vpop.f32.mrf.mxu0 }
 0x19e   : > { %v6409_v55 = vadd.f32 %v6068_v14, %v562_v0  ;;  %v6423_v14 = vadd.f32 %v6076_v20, %v552_v26  ;;  %v6444_v20 = vadd.f32 %v6154_v59, %v6234_v10  ;;  %v8140_v0 = vld [vmem:[#allocation35_spill] sm:$0xff] }
 0x19f   : > { %v564_v52 = vpop.f32.mrf.mxu0  ;;  %4464 = vmatpush3.xpose.msk.msra.mxu1 %vm996_vm0, %v931_v18 }
 0x1a0   : > { %2109 = vrot.lane.b32.xlu0 %v931_v18, %s5638_s24  ;;  %4465 = vmatprep.subr.msk.mxu1 %vm996_vm0, %v928_v61  ;;  %v6396_v49 = vadd.f32 %v6156_v36, %v564_v52  ;;  %v887_v36 = vld [vmem:[#allocation7 + $0x118] sm:$0xff] }
 0x1a1   : > { %2362 = vrot.lane.b32.xlu1 %v6342_v38, %s5638_s24  ;;  %v6353_v45 = vpop.f32.mrf.mxu0  ;;  %v6429_v11 = vadd.f32 %v6271_v25, %v887_v36  ;;  %v8130_v25 = vld [vmem:[#allocation23_spill] sm:$0xff]  ;;  %v8149_v36 = vld [vmem:[#allocation21_spill] sm:$0xff] }
 0x1a3   : > { %v570_v62 = vpop.f32.mrf.mxu0  ;;  %4466 = vmatpush3.xpose.msk.msra.mxu1 %vm996_vm0, %v928_v61  ;;  %v8136_v61 = vld [vmem:[#allocation33_spill] sm:$0xff] }
 0x1a4   : > { %2079 = vrot.lane.b32.xlu0 %v6357_v24, %s5638_s24  ;;  %4467 = vmatprep.subr.msk.mxu1 %vm996_vm0, %v6192_v2  ;;  %v967_v1 = vadd.f32 %v6198_v4, %v570_v62  ;;  %v952_v4 = vadd.f32 %v5994_v40, %v6287_v32  ;;  %v8143_v62 = vld [vmem:[#allocation34_spill] sm:$0xff] }
 0x1a5   : > { %2332 = vrot.lane.b32.xlu1 %v6349_v37, %s5638_s24  ;;  %v574_v23 = vpop.f32.mrf.mxu0 }
 0x1a7   : > { %v576_v53 = vpop.f32.mrf.mxu0  ;;  %4468 = vmatpush3.xpose.msk.msra.mxu1 %vm996_vm0, %v6192_v2 }
 0x1a8   : > { %v6370_v54 = vadd.f32 %v6263_v17, %v576_v53  ;;  %2111 = vrot.lane.b32.xlu0 %v934_v3, %s5638_s24  ;;  %4469 = vmatprep.subr.msk.mxu1 %vm996_vm0, %v6283_v41  ;;  %v8134_v3 = vld [vmem:[#allocation15_spill] sm:$0xff]  ;;  %v8144_v53 = vld [vmem:[#allocation30_spill] sm:$0xff] }
 0x1a9   : > { %2366 = vrot.lane.b32.xlu1 %v955_v28, %s5638_s24 }
 0x1aa   : > { %4525 = vmatprep.subr.msk.mxu0 %vm996_vm0, %v6370_v54 }
 0x1ab   : > { %4470 = vmatpush3.xpose.msk.msra.mxu1 %vm996_vm0, %v6283_v41  ;;  %4526 = vmatpush3.xpose.msk.msra.mxu0 %vm996_vm0, %v6370_v54  ;;  %v878_v41 = vld [vmem:[#allocation7 + $0xd0] sm:$0xff] }
 0x1ac   : > { %2081 = vrot.lane.b32.xlu0 %v6382_v16, %s5638_s24  ;;  %4471 = vmatprep.subr.msk.mxu1 %vm996_vm0, %v6215_v56 }
 0x1ad   : > { %2336 = vrot.lane.b32.xlu1 %v6376_v47, %s5638_s24  ;;  %4527 = vmatprep.subr.msk.mxu0 %vm996_vm0, %v967_v1 }
 0x1af   : > { %4472 = vmatpush3.xpose.msk.msra.mxu1 %vm996_vm0, %v6215_v56  ;;  %4528 = vmatpush3.xpose.msk.msra.mxu0 %vm996_vm0, %v967_v1  ;;  %v763_v56 = vpop.f32.mrf.mxu1 }
 0x1b0   : > { %2113 = vrot.lane.b32.xlu0 %v6292_v50, %s5638_s24  ;;  %4473 = vmatprep.subr.msk.mxu1 %vm996_vm0, %v6176_v13  ;;  %v875_v50 = vld [vmem:[#allocation7 + $0xb8] sm:$0xff] }
 0x1b1   : > { %2370 = vrot.lane.b32.xlu1 %v961_v5, %s5638_s24  ;;  %4529 = vmatprep.subr.msk.mxu0 %vm996_vm0, %v6396_v49  ;;  %v6584_v18 = vadd.f32 %v8136_v61, %v875_v50 }
 0x1b3   : > { %4474 = vmatpush3.xpose.msk.msra.mxu1 %vm996_vm0, %v6176_v13  ;;  %4530 = vmatpush3.xpose.msk.msra.mxu0 %vm996_vm0, %v6396_v49  ;;  %v6455_v13 = vadd.f32 %v6227_v58, %v574_v23 }
 0x1b4   : > { %2115 = vrot.lane.b32.xlu0 %v6267_v34, %s5638_s24  ;;  %4475 = vmatprep.subr.msk.mxu1 %vm996_vm0, %v6152_v60 }
 0x1b5   : > { %2340 = vrot.lane.b32.xlu1 %v6409_v55, %s5638_s24  ;;  %4531 = vmatprep.subr.msk.mxu0 %vm996_vm0, %v961_v5 }
 0x1b7   : > { %4476 = vmatpush3.xpose.msk.msra.mxu1 %vm996_vm0, %v6152_v60  ;;  %4532 = vmatpush3.xpose.msk.msra.mxu0 %vm996_vm0, %v961_v5  ;;  %v896_v60 = vld [vmem:[#allocation7 + $0x160] sm:$0xff]  ;;  %v863_v5 = vld [vmem:[#allocation7 + $0x58] sm:$0xff] }
 0x1b8   : > { %2117 = vrot.lane.b32.xlu0 %v6245_v30, %s5638_s24  ;;  %4477 = vmatprep.subr.msk.mxu1 %vm996_vm0, %v6099_v39  ;;  %v944_v59 = vadd.f32 %v896_v60, %v763_v56  ;;  %v860_v56 = vld [vmem:[#allocation7 + $0x40] sm:$0xff] }
 0x1b9   : > { %2929 = vrot.lane.b32.xlu1 %v6429_v11, %s5638_s24  ;;  %4533 = vmatprep.subr.msk.mxu0 %vm996_vm0, %v6423_v14 }
 0x1bb   : > { %4478 = vmatpush3.xpose.msk.msra.mxu1 %vm996_vm0, %v6099_v39  ;;  %4534 = vmatpush3.xpose.msk.msra.mxu0 %vm996_vm0, %v6423_v14 }
 0x1bc   : > { %2087 = vrot.lane.b32.xlu0 %v6444_v20, %s5638_s24  ;;  %4479 = vmatprep.subr.msk.mxu1 %vm996_vm0, %v6056_v9 }
 0x1bd   : > { %2374 = vrot.lane.b32.xlu1 %v967_v1, %s5638_s24  ;;  %4535 = vmatprep.subr.msk.mxu0 %vm996_vm0, %v955_v28  ;;  %v8146_v1 = vld [vmem:[#allocation18_spill] sm:$0xff] }
 0x1be   : > { %v6459_v2 = vpop.permute.xlu0 %2346  ;;  %v6461_v39 = vpop.permute.xlu1 %2057 }
 0x1bf   : > { %8121 = vst [vmem:[#allocation41_spill] sm:$0xff] %v6459_v2  ;;  %4480 = vmatpush3.xpose.msk.msra.mxu1 %vm996_vm0, %v6056_v9  ;;  %4536 = vmatpush3.xpose.msk.msra.mxu0 %vm996_vm0, %v955_v28 }
 0x1c0   : > { %2935 = vrot.lane.b32.xlu0 %v944_v59, %s5638_s24  ;;  %4481 = vmatprep.subr.msk.mxu1 %vm996_vm0, %v6008_v48 }
 0x1c1   : > { %2344 = vrot.lane.b32.xlu1 %v6455_v13, %s5638_s24  ;;  %4537 = vmatprep.subr.msk.mxu0 %vm996_vm0, %v952_v4 }
 0x1c2   : > { %v6474_v26 = vpop.permute.xlu1 %2378  ;;  %v6476_v52 = vpop.permute.xlu0 %2089 }
 0x1c3   : > { %8122 = vst [vmem:[#allocation42_spill] sm:$0xff] %v6474_v26  ;;  %4482 = vmatpush3.xpose.msk.msra.mxu1 %vm996_vm0, %v6008_v48  ;;  %4538 = vmatpush3.xpose.msk.msra.mxu0 %vm996_vm0, %v952_v4  ;;  %v954_v48 = vadd.f32 %v6003_v44, %v6300_v21  ;;  %v960_v44 = vadd.f32 %v6089_v29, %v6332_v22  ;;  %v884_v29 = vld [vmem:[#allocation7 + $0x100] sm:$0xff]  ;;  %v8132_v21 = vld [vmem:[#allocation36_spill] sm:$0xff] }
 0x1c4   : > { %4483 = vmatprep.subr.msk.mxu1 %vm996_vm0, %v5977_v31  ;;  %2330 = vrot.lane.b32.xlu0 %v6258_v15, %s5638_s24  ;;  %v8126_v15 = vld [vmem:[#allocation22_spill] sm:$0xff]  ;;  %v6546_v34 = vadd.f32 %v884_v29, %v6285_v8  ;;  %8137 = vst [vmem:[#allocation36_spill] sm:$0xff] %v6584_v18  ;;  %v8159_v29 = vld [vmem:[#allocation39_spill] sm:$0xff] }
 0x1c5   : > { %2376 = vrot.lane.b32.xlu1 %v6370_v54, %s5638_s24  ;;  %4539 = vmatprep.subr.msk.mxu0 %vm996_vm0, %v6342_v38  ;;  %v966_v17 = vadd.f32 %v8126_v15, %v6353_v45  ;;  %v8142_v45 = vld [vmem:[#allocation31_spill] sm:$0xff] }
 0x1c6   : > { %v6489_v40 = vpop.permute.xlu1 %2348  ;;  %v6491_v9 = vpop.permute.xlu0 %2059 }
 0x1c7   : > { %8123 = vst [vmem:[#allocation43_spill] sm:$0xff] %v6489_v40  ;;  %4484 = vmatpush3.xpose.msk.msra.mxu1 %vm996_vm0, %v5977_v31  ;;  %4540 = vmatpush3.xpose.msk.msra.mxu0 %vm996_vm0, %v6342_v38  ;;  %v890_v31 = vld [vmem:[#allocation7 + $0x130] sm:$0xff] }
 0x1c8   : > { %4565 = vmatprep.subr.mxu1 %v6319_v57  ;;  %2364 = vrot.lane.b32.xlu0 %v952_v4, %s5638_s24  ;;  %v8139_v38 = vld [vmem:[#allocation17_spill] sm:$0xff] }
 0x1c9   : > { %v8155_v4 = vld [vmem:[#allocation29_spill] sm:$0xff] }
 0x1ca   : > { %v6501_v30 = vpop.permute.xlu1 %2380  ;;  %v6503_v58 = vpop.permute.xlu0 %2091  ;;  %4486 = vmatmul.mubr.msk.f32.vlgmr.msra.gmra.mxu1 %vm996_vm0, %v5983_v35  ;;  %4542 = vmatmul.mubr.msk.f32.vlgmr.msra.gmra.mxu0 %vm996_vm0, %v6349_v37  ;;  %v6593_v37 = vadd.f32 %v872_v43, %v8140_v0 }
 0x1cb   : > { %8124 = vst [vmem:[#allocation44_spill] sm:$0xff] %v6501_v30  ;;  %4488 = vmatprep.mubr.msk.f32.mxu1 %vm996_vm0, %v6011_v51  ;;  %4544 = vmatprep.mubr.msk.f32.mxu0 %vm996_vm0, %v954_v48  ;;  %v6526_v51 = vadd.f32 %v890_v31, %v6304_v7  ;;  %v8157_v31 = vld [vmem:[#allocation37_spill] sm:$0xff] }
 0x1cc   : > { %4566 = vmatpush3.msra.mxu1 %v6319_v57  ;;  %2334 = vrot.lane.b32.xlu0 %v954_v48, %s5638_s24  ;;  %v6640_v48 = vadd.f32 %v860_v56, %v8155_v4 }
 0x1cd   : > { %4567 = vmatprep.subr.mxu1 %v944_v59 }
 0x1ce   : > { %4568 = vmatpush3.msra.mxu1 %v944_v59  ;;  %v6516_v10 = vpop.permute.xlu1 %2382  ;;  %v6518_v35 = vpop.permute.xlu0 %2061  ;;  %4545 = vmatmul.mubr.msk.f32.gmra.mxu0 %vm996_vm0, %v6376_v47  ;;  %v866_v47 = vld [vmem:[#allocation7 + $0x70] sm:$0xff]  ;;  %v8154_v59 = vld [vmem:[#allocation27_spill] sm:$0xff]  ;;  %8156 = vst [vmem:[#allocation35_spill] sm:$0xff] %v6640_v48 }
 0x1cf   : > { %8125 = vst [vmem:[#allocation45_spill] sm:$0xff] %v6516_v10  ;;  %4489 = vmatmul.mubr.msk.f32.gmra.mxu1 %vm996_vm0, %v6061_v12  ;;  %4569 = vmatprep.subr.mxu1 %v6302_v42 }
 0x1d0   : > { %4491 = vmatprep.mubr.msk.f32.mxu1 %vm996_vm0, %v6108_v46  ;;  %4547 = vmatprep.mubr.msk.f32.mxu0 %vm996_vm0, %v960_v44  ;;  %v881_v46 = vld [vmem:[#allocation7 + $0xe8] sm:$0xff] }
 0x1d1   : > { %4570 = vmatpush3.msra.mxu1 %v6302_v42  ;;  %2368 = vrot.lane.b32.xlu0 %v6423_v14, %s5638_s24  ;;  %v8129_v42 = vld [vmem:[#allocation19_spill] sm:$0xff]  ;;  %v6555_v33 = vadd.f32 %v6250_v63, %v881_v46  ;;  %v8133_v63 = vld [vmem:[#allocation38_spill] sm:$0xff] }
 0x1d2   : > { %4571 = vmatprep.subr.mxu1 %v6526_v51  ;;  %v6537_v12 = vpop.permute.xlu1 %2352  ;;  %v6539_v7 = vpop.permute.xlu0 %2350  ;;  %4548 = vmatmul.mubr.msk.f32.gmra.mxu0 %vm996_vm0, %v6409_v55  ;;  %v6570_v6 = vadd.f32 %v878_v41, %v8133_v63  ;;  %8141 = vst [vmem:[#allocation38_spill] sm:$0xff] %v6593_v37  ;;  %v8165_v41 = vld [vmem:[#allocation26_spill] sm:$0xff] }
 0x1d3   : > { %8127 = vst [vmem:[#allocation22_spill] sm:$0xff] %v6537_v12  ;;  %8128 = vst [vmem:[#allocation46_spill] sm:$0xff] %v6539_v7  ;;  %4572 = vmatpush3.msra.mxu1 %v6526_v51  ;;  %4550 = vmatprep.mubr.msk.f32.mxu0 %vm996_vm0, %v966_v17 }
 0x1d4   : > { %4492 = vmatmul.mubr.msk.f32.gmra.mxu1 %vm996_vm0, %v8129_v42  ;;  %4573 = vmatprep.subr.mxu1 %v6429_v11  ;;  %v8163_v42 = vld [vmem:[#allocation25_spill] sm:$0xff] }
 0x1d5   : > { %4494 = vmatprep.mubr.msk.f32.mxu1 %vm996_vm0, %v8130_v25  ;;  %4574 = vmatpush3.msra.mxu1 %v6429_v11  ;;  %v6661_v25 = vpop.f32.mrf.mxu1 }
 0x1d6   : > { %4575 = vmatprep.subr.mxu1 %v6546_v34  ;;  %2338 = vrot.lane.b32.xlu0 %v960_v44, %s5638_s24  ;;  %v6559_v8 = vpop.permute.xlu1 %2384  ;;  %v6561_v32 = vpop.permute.xlu0 %2093  ;;  %8164 = vst [vmem:[#allocation18_spill] sm:$0xff] %v6661_v25 }
 0x1d7   : > { %8131 = vst [vmem:[#allocation19_spill] sm:$0xff] %v6559_v8  ;;  %4576 = vmatpush3.msra.mxu1 %v6546_v34  ;;  %4551 = vmatmul.mubr.msk.f32.gmra.mxu0 %vm996_vm0, %v6455_v13  ;;  %v8153_v13 = vld [vmem:[#allocation20_spill] sm:$0xff]  ;;  %v6676_v63 = vpop.f32.mrf.mxu1 }
 0x1d8   : > { %4495 = vmatmul.mubr.msk.f32.gmra.mxu1 %vm996_vm0, %v8132_v21  ;;  %4577 = vmatprep.subr.mxu1 %v6555_v33  ;;  %8167 = vst [vmem:[#allocation21_spill] sm:$0xff] %v6676_v63 }
 0x1d9   : > { %4497 = vmatprep.mubr.msk.f32.mxu1 %vm996_vm0, %v6323_v19  ;;  %4553 = vmatprep.mubr.msk.f32.mxu0 %vm996_vm0, %v8134_v3  ;;  %v869_v19 = vld [vmem:[#allocation7 + $0x88] sm:$0xff]  ;;  %v6680_v3 = vpop.f32.mrf.mxu1 }
 0x1da   : > { %4578 = vmatpush3.msra.mxu1 %v6555_v33  ;;  %2372 = vrot.lane.b32.xlu0 %v6396_v49, %s5638_s24  ;;  %v6579_v57 = vpop.permute.xlu1 %2386  ;;  %v6581_v22 = vpop.permute.xlu0 %2063  ;;  %v6606_v54 = vadd.f32 %v8144_v53, %v869_v19  ;;  %v8147_v49 = vld [vmem:[#allocation32_spill] sm:$0xff] }
 0x1db   : > { %8135 = vst [vmem:[#allocation23_spill] sm:$0xff] %v6579_v57  ;;  %4579 = vmatprep.subr.mxu1 %v6570_v6  ;;  %4554 = vmatmul.mubr.msk.f32.gmra.mxu0 %vm996_vm0, %v8138_v27  ;;  %v6617_v55 = vadd.f32 %v866_v47, %v8147_v49  ;;  %v6686_v61 = vpop.f32.mrf.mxu1 }
 0x1dc   : > { %4580 = vmatpush3.msra.mxu1 %v6570_v6  ;;  %4556 = vmatprep.mubr.msk.f32.mxu0 %vm996_vm0, %v8139_v38  ;;  %8145 = vst [vmem:[#allocation15_spill] sm:$0xff] %v6606_v54  ;;  %8170 = vst [vmem:[#allocation27_spill] sm:$0xff] %v6686_v61 }
 0x1dd   : > { %4498 = vmatmul.mubr.msk.f32.gmra.mxu1 %vm996_vm0, %v8142_v45  ;;  %4581 = vmatprep.subr.mxu1 %v6584_v18  ;;  %8148 = vst [vmem:[#allocation33_spill] sm:$0xff] %v6617_v55  ;;  %v6688_v27 = vpop.f32.mrf.mxu1 }
 0x1de   : > { %4500 = vmatprep.mubr.msk.f32.mxu1 %vm996_vm0, %v8143_v62  ;;  %4582 = vmatpush3.msra.mxu1 %v6584_v18  ;;  %v6601_v28 = vpop.permute.xlu0 %2095  ;;  %v6603_v23 = vpop.permute.xlu1 %2067  ;;  %8171 = vst [vmem:[#allocation29_spill] sm:$0xff] %v6688_v27 }
 0x1df   : > { %4583 = vmatprep.subr.mxu1 %v6593_v37  ;;  %2342 = vrot.lane.b32.xlu0 %v966_v17, %s5638_s24  ;;  %v8161_v17 = vld [vmem:[#allocation24_spill] sm:$0xff]  ;;  %v6692_v38 = vpop.f32.mrf.mxu1 }
 0x1e0   : > { %4584 = vmatpush3.msra.mxu1 %v6593_v37  ;;  %4557 = vmatmul.mubr.msk.f32.gmra.mxu0 %vm996_vm0, %v8146_v1  ;;  %8173 = vst [vmem:[#allocation39_spill] sm:$0xff] %v6692_v38 }
 0x1e1   : > { %4501 = vmatmul.mubr.msk.f32.gmra.mxu1 %vm996_vm0, %v6357_v24  ;;  %4585 = vmatprep.subr.mxu1 %v6606_v54  ;;  %v8151_v24 = vld [vmem:[#allocation28_spill] sm:$0xff]  ;;  %v6694_v0 = vpop.f32.mrf.mxu1 }
 0x1e2   : > { %4503 = vmatprep.mubr.msk.f32.mxu1 %vm996_vm0, %v6382_v16  ;;  %4559 = vmatprep.mubr.msk.f32.mxu0 %vm996_vm0, %v8149_v36  ;;  %v6623_v14 = vpop.permute.xlu0 %2065  ;;  %v6625_v11 = vpop.permute.xlu1 %2356  ;;  %v6631_v60 = vadd.f32 %v8151_v24, %v863_v5  ;;  %v857_v16 = vld [vmem:[#allocation7 + $0x28] sm:$0xff]  ;;  %8168 = vst [vmem:[#allocation28_spill] sm:$0xff] %v6680_v3  ;;  %8174 = vst [vmem:[#allocation24_spill] sm:$0xff] %v6694_v0 }
 0x1e3   : > { %8150 = vst [vmem:[#allocation16_spill] sm:$0xff] %v6625_v11  ;;  %4586 = vmatpush3.msra.mxu1 %v6606_v54  ;;  %2931 = vrot.lane.b32.xlu0 %v6526_v51, %s5638_s24  ;;  %v854_v51 = vld [vmem:[#allocation7 + $0x10] sm:$0xff]  ;;  %v6653_v46 = vadd.f32 %v8161_v17, %v857_v16  ;;  %v6698_v53 = vpop.f32.mrf.mxu1  ;;  %v8184_v17 = vld [vmem:[#allocation40_spill] sm:$0xff] }
 0x1e4   : > { %8152 = vst [vmem:[#allocation17_spill] sm:$0xff] %v6631_v60  ;;  %4587 = vmatprep.subr.mxu1 %v6617_v55  ;;  %4560 = vmatmul.mubr.msk.f32.gmra.mxu0 %vm996_vm0, %v8153_v13  ;;  %v6664_v50 = vadd.f32 %v854_v51, %v8165_v41  ;;  %8175 = vst [vmem:[#allocation25_spill] sm:$0xff] %v6698_v53 }
 0x1e5   : > { %4588 = vmatpush3.msra.mxu1 %v6617_v55  ;;  %4562 = vmatprep.mubr.msk.f32.mxu0 %vm996_vm0, %v8154_v59  ;;  %8162 = vst [vmem:[#allocation30_spill] sm:$0xff] %v6653_v46  ;;  %v6700_v47 = vpop.f32.mrf.mxu1 }
 0x1e6   : > { %4504 = vmatmul.mubr.msk.f32.gmra.mxu1 %vm996_vm0, %v8157_v31  ;;  %4589 = vmatprep.subr.mxu1 %v6631_v60  ;;  %v6645_v44 = vpop.permute.xlu0 %2354  ;;  %8166 = vst [vmem:[#allocation32_spill] sm:$0xff] %v6664_v50  ;;  %8176 = vst [vmem:[#allocation26_spill] sm:$0xff] %v6700_v47 }
 0x1e7   : > { %8158 = vst [vmem:[#allocation31_spill] sm:$0xff] %v6645_v44  ;;  %4506 = vmatprep.mubr.msk.f32.mxu1 %vm996_vm0, %v8159_v29  ;;  %4590 = vmatpush3.msra.mxu1 %v6631_v60  ;;  %v6650_v15 = vpop.permute.xlu1 %2388  ;;  %v6706_v49 = vpop.f32.mrf.mxu1 }
 0x1e8   : > { %8160 = vst [vmem:[#allocation34_spill] sm:$0xff] %v6650_v15  ;;  %4591 = vmatprep.subr.mxu1 %v6640_v48  ;;  %2927 = vrot.lane.b32.xlu0 %v6546_v34, %s5638_s24  ;;  %8178 = vst [vmem:[#allocation48_spill] sm:$0xff] %v6706_v49 }
 0x1e9   : > { %4592 = vmatpush3.msra.mxu1 %v6640_v48  ;;  %4563 = vmatmul.mubr.msk.f32.gmra.mxu0 %vm996_vm0, %v8163_v42  ;;  %v6708_v36 = vpop.f32.mrf.mxu1 }
 0x1ea   : > { %4507 = vmatmul.mubr.msk.f32.gmra.mxu1 %vm996_vm0, %v6444_v20  ;;  %4593 = vmatprep.subr.mxu1 %v6653_v46  ;;  %v6669_v21 = vpop.permute.xlu0 %2097  ;;  %8179 = vst [vmem:[#allocation49_spill] sm:$0xff] %v6708_v36 }
 0x1eb   : > { %4594 = vmatpush3.msra.mxu1 %v6653_v46  ;;  %4709 = vmatprep.mubr.msk.f32.mxu0 %vm996_vm0, %v6461_v39  ;;  %v6674_v34 = vpop.permute.xlu1 %2069  ;;  %v6714_v13 = vpop.f32.mrf.mxu1 }
 0x1ec   : > { %4595 = vmatprep.subr.mxu1 %v6664_v50  ;;  %8180 = vst [vmem:[#allocation50_spill] sm:$0xff] %v6714_v13 }
 0x1ed   : > { %4596 = vmatpush3.msra.mxu1 %v6664_v50  ;;  %v6716_v16 = vpop.f32.mrf.mxu1 }
 0x1ee   : > { %v6682_v20 = vpop.permute.xlu0 %2099  ;;  %8181 = vst [vmem:[#allocation51_spill] sm:$0xff] %v6716_v16 }
 0x1ef   : > { %v6684_v43 = vpop.permute.xlu1 %2360  ;;  %v6720_v31 = vpop.f32.mrf.mxu1 }
 0x1f0   : > { %8169 = vst [vmem:[#allocation20_spill] sm:$0xff] %v6684_v43  ;;  %8182 = vst [vmem:[#allocation52_spill] sm:$0xff] %v6720_v31 }
 0x1f1   : > { %v4452_v51 = vpop.f32.mrf.mxu1 }
 0x1f2   : > { %v6690_v19 = vpop.permute.xlu0 %2358  ;;  %v6725_v42 = vadd.f32 %v4452_v51, %v8184_v17 }
 0x1f3   : > { %8172 = vst [vmem:[#allocation37_spill] sm:$0xff] %v6690_v19  ;;  %v2106_v39 = vpop.permute.xlu1 %2105 }
 0x1f4   : > { %4621 = vmatprep.subr.mxu1 %v6725_v42 }
 0x1f6   : > { %v2102_v45 = vpop.permute.xlu0 %2101 }
 0x1f7   : > { %v6696_v62 = vpop.permute.xlu1 %2075 }
 0x1fa   : > { %v6702_v1 = vpop.permute.xlu0 %2390 }
 0x1fb   : > { %8177 = vst [vmem:[#allocation47_spill] sm:$0xff] %v6702_v1  ;;  %v6704_v5 = vpop.permute.xlu1 %2077 }
 0x1fe   : > { %v6710_v56 = vpop.permute.xlu0 %2071 }
 0x1ff   : > { %v6712_v24 = vpop.permute.xlu1 %2083 }
 0x202   : > { %v2104_v59 = vpop.permute.xlu0 %2103 }
 0x203   : > { %v6718_v4 = vpop.permute.xlu1 %2085 }
 0x206   : > { %v6722_v29 = vpop.permute.xlu0 %2392 }
 0x207   : > { %8183 = vst [vmem:[#allocation53_spill] sm:$0xff] %v6722_v29  ;;  %v6727_v41 = vpop.permute.xlu1 %2933 }
 0x20a   : > { %v6730_v50 = vpop.permute.xlu0 %2073 }
 0x20b   : > { %v2938_v46 = vpop.permute.xlu1 %2937 }
 0x20e   : > { %v2108_v48 = vpop.permute.xlu0 %2107 }
 0x20f   : > { %v2120_v43 = vpop.permute.xlu1 %2119 }
 0x210   : > { %4677 = vmatprep.subr.msk.mxu0 %vm996_vm0, %v2120_v43 }
 0x211   : > { %4678 = vmatpush3.xpose.msk.msra.mxu0 %vm996_vm0, %v2120_v43 }
 0x212   : > { %v2110_v60 = vpop.permute.xlu0 %2109 }
 0x216   : > { %v6734_v19 = vpop.permute.xlu0 %2079 }
 0x21a   : > { %v2112_v11 = vpop.permute.xlu0 %2111 }
 0x21e   : > { %v6736_v44 = vpop.permute.xlu0 %2081 }
 0x222   : > { %v2114_v51 = vpop.permute.xlu0 %2113 }
 0x226   : > { %v2116_v17 = vpop.permute.xlu0 %2115 }
 0x22a   : > { %v2118_v12 = vpop.permute.xlu0 %2117 }
 0x22b   : > { %4679 = vmatprep.subr.msk.mxu0 %vm996_vm0, %v2118_v12 }
 0x22c   : > { %4680 = vmatpush3.xpose.msk.msra.mxu0 %vm996_vm0, %v2118_v12 }
 0x22d   : > { %4681 = vmatprep.subr.msk.mxu0 %vm996_vm0, %v2116_v17 }
 0x22e   : > { %v6743_v43 = vpop.permute.xlu0 %2087 }
 0x230   : > { %4682 = vmatpush3.xpose.msk.msra.mxu0 %vm996_vm0, %v2116_v17 }
 0x231   : > { %4683 = vmatprep.subr.msk.mxu0 %vm996_vm0, %v2114_v51 }
 0x232   : > { %v2936_v7 = vpop.permute.xlu0 %2935 }
 0x234   : > { %4684 = vmatpush3.xpose.msk.msra.mxu0 %vm996_vm0, %v2114_v51 }
 0x235   : > { %4685 = vmatprep.subr.msk.mxu0 %vm996_vm0, %v2112_v11 }
 0x236   : > { %v6751_v12 = vpop.permute.xlu0 %2330 }
 0x237   : > { %8185 = vst [vmem:[#allocation40_spill] sm:$0xff] %v6751_v12 }
 0x238   : > { %4686 = vmatpush3.xpose.msk.msra.mxu0 %vm996_vm0, %v2112_v11  ;;  %v6761_v11 = vpop.permute.xlu1 %2362 }
 0x239   : > { %4687 = vmatprep.subr.msk.mxu0 %vm996_vm0, %v2110_v60  ;;  %8187 = vst [vmem:[#allocation55_spill] sm:$0xff] %v6761_v11 }
 0x23a   : > { %v6757_v51 = vpop.permute.xlu0 %2364 }
 0x23b   : > { %8186 = vst [vmem:[#allocation54_spill] sm:$0xff] %v6757_v51 }
 0x23c   : > { %4688 = vmatpush3.xpose.msk.msra.mxu0 %vm996_vm0, %v2110_v60 }
 0x23d   : > { %4689 = vmatprep.subr.msk.mxu0 %vm996_vm0, %v2108_v48 }
 0x23e   : > { %v6763_v60 = vpop.permute.xlu0 %2334 }
 0x23f   : > { %8188 = vst [vmem:[#allocation56_spill] sm:$0xff] %v6763_v60 }
 0x240   : > { %4690 = vmatpush3.xpose.msk.msra.mxu0 %vm996_vm0, %v2108_v48  ;;  %v6768_v48 = vpop.permute.xlu1 %2332 }
 0x241   : > { %4691 = vmatprep.subr.msk.mxu0 %vm996_vm0, %v2106_v39  ;;  %8189 = vst [vmem:[#allocation57_spill] sm:$0xff] %v6768_v48 }
 0x244   : > { %4692 = vmatpush3.xpose.msk.msra.mxu0 %vm996_vm0, %v2106_v39  ;;  %v6774_v39 = vpop.permute.xlu0 %2368 }
 0x245   : > { %4693 = vmatprep.subr.msk.mxu0 %vm996_vm0, %v2104_v59  ;;  %8190 = vst [vmem:[#allocation58_spill] sm:$0xff] %v6774_v39 }
 0x248   : > { %4694 = vmatpush3.xpose.msk.msra.mxu0 %vm996_vm0, %v2104_v59  ;;  %v6782_v59 = vpop.permute.xlu0 %2338 }
 0x249   : > { %4695 = vmatprep.subr.msk.mxu0 %vm996_vm0, %v2102_v45  ;;  %8192 = vst [vmem:[#allocation60_spill] sm:$0xff] %v6782_v59 }
 0x24c   : > { %4696 = vmatpush3.xpose.msk.msra.mxu0 %vm996_vm0, %v2102_v45  ;;  %v6780_v45 = vpop.permute.xlu1 %2366 }
 0x24d   : > { %4697 = vmatprep.subr.msk.mxu0 %vm996_vm0, %v6682_v20  ;;  %8191 = vst [vmem:[#allocation59_spill] sm:$0xff] %v6780_v45 }
 0x250   : > { %4698 = vmatpush3.xpose.msk.msra.mxu0 %vm996_vm0, %v6682_v20  ;;  %v6788_v20 = vpop.permute.xlu1 %2336 }
 0x251   : > { %4699 = vmatprep.subr.msk.mxu0 %vm996_vm0, %v6669_v21  ;;  %8193 = vst [vmem:[#allocation61_spill] sm:$0xff] %v6788_v20 }
 0x254   : > { %4700 = vmatpush3.xpose.msk.msra.mxu0 %vm996_vm0, %v6669_v21  ;;  %v6794_v21 = vpop.permute.xlu0 %2372 }
 0x255   : > { %4701 = vmatprep.subr.msk.mxu0 %vm996_vm0, %v6601_v28  ;;  %8194 = vst [vmem:[#allocation62_spill] sm:$0xff] %v6794_v21 }
 0x258   : > { %4702 = vmatpush3.xpose.msk.msra.mxu0 %vm996_vm0, %v6601_v28  ;;  %v6800_v28 = vpop.permute.xlu1 %2370  ;;  %v6802_v17 = vpop.permute.xlu0 %2342 }
 0x259   : > { %4703 = vmatprep.subr.msk.mxu0 %vm996_vm0, %v6561_v32  ;;  %8195 = vst [vmem:[#allocation63_spill] sm:$0xff] %v6800_v28  ;;  %8196 = vst [vmem:[#allocation64_spill] sm:$0xff] %v6802_v17 }
 0x25c   : > { %4704 = vmatpush3.xpose.msk.msra.mxu0 %vm996_vm0, %v6561_v32  ;;  %v6808_v32 = vpop.permute.xlu1 %2340 }
 0x25d   : > { %4705 = vmatprep.subr.msk.mxu0 %vm996_vm0, %v6503_v58  ;;  %8197 = vst [vmem:[#allocation65_spill] sm:$0xff] %v6808_v32 }
 0x260   : > { %4706 = vmatpush3.xpose.msk.msra.mxu0 %vm996_vm0, %v6503_v58  ;;  %v2932_v58 = vpop.permute.xlu0 %2931 }
 0x261   : > { %4707 = vmatprep.subr.msk.mxu0 %vm996_vm0, %v6476_v52 }
 0x264   : > { %4708 = vmatpush3.xpose.msk.msra.mxu0 %vm996_vm0, %v6476_v52  ;;  %v2930_v52 = vpop.permute.xlu1 %2929 }
 0x265   : > { %4789 = vmatprep.subr.mxu0 %v2938_v46 }
 0x267   : > { %4710 = vmatmul.mubr.msk.f32.vlgmr.msra.gmra.mxu0 %vm996_vm0, %v6491_v9  ;;  %v2928_v9 = vpop.permute.xlu0 %2927 }
 0x268   : > { %4712 = vmatprep.mubr.msk.f32.mxu0 %vm996_vm0, %v6518_v35  ;;  %4790 = vmatpush3.msra.mxu0 %v2938_v46  ;;  %v6840_v35 = vpop.f32.mrf.mxu1  ;;  %v6938_v55 = vpop.permute.xlu1 %2374 }
 0x269   : > { %4791 = vmatprep.subr.mxu0 %v2936_v7  ;;  %8198 = vst [vmem:[#allocation66_spill] sm:$0xff] %v6938_v55 }
 0x26a   : > { %4792 = vmatpush3.msra.mxu0 %v2936_v7 }
 0x26b   : > { %4713 = vmatmul.mubr.msk.f32.gmra.mxu0 %vm996_vm0, %v6581_v22  ;;  %4793 = vmatprep.subr.mxu0 %v6727_v41 }
 0x26c   : > { %4715 = vmatprep.mubr.msk.f32.mxu0 %vm996_vm0, %v6623_v14  ;;  %4794 = vmatpush3.msra.mxu0 %v6727_v41  ;;  %v6940_v21 = vpop.permute.xlu1 %2344 }
 0x26d   : > { %4795 = vmatprep.subr.mxu0 %v2932_v58  ;;  %8199 = vst [vmem:[#allocation67_spill] sm:$0xff] %v6940_v21 }
 0x26e   : > { %4796 = vmatpush3.msra.mxu0 %v2932_v58 }
 0x26f   : > { %4716 = vmatmul.mubr.msk.f32.gmra.mxu0 %vm996_vm0, %v6603_v23  ;;  %4797 = vmatprep.subr.mxu0 %v2930_v52 }
 0x270   : > { %4718 = vmatprep.mubr.msk.f32.mxu0 %vm996_vm0, %v6674_v34  ;;  %4798 = vmatpush3.msra.mxu0 %v2930_v52  ;;  %v6942_v54 = vpop.permute.xlu1 %2376 }
 0x271   : > { %4799 = vmatprep.subr.mxu0 %v2928_v9  ;;  %8200 = vst [vmem:[#allocation68_spill] sm:$0xff] %v6942_v54 }
 0x272   : > { %4800 = vmatpush3.msra.mxu0 %v2928_v9 }
 0x273   : > { %4719 = vmatmul.mubr.msk.f32.gmra.mxu0 %vm996_vm0, %v6710_v56 }
 0x274   : > { %4721 = vmatprep.mubr.msk.f32.mxu0 %vm996_vm0, %v6730_v50 }
 0x277   : > { %4722 = vmatmul.mubr.msk.f32.gmra.mxu0 %vm996_vm0, %v6696_v62 }
 0x278   : > { %4724 = vmatprep.mubr.msk.f32.mxu0 %vm996_vm0, %v6704_v5 }
 0x27b   : > { %4725 = vmatmul.mubr.msk.f32.gmra.mxu0 %vm996_vm0, %v6734_v19 }
 0x27c   : > { %4727 = vmatprep.mubr.msk.f32.mxu0 %vm996_vm0, %v6736_v44 }
 0x27f   : > { %4728 = vmatmul.mubr.msk.f32.gmra.mxu0 %vm996_vm0, %v6712_v24 }
 0x280   : > { %4730 = vmatprep.mubr.msk.f32.mxu0 %vm996_vm0, %v6718_v4 }
 0x283   : > { %4731 = vmatmul.mubr.msk.f32.gmra.mxu0 %vm996_vm0, %v6743_v43 }
 0x28a   : > { %v6842_v7 = vpop.f32.mrf.mxu1  ;;  %v6844_v22 = vpop.f32.mrf.mxu0 }
 0x28b   : > { %1481 = vmax.xlane.f32.xlu0 %v6842_v7  ;;  %1513 = vmax.xlane.f32.xlu1 %v6844_v22 }
 0x28c   : > { %v6848_v23 = vpop.f32.mrf.mxu1  ;;  %v6850_v14 = vpop.f32.mrf.mxu0 }
 0x28e   : > { %v6856_v46 = vpop.f32.mrf.mxu0 }
 0x28f   : > { %v6852_v44 = vpop.f32.mrf.mxu1  ;;  %1479 = vmax.xlane.f32.xlu0 %v6848_v23 }
 0x290   : > { %1485 = vmax.xlane.f32.xlu1 %v6852_v44  ;;  %v6862_v34 = vpop.f32.mrf.mxu0 }
 0x291   : > { %v6858_v50 = vpop.f32.mrf.mxu1 }
 0x292   : > { %v6868_v62 = vpop.f32.mrf.mxu0 }
 0x293   : > { %1511 = vmax.xlane.f32.xlu0 %v6850_v14 }
 0x294   : > { %1517 = vmax.xlane.f32.xlu1 %v6856_v46  ;;  %v6864_v19 = vpop.f32.mrf.mxu1  ;;  %v6874_v56 = vpop.f32.mrf.mxu0 }
 0x296   : > { %v6870_v5 = vpop.f32.mrf.mxu1 }
 0x297   : > { %1515 = vmax.xlane.f32.xlu0 %v6862_v34  ;;  %v6880_v4 = vpop.f32.mrf.mxu0 }
 0x298   : > { %1483 = vmax.xlane.f32.xlu1 %v6858_v50  ;;  %v6876_v24 = vpop.f32.mrf.mxu1 }
 0x299   : > { %v6886_v43 = vpop.f32.mrf.mxu0 }
 0x29a   : > { %v6882_v41 = vpop.f32.mrf.mxu1 }
 0x29b   : > { %1487 = vmax.xlane.f32.xlu0 %v6870_v5  ;;  %v6892_v52 = vpop.f32.mrf.mxu0 }
 0x29c   : > { %1489 = vmax.xlane.f32.xlu1 %v6864_v19 }
 0x29d   : > { %v6888_v58 = vpop.f32.mrf.mxu1  ;;  %v6898_v40 = vpop.f32.mrf.mxu0 }
 0x29f   : > { %1519 = vmax.xlane.f32.xlu0 %v6874_v56  ;;  %v6894_v9 = vpop.f32.mrf.mxu1 }
 0x2a0   : > { %1521 = vmax.xlane.f32.xlu1 %v6868_v62  ;;  %v6904_v17 = vpop.f32.mrf.mxu0 }
 0x2a1   : > { %v6900_v2 = vpop.f32.mrf.mxu1 }
 0x2a2   : > { %v6910_v59 = vpop.f32.mrf.mxu0 }
 0x2a3   : > { %1491 = vmax.xlane.f32.xlu0 %v6882_v41  ;;  %v6906_v32 = vpop.f32.mrf.mxu1 }
 0x2a4   : > { %1493 = vmax.xlane.f32.xlu1 %v6876_v24  ;;  %v6916_v60 = vpop.f32.mrf.mxu0 }
 0x2a6   : > { %v6912_v20 = vpop.f32.mrf.mxu1  ;;  %v6922_v11 = vpop.f32.mrf.mxu0 }
 0x2a7   : > { %1523 = vmax.xlane.f32.xlu0 %v6886_v43 }
 0x2a8   : > { %1525 = vmax.xlane.f32.xlu1 %v6880_v4  ;;  %v6918_v48 = vpop.f32.mrf.mxu1 }
 0x2a9   : > { %v6928_v45 = vpop.f32.mrf.mxu0 }
 0x2aa   : > { %v6924_v51 = vpop.f32.mrf.mxu1 }
 0x2ab   : > { %1495 = vmax.xlane.f32.xlu0 %v6894_v9  ;;  %v6934_v28 = vpop.f32.mrf.mxu0 }
 0x2ac   : > { %1497 = vmax.xlane.f32.xlu1 %v6888_v58  ;;  %v6930_v39 = vpop.f32.mrf.mxu1 }
 0x2af   : > { %1527 = vmax.xlane.f32.xlu0 %v6898_v40 }
 0x2b0   : > { %1529 = vmax.xlane.f32.xlu1 %v6892_v52 }
 0x2b3   : > { %1499 = vmax.xlane.f32.xlu0 %v6906_v32 }
 0x2b4   : > { %1501 = vmax.xlane.f32.xlu1 %v6900_v2 }
 0x2b7   : > { %1531 = vmax.xlane.f32.xlu0 %v6910_v59 }
 0x2b8   : > { %1533 = vmax.xlane.f32.xlu1 %v6904_v17 }
 0x2bb   : > { %1503 = vmax.xlane.f32.xlu0 %v6918_v48 }
 0x2bc   : > { %1505 = vmax.xlane.f32.xlu1 %v6912_v20 }
 0x2bf   : > { %1535 = vmax.xlane.f32.xlu0 %v6922_v11 }
 0x2c0   : > { %1537 = vmax.xlane.f32.xlu1 %v6916_v60 }
 0x2c3   : > { %1507 = vmax.xlane.f32.xlu0 %v6930_v39 }
 0x2c4   : > { %1509 = vmax.xlane.f32.xlu1 %v6924_v51 }
 0x2c7   : > { %1539 = vmax.xlane.f32.xlu0 %v6934_v28 }
 0x2c8   : > { %1541 = vmax.xlane.f32.xlu1 %v6928_v45 }
 0x314   : > { %v1514_v12 = vpop.xlane.xlu1 %1513  ;;  %v1482_v30 = vpop.xlane.xlu0 %1481 }
 0x315   : > { %v1544_v27 = vsub.f32 %v6842_v7, %v1482_v30  ;;  %v1560_v0 = vsub.f32 %v6844_v22, %v1514_v12 }
 0x317   : > { %v1577_v47 = vmul.f32 1.442695, %v1544_v27  ;;  %v1609_v30 = vmul.f32 1.442695, %v1560_v0 }
 0x318   : > { %v1480_v8 = vpop.xlane.xlu0 %1479 }
 0x319   : > { %v1486_v26 = vpop.xlane.xlu1 %1485  ;;  %v1543_v13 = vsub.f32 %v6848_v23, %v1480_v8  ;;  %5178 = vpow2.f32 %v1577_v47 }
 0x31a   : > { %v1546_v7 = vsub.f32 %v6852_v44, %v1486_v26  ;;  %5180 = vpow2.f32 %v1609_v30 }
 0x31b   : > { %v1575_v12 = vmul.f32 1.442695, %v1543_v13 }
 0x31c   : > { %v1512_v15 = vpop.xlane.xlu0 %1511  ;;  %v1581_v23 = vmul.f32 1.442695, %v1546_v7 }
 0x31d   : > { %v1518_v10 = vpop.xlane.xlu1 %1517  ;;  %v1559_v27 = vsub.f32 %v6850_v14, %v1512_v15  ;;  %5182 = vpow2.f32 %v1575_v12 }
 0x31e   : > { %5184 = vpow2.f32 %v1581_v23 }
 0x31f   : > { %v1607_v47 = vmul.f32 1.442695, %v1559_v27 }
 0x320   : > { %v1516_v55 = vpop.xlane.xlu0 %1515 }
 0x321   : > { %v1484_v57 = vpop.xlane.xlu1 %1483  ;;  %v1561_v44 = vsub.f32 %v6862_v34, %v1516_v55  ;;  %5186 = vpow2.f32 %v1607_v47 }
 0x322   : > { %v1545_v13 = vsub.f32 %v6858_v50, %v1484_v57 }
 0x324   : > { %v1488_v61 = vpop.xlane.xlu0 %1487 }
 0x325   : > { %v6944_v1 = vpop.xlane.xlu1 %1489  ;;  %v1547_v55 = vsub.f32 %v6870_v5, %v1488_v61 }
 0x326   : > { %v7016_v27 = vpop.eup %5178 }
 0x327   : > { %v6946_v37 = vpop.f32.mrf.mxu0 }
 0x328   : > { %2605 = vmax.xlane.f32.xlu1 %v6946_v37  ;;  %v1520_v36 = vpop.xlane.xlu0 %1519 }
 0x329   : > { %v6949_v18 = vpop.f32.mrf.mxu0  ;;  %v6954_v54 = vpop.xlane.xlu1 %1521  ;;  %v1563_v23 = vsub.f32 %v6874_v56, %v1520_v36 }
 0x32a   : > { %2603 = vmax.xlane.f32.xlu0 %v6949_v18  ;;  %v1564_v34 = vsub.f32 %v6868_v62, %v6954_v54 }
 0x32b   : > { %v6952_v21 = vpop.f32.mrf.mxu0  ;;  %v1615_v62 = vmul.f32 1.442695, %v1563_v23 }
 0x32c   : > { %v1492_v8 = vpop.xlane.xlu0 %1491  ;;  %v1617_v61 = vmul.f32 1.442695, %v1564_v34 }
 0x32d   : > { %v6956_v29 = vpop.f32.mrf.mxu0  ;;  %v6965_v3 = vpop.xlane.xlu1 %1493 }
 0x32e   : > { %2609 = vmax.xlane.f32.xlu0 %v6952_v21  ;;  %v1550_v5 = vsub.f32 %v6876_v24, %v6965_v3 }
 0x32f   : > { %v6959_v63 = vpop.f32.mrf.mxu0 }
 0x330   : > { %v1524_v7 = vpop.xlane.xlu0 %1523  ;;  %v1589_v36 = vmul.f32 1.442695, %v1550_v5 }
 0x331   : > { %v6961_v25 = vpop.f32.mrf.mxu0  ;;  %v6978_v31 = vpop.xlane.xlu1 %1525 }
 0x332   : > { %2607 = vmax.xlane.f32.xlu0 %v6956_v29  ;;  %2611 = vmax.xlane.f32.xlu1 %v6961_v25  ;;  %v1566_v56 = vsub.f32 %v6880_v4, %v6978_v31 }
 0x333   : > { %v6967_v38 = vpop.f32.mrf.mxu0 }
 0x335   : > { %v6970_v53 = vpop.f32.mrf.mxu0  ;;  %v6993_v0 = vpop.xlane.xlu1 %1497 }
 0x336   : > { %8201 = vst [vmem:[#allocation69_spill] sm:$0xff] %v6970_v53  ;;  %2613 = vmax.xlane.f32.xlu0 %v6959_v63  ;;  %2615 = vmax.xlane.f32.xlu1 %v6970_v53 }
 0x337   : > { %v6975_v49 = vpop.f32.mrf.mxu0 }
 0x339   : > { %v6980_v16 = vpop.f32.mrf.mxu0  ;;  %v7007_v12 = vpop.xlane.xlu1 %1529 }
 0x33a   : > { %8202 = vst [vmem:[#allocation70_spill] sm:$0xff] %v6980_v16  ;;  %2617 = vmax.xlane.f32.xlu0 %v6967_v38  ;;  %2619 = vmax.xlane.f32.xlu1 %v6980_v16  ;;  %v1562_v16 = vsub.f32 %v6856_v46, %v1518_v10  ;;  %v1579_v10 = vmul.f32 1.442695, %v1545_v13  ;;  %v1548_v46 = vsub.f32 %v6864_v19, %v6944_v1  ;;  %v1496_v1 = vpop.xlane.xlu0 %1495  ;;  %v1583_v19 = vmul.f32 1.442695, %v1547_v55  ;;  %v7021_v13 = vpop.eup %5180 }
 0x33b   : > { %v6985_v53 = vpop.f32.mrf.mxu0  ;;  %v7025_v54 = vpop.eup %5182  ;;  %v1552_v55 = vsub.f32 %v6888_v58, %v6993_v0  ;;  %v1551_v34 = vsub.f32 %v6894_v9, %v1496_v1  ;;  %v1568_v23 = vsub.f32 %v6892_v52, %v7007_v12 }
 0x33c   : > { %v1613_v14 = vmul.f32 1.442695, %v1562_v16  ;;  %v1611_v16 = vmul.f32 1.442695, %v1561_v44  ;;  %v1585_v50 = vmul.f32 1.442695, %v1548_v46  ;;  %v7030_v44 = vpop.eup %5184 }
 0x33d   : > { %v6988_v22 = vpop.f32.mrf.mxu0  ;;  %v1502_v47 = vpop.xlane.xlu1 %1501  ;;  %v1591_v0 = vmul.f32 1.442695, %v1551_v34  ;;  %v1625_v9 = vmul.f32 1.442695, %v1568_v23 }
 0x33e   : > { %2621 = vmax.xlane.f32.xlu0 %v6975_v49  ;;  %2623 = vmax.xlane.f32.xlu1 %v6988_v22  ;;  %5188 = vpow2.f32 %v1613_v14  ;;  %v1549_v14 = vsub.f32 %v6882_v41, %v1492_v8  ;;  %v7034_v46 = vpop.eup %5186  ;;  %v1621_v8 = vmul.f32 1.442695, %v1566_v56  ;;  %v1554_v1 = vsub.f32 %v6900_v2, %v1502_v47 }
 0x33f   : > { %v6995_v26 = vpop.f32.mrf.mxu0  ;;  %5190 = vpow2.f32 %v1579_v10  ;;  %v1528_v10 = vpop.xlane.xlu0 %1527 }
 0x340   : > { %5192 = vpow2.f32 %v1611_v16  ;;  %v1587_v24 = vmul.f32 1.442695, %v1549_v14  ;;  %v1565_v16 = vsub.f32 %v6886_v43, %v1524_v7  ;;  %v1593_v7 = vmul.f32 1.442695, %v1552_v55 }
 0x341   : > { %v6998_v15 = vpop.f32.mrf.mxu0  ;;  %5194 = vpow2.f32 %v1585_v50  ;;  %v1534_v3 = vpop.xlane.xlu1 %1533 }
 0x342   : > { %8203 = vst [vmem:[#allocation71_spill] sm:$0xff] %v6998_v15  ;;  %2625 = vmax.xlane.f32.xlu0 %v6985_v53  ;;  %2627 = vmax.xlane.f32.xlu1 %v6998_v15  ;;  %5196 = vpow2.f32 %v1583_v19  ;;  %v1619_v50 = vmul.f32 1.442695, %v1565_v16 }
 0x343   : > { %v7003_v30 = vpop.f32.mrf.mxu0  ;;  %5198 = vpow2.f32 %v1617_v61  ;;  %v1500_v4 = vpop.xlane.xlu0 %1499  ;;  %v1567_v61 = vsub.f32 %v6898_v40, %v1528_v10  ;;  %v1597_v40 = vmul.f32 1.442695, %v1554_v1  ;;  %v1570_v10 = vsub.f32 %v6904_v17, %v1534_v3 }
 0x344   : > { %8204 = vst [vmem:[#allocation72_spill] sm:$0xff] %v7003_v30  ;;  %5200 = vpow2.f32 %v1615_v62 }
 0x345   : > { %v7009_v57 = vpop.f32.mrf.mxu0  ;;  %5202 = vpow2.f32 %v1589_v36  ;;  %v1506_v19 = vpop.xlane.xlu1 %1505  ;;  %v1623_v12 = vmul.f32 1.442695, %v1567_v61  ;;  %v1553_v36 = vsub.f32 %v6906_v32, %v1500_v4  ;;  %v1629_v32 = vmul.f32 1.442695, %v1570_v10 }
 0x346   : > { %8205 = vst [vmem:[#allocation73_spill] sm:$0xff] %v7009_v57  ;;  %2629 = vmax.xlane.f32.xlu0 %v6995_v26  ;;  %2631 = vmax.xlane.f32.xlu1 %v7009_v57  ;;  %5204 = vpow2.f32 %v1587_v24  ;;  %v1556_v4 = vsub.f32 %v6912_v20, %v1506_v19 }
 0x347   : > { %5206 = vpow2.f32 %v1621_v8  ;;  %v1532_v62 = vpop.xlane.xlu0 %1531  ;;  %v1595_v47 = vmul.f32 1.442695, %v1553_v36 }
 0x348   : > { %5208 = vpow2.f32 %v1619_v50  ;;  %v1569_v16 = vsub.f32 %v6910_v59, %v1532_v62  ;;  %v1601_v59 = vmul.f32 1.442695, %v1556_v4 }
 0x349   : > { %5210 = vpow2.f32 %v1593_v7  ;;  %v1538_v52 = vpop.xlane.xlu1 %1537 }
 0x34a   : > { %2633 = vmax.xlane.f32.xlu0 %v7003_v30  ;;  %1641 = vadd.xlane.f32.xlu1 %v7016_v27  ;;  %5212 = vpow2.f32 %v1591_v0  ;;  %v1627_v17 = vmul.f32 1.442695, %v1569_v16  ;;  %v1572_v7 = vsub.f32 %v6916_v60, %v1538_v52 }
 0x34b   : > { %v7039_v41 = vpop.eup %5188  ;;  %5214 = vpow2.f32 %v1625_v9  ;;  %v1504_v2 = vpop.xlane.xlu0 %1503 }
 0x34c   : > { %v7043_v31 = vpop.eup %5190  ;;  %5216 = vpow2.f32 %v1623_v12  ;;  %v1555_v3 = vsub.f32 %v6918_v48, %v1504_v2  ;;  %v1633_v48 = vmul.f32 1.442695, %v1572_v7 }
 0x34d   : > { %v7048_v43 = vpop.eup %5192  ;;  %v1510_v8 = vpop.xlane.xlu1 %1509  ;;  %5218 = vpow2.f32 %v1597_v40 }
 0x34e   : > { %1639 = vadd.xlane.f32.xlu0 %v7025_v54  ;;  %1673 = vadd.xlane.f32.xlu1 %v7021_v13  ;;  %v7052_v58 = vpop.eup %5194  ;;  %5220 = vpow2.f32 %v1595_v47  ;;  %v1599_v19 = vmul.f32 1.442695, %v1555_v3 }
 0x34f   : > { %v7057_v5 = vpop.eup %5196  ;;  %5222 = vpow2.f32 %v1629_v32  ;;  %v1536_v23 = vpop.xlane.xlu0 %1535 }
 0x350   : > { %v7060_v14 = vpop.eup %5198  ;;  %5224 = vpow2.f32 %v1627_v17  ;;  %v1571_v61 = vsub.f32 %v6922_v11, %v1536_v23  ;;  %v1558_v11 = vsub.f32 %v6924_v51, %v1510_v8 }
 0x351   : > { %v7065_v56 = vpop.eup %5200  ;;  %v1542_v20 = vpop.xlane.xlu1 %1541  ;;  %5226 = vpow2.f32 %v1601_v59 }
 0x352   : > { %1671 = vadd.xlane.f32.xlu0 %v7034_v46  ;;  %1645 = vadd.xlane.f32.xlu1 %v7030_v44  ;;  %v7068_v24 = vpop.eup %5202  ;;  %v1574_v1 = vsub.f32 %v6928_v45, %v1542_v20  ;;  %5228 = vpow2.f32 %v1599_v19  ;;  %v1631_v60 = vmul.f32 1.442695, %v1571_v61  ;;  %v1605_v10 = vmul.f32 1.442695, %v1558_v11 }
 0x353   : > { %v7073_v55 = vpop.eup %5204  ;;  %v1508_v52 = vpop.xlane.xlu0 %1507  ;;  %5230 = vpow2.f32 %v1633_v48 }
 0x354   : > { %v7076_v50 = vpop.eup %5206  ;;  %v1637_v36 = vmul.f32 1.442695, %v1574_v1  ;;  %5232 = vpow2.f32 %v1631_v60  ;;  %v1557_v2 = vsub.f32 %v6930_v39, %v1508_v52 }
 0x355   : > { %v7081_v34 = vpop.eup %5208 }
 0x356   : > { %1643 = vadd.xlane.f32.xlu0 %v7043_v31  ;;  %1677 = vadd.xlane.f32.xlu1 %v7039_v41  ;;  %v7084_v0 = vpop.eup %5210  ;;  %5234 = vpow2.f32 %v1637_v36  ;;  %v1603_v8 = vmul.f32 1.442695, %v1557_v2 }
 0x357   : > { %v7089_v9 = vpop.eup %5212  ;;  %v1540_v16 = vpop.xlane.xlu0 %1539  ;;  %5236 = vpow2.f32 %v1605_v10 }
 0x358   : > { %v7092_v62 = vpop.eup %5214  ;;  %v1573_v32 = vsub.f32 %v6934_v28, %v1540_v16  ;;  %5238 = vpow2.f32 %v1603_v8 }
 0x359   : > { %v7096_v12 = vpop.eup %5216 }
 0x35a   : > { %1675 = vadd.xlane.f32.xlu0 %v7048_v43  ;;  %1649 = vadd.xlane.f32.xlu1 %v7052_v58  ;;  %v7099_v40 = vpop.eup %5218  ;;  %v1635_v17 = vmul.f32 1.442695, %v1573_v32 }
 0x35b   : > { %v7103_v45 = vpop.eup %5220 }
 0x35c   : > { %v7106_v47 = vpop.eup %5222  ;;  %5240 = vpow2.f32 %v1635_v17 }
 0x35d   : > { %v7110_v51 = vpop.eup %5224 }
 0x35e   : > { %1647 = vadd.xlane.f32.xlu0 %v7057_v5  ;;  %1681 = vadd.xlane.f32.xlu1 %v7060_v14  ;;  %v7113_v4 = vpop.eup %5226 }
 0x35f   : > { %v7117_v39 = vpop.eup %5228 }
 0x360   : > { %v7119_v3 = vpop.eup %5230 }
 0x361   : > { %v7123_v59 = vpop.eup %5232 }
 0x362   : > { %1679 = vadd.xlane.f32.xlu0 %v7065_v56  ;;  %1653 = vadd.xlane.f32.xlu1 %v7068_v24 }
 0x363   : > { %v7125_v28 = vpop.eup %5234 }
 0x364   : > { %v7129_v7 = vpop.eup %5236 }
 0x365   : > { %v7132_v23 = vpop.eup %5238 }
 0x366   : > { %1651 = vadd.xlane.f32.xlu0 %v7073_v55  ;;  %1685 = vadd.xlane.f32.xlu1 %v7076_v50 }
 0x369   : > { %v7135_v20 = vpop.eup %5240 }
 0x36a   : > { %1683 = vadd.xlane.f32.xlu0 %v7081_v34  ;;  %1657 = vadd.xlane.f32.xlu1 %v7084_v0 }
 0x36e   : > { %1655 = vadd.xlane.f32.xlu0 %v7089_v9  ;;  %1689 = vadd.xlane.f32.xlu1 %v7092_v62 }
 0x372   : > { %1687 = vadd.xlane.f32.xlu0 %v7096_v12  ;;  %1661 = vadd.xlane.f32.xlu1 %v7099_v40 }
 0x376   : > { %1659 = vadd.xlane.f32.xlu0 %v7103_v45  ;;  %1693 = vadd.xlane.f32.xlu1 %v7106_v47 }
 0x37a   : > { %1691 = vadd.xlane.f32.xlu0 %v7110_v51  ;;  %1665 = vadd.xlane.f32.xlu1 %v7113_v4 }
 0x37e   : > { %1663 = vadd.xlane.f32.xlu0 %v7117_v39  ;;  %1697 = vadd.xlane.f32.xlu1 %v7119_v3 }
 0x382   : > { %1695 = vadd.xlane.f32.xlu0 %v7123_v59  ;;  %1701 = vadd.xlane.f32.xlu1 %v7125_v28 }
 0x386   : > { %1669 = vadd.xlane.f32.xlu0 %v7129_v7 }
 0x38a   : > { %1667 = vadd.xlane.f32.xlu0 %v7132_v23 }
 0x38e   : > { %1699 = vadd.xlane.f32.xlu0 %v7135_v20 }
 0x3b1   : > { %v2606_v19 = vpop.xlane.xlu1 %2605 }
 0x3b2   : > { %v2668_v61 = vsub.f32 %v6946_v37, %v2606_v19 }
 0x3b3   : > { %v2604_v48 = vpop.xlane.xlu0 %2603 }
 0x3b4   : > { %v2701_v1 = vmul.f32 1.442695, %v2668_v61  ;;  %v2667_v60 = vsub.f32 %v6949_v18, %v2604_v48 }
 0x3b6   : > { %5242 = vpow2.f32 %v2701_v1  ;;  %v2699_v52 = vmul.f32 1.442695, %v2667_v60 }
 0x3b7   : > { %v2610_v11 = vpop.xlane.xlu0 %2609 }
 0x3b8   : > { %5244 = vpow2.f32 %v2699_v52  ;;  %v2670_v36 = vsub.f32 %v6952_v21, %v2610_v11 }
 0x3ba   : > { %v2705_v10 = vmul.f32 1.442695, %v2670_v36 }
 0x3bb   : > { %v2608_v2 = vpop.xlane.xlu0 %2607  ;;  %v2612_v16 = vpop.xlane.xlu1 %2611 }
 0x3bc   : > { %5246 = vpow2.f32 %v2705_v10  ;;  %v2669_v8 = vsub.f32 %v6956_v29, %v2608_v2  ;;  %v2671_v32 = vsub.f32 %v6961_v25, %v2612_v16 }
 0x3be   : > { %v2703_v17 = vmul.f32 1.442695, %v2669_v8  ;;  %v2707_v37 = vmul.f32 1.442695, %v2671_v32 }
 0x3bf   : > { %v2614_v19 = vpop.xlane.xlu0 %2613  ;;  %v7143_v61 = vpop.xlane.xlu1 %2615 }
 0x3c0   : > { %5248 = vpow2.f32 %v2703_v17  ;;  %v2672_v18 = vsub.f32 %v6959_v63, %v2614_v19 }
 0x3c1   : > { %5250 = vpow2.f32 %v2707_v37 }
 0x3c2   : > { %v2709_v48 = vmul.f32 1.442695, %v2672_v18 }
 0x3c3   : > { %v7146_v1 = vpop.eup %5242  ;;  %v7148_v21 = vpop.xlane.xlu0 %2617 }
 0x3c4   : > { %8206 = vst [vmem:[#allocation74_spill] sm:$0xff] %v7146_v1  ;;  %v7150_v60 = vpop.xlane.xlu1 %2619  ;;  %5252 = vpow2.f32 %v2709_v48  ;;  %2765 = vadd.xlane.f32.xlu0 %v7146_v1 }
 0x3c5   : > { %v7153_v25 = vpop.eup %5244 }
 0x3c6   : > { %2763 = vadd.xlane.f32.xlu1 %v7153_v25 }
 0x3c7   : > { %v7156_v29 = vpop.xlane.xlu0 %2621 }
 0x3c8   : > { %v7158_v52 = vpop.xlane.xlu1 %2623 }
 0x3c9   : > { %v7160_v63 = vpop.eup %5246 }
 0x3ca   : > { %8207 = vst [vmem:[#allocation75_spill] sm:$0xff] %v7160_v63  ;;  %2769 = vadd.xlane.f32.xlu0 %v7160_v63 }
 0x3cb   : > { %v7163_v11 = vpop.xlane.xlu0 %2625 }
 0x3cc   : > { %v7165_v36 = vpop.xlane.xlu1 %2627 }
 0x3cd   : > { %8208 = vst [vmem:[#allocation76_spill] sm:$0xff] %v7165_v36  ;;  %v7167_v10 = vpop.eup %5248  ;;  %v5435_v36 = vld [vmem:[#allocation7 + $0x148] sm:$0xff] }
 0x3ce   : > { %8209 = vst [vmem:[#allocation77_spill] sm:$0xff] %v7167_v10  ;;  %2767 = vadd.xlane.f32.xlu1 %v7167_v10  ;;  %v7174_v8 = vpop.eup %5250 }
 0x3cf   : > { %v7170_v2 = vpop.xlane.xlu0 %2629  ;;  %8211 = vst [vmem:[#allocation79_spill] sm:$0xff] %v7174_v8 }
 0x3d0   : > { %v7172_v16 = vpop.xlane.xlu1 %2631 }
 0x3d1   : > { %8210 = vst [vmem:[#allocation78_spill] sm:$0xff] %v7172_v16  ;;  %v7176_v32 = vpop.eup %5252 }
 0x3d2   : > { %8212 = vst [vmem:[#allocation80_spill] sm:$0xff] %v7176_v32  ;;  %2773 = vadd.xlane.f32.xlu0 %v7176_v32  ;;  %2771 = vadd.xlane.f32.xlu1 %v7174_v8 }
 0x3d3   : > { %v7180_v17 = vpop.xlane.xlu0 %2633 }
 0x3d4   : > { %8213 = vst [vmem:[#allocation81_spill] sm:$0xff] %v7180_v17  ;;  %v1642_v37 = vpop.xlane.xlu1 %1641 }
 0x3d5   : > { %5254 = vrcp.f32 %v1642_v37 }
 0x3d7   : > { %v1640_v19 = vpop.xlane.xlu0 %1639 }
 0x3d8   : > { %v7182_v18 = vpop.xlane.xlu1 %1673  ;;  %5256 = vrcp.f32 %v1640_v19 }
 0x3db   : > { %v7184_v48 = vpop.xlane.xlu0 %1671 }
 0x3dc   : > { %v1646_v63 = vpop.xlane.xlu1 %1645 }
 0x3dd   : > { %5258 = vrcp.f32 %v1646_v63 }
 0x3df   : > { %v1644_v10 = vpop.xlane.xlu0 %1643 }
 0x3e0   : > { %v7186_v1 = vpop.xlane.xlu1 %1677  ;;  %5260 = vrcp.f32 %v1644_v10  ;;  %v5434_v10 = vld [vmem:[#allocation7 + $0x160] sm:$0xff] }
 0x3e1   : > { %v7199_v17 = vadd.f32 %v5434_v10, %v6840_v35  ;;  %v8219_v10 = vld [vmem:[#allocation49_spill] sm:$0xff] }
 0x3e2   : > { %v5255_v8 = vpop.eup %5254 }
 0x3e3   : > { %v7188_v57 = vpop.xlane.xlu0 %1675  ;;  %2925 = vrot.lane.b32.xlu1 %v6555_v33, %s5638_s24  ;;  %v1736_v63 = vmul.f32 %v5255_v8, %v7016_v27  ;;  %8214 = vst [vmem:[#allocation82_spill] sm:$0xff] %v7199_v17  ;;  %v5436_v27 = vld [vmem:[#allocation7 + $0x130] sm:$0xff] }
 0x3e4   : > { %v1650_v32 = vpop.xlane.xlu1 %1649 }
 0x3e5   : > { %v5257_v16 = vpop.eup %5256  ;;  %5262 = vrcp.f32 %v1650_v32 }
 0x3e6   : > { %v1735_v19 = vmul.f32 %v5257_v16, %v7025_v54  ;;  %v8215_v54 = vld [vmem:[#allocation51_spill] sm:$0xff]  ;;  %v8217_v16 = vld [vmem:[#allocation52_spill] sm:$0xff] }
 0x3e7   : > { %v1648_v30 = vpop.xlane.xlu0 %1647  ;;  %v7210_v35 = vadd.f32 %v5436_v27, %v8217_v16  ;;  %v2674_v16 = vsub.f32 %v6967_v38, %v7148_v21  ;;  %v8223_v38 = vld [vmem:[#allocation26_spill] sm:$0xff] }
 0x3e8   : > { %v7192_v37 = vpop.xlane.xlu1 %1681  ;;  %5264 = vrcp.f32 %v1648_v30  ;;  %2923 = vrot.lane.b32.xlu0 %v6570_v6, %s5638_s24  ;;  %4597 = vmatprep.mubr.f32.mxu1 %v1735_v19  ;;  %v7205_v30 = vadd.f32 %v5435_v36, %v8215_v54  ;;  %v5437_v36 = vld [vmem:[#allocation7 + $0x118] sm:$0xff] }
 0x3e9   : > { %4598 = vmatmul.mubr.f32.vlgmr.msra.gmra.mxu1 %v1736_v63  ;;  %8218 = vst [vmem:[#allocation52_spill] sm:$0xff] %v7210_v35  ;;  %v7218_v54 = vadd.f32 %v5437_v36, %v8219_v10  ;;  %v2713_v10 = vmul.f32 1.442695, %v2674_v16 }
 0x3ea   : > { %4622 = vmatpush3.msra.mxu1 %v6725_v42  ;;  %v5259_v15 = vpop.eup %5258  ;;  %8216 = vst [vmem:[#allocation51_spill] sm:$0xff] %v7205_v30 }
 0x3eb   : > { %v7202_v33 = vpop.xlane.xlu0 %1679  ;;  %4623 = vmatprep.subr.mxu1 %v7199_v17  ;;  %8220 = vst [vmem:[#allocation49_spill] sm:$0xff] %v7218_v54  ;;  %v1738_v27 = vmul.f32 %v5259_v15, %v7030_v44 }
 0x3ec   : > { %v1654_v32 = vpop.xlane.xlu1 %1653  ;;  %4624 = vmatpush3.msra.mxu1 %v7199_v17  ;;  %v8222_v17 = vld [vmem:[#allocation69_spill] sm:$0xff] }
 0x3ed   : > { %v5261_v6 = vpop.eup %5260  ;;  %4625 = vmatprep.subr.mxu1 %v7205_v30  ;;  %5266 = vrcp.f32 %v1654_v32  ;;  %v8221_v32 = vld [vmem:[#allocation50_spill] sm:$0xff] }
 0x3ee   : > { %v1737_v8 = vmul.f32 %v5261_v6, %v7043_v31  ;;  %4626 = vmatpush3.msra.mxu1 %v7205_v30  ;;  %v5438_v31 = vld [vmem:[#allocation7 + $0x100] sm:$0xff]  ;;  %v2673_v30 = vsub.f32 %v8222_v17, %v7143_v61  ;;  %v5440_v61 = vld [vmem:[#allocation7 + $0xd0] sm:$0xff]  ;;  %v8224_v17 = vld [vmem:[#allocation48_spill] sm:$0xff] }
 0x3ef   : > { %v1652_v19 = vpop.xlane.xlu0 %1651  ;;  %4627 = vmatprep.subr.mxu1 %v7210_v35  ;;  %v7226_v6 = vadd.f32 %v5438_v31, %v8221_v32  ;;  %v7240_v31 = vadd.f32 %v5440_v61, %v8224_v17  ;;  %v5443_v17 = vld [vmem:[#allocation7 + $0x88] sm:$0xff] }
 0x3f0   : > { %v7215_v63 = vpop.xlane.xlu1 %1685  ;;  %5268 = vrcp.f32 %v1652_v19  ;;  %4600 = vmatprep.mubr.f32.mxu1 %v1737_v8  ;;  %4628 = vmatpush3.msra.mxu1 %v7210_v35  ;;  %v5439_v19 = vld [vmem:[#allocation7 + $0xe8] sm:$0xff]  ;;  %v5441_v35 = vld [vmem:[#allocation7 + $0xb8] sm:$0xff] }
 0x3f1   : > { %4629 = vmatprep.subr.mxu1 %v7218_v54  ;;  %4601 = vmatmul.mubr.f32.gmra.mxu1 %v1738_v27  ;;  %v7235_v21 = vadd.f32 %v5439_v19, %v8223_v38  ;;  %v2711_v27 = vmul.f32 1.442695, %v2673_v30 }
 0x3f2   : > { %4630 = vmatpush3.msra.mxu1 %v7218_v54  ;;  %v5263_v44 = vpop.eup %5262  ;;  %v8225_v54 = vld [vmem:[#allocation24_spill] sm:$0xff] }
 0x3f3   : > { %v7232_v8 = vpop.xlane.xlu0 %1683  ;;  %4631 = vmatprep.subr.mxu1 %v7226_v6  ;;  %v7248_v16 = vadd.f32 %v5441_v35, %v8225_v54  ;;  %v1740_v30 = vmul.f32 %v5263_v44, %v7052_v58 }
 0x3f4   : > { %v1658_v15 = vpop.xlane.xlu1 %1657  ;;  %4632 = vmatpush3.msra.mxu1 %v7226_v6 }
 0x3f5   : > { %v5265_v36 = vpop.eup %5264  ;;  %4633 = vmatprep.subr.mxu1 %v7235_v21  ;;  %5270 = vrcp.f32 %v1658_v15  ;;  %8226 = vst [vmem:[#allocation50_spill] sm:$0xff] %v7248_v16  ;;  %v8227_v15 = vld [vmem:[#allocation25_spill] sm:$0xff] }
 0x3f6   : > { %v1739_v32 = vmul.f32 %v5265_v36, %v7057_v5  ;;  %4634 = vmatpush3.msra.mxu1 %v7235_v21  ;;  %v5442_v5 = vld [vmem:[#allocation7 + $0xa0] sm:$0xff] }
 0x3f7   : > { %v1656_v19 = vpop.xlane.xlu0 %1655  ;;  %4635 = vmatprep.subr.mxu1 %v7240_v31  ;;  %v7254_v36 = vadd.f32 %v5442_v5, %v8227_v15 }
 0x3f8   : > { %v7245_v38 = vpop.xlane.xlu1 %1689  ;;  %5272 = vrcp.f32 %v1656_v19  ;;  %4603 = vmatprep.mubr.f32.mxu1 %v1739_v32  ;;  %4636 = vmatpush3.msra.mxu1 %v7240_v31  ;;  %v8228_v32 = vld [vmem:[#allocation29_spill] sm:$0xff] }
 0x3f9   : > { %5274 = vpow2.f32 %v2713_v10  ;;  %4637 = vmatprep.subr.mxu1 %v7248_v16  ;;  %4604 = vmatmul.mubr.f32.gmra.mxu1 %v1740_v30  ;;  %v7261_v58 = vadd.f32 %v5443_v17, %v8228_v32  ;;  %v5444_v10 = vld [vmem:[#allocation7 + $0x70] sm:$0xff]  ;;  %v5445_v17 = vld [vmem:[#allocation7 + $0x58] sm:$0xff]  ;;  %v8232_v32 = vld [vmem:[#allocation28_spill] sm:$0xff] }
 0x3fa   : > { %5276 = vpow2.f32 %v2711_v27  ;;  %4638 = vmatpush3.msra.mxu1 %v7248_v16  ;;  %v5267_v61 = vpop.eup %5266  ;;  %v8230_v27 = vld [vmem:[#allocation39_spill] sm:$0xff]  ;;  %v7274_v16 = vadd.f32 %v5445_v17, %v8232_v32  ;;  %v5447_v32 = vld [vmem:[#allocation7 + $0x28] sm:$0xff] }
 0x3fb   : > { %v7258_v35 = vpop.xlane.xlu0 %1687  ;;  %8229 = vst [vmem:[#allocation69_spill] sm:$0xff] %v7261_v58  ;;  %4639 = vmatprep.subr.mxu1 %v7254_v36  ;;  %v7266_v19 = vadd.f32 %v5444_v10, %v8230_v27  ;;  %v1742_v10 = vmul.f32 %v5267_v61, %v7068_v24  ;;  %v5446_v27 = vld [vmem:[#allocation7 + $0x40] sm:$0xff] }
 0x3fc   : > { %v1662_v54 = vpop.xlane.xlu1 %1661  ;;  %4640 = vmatpush3.msra.mxu1 %v7254_v36  ;;  %8233 = vst [vmem:[#allocation48_spill] sm:$0xff] %v7274_v16 }
 0x3fd   : > { %v5269_v44 = vpop.eup %5268  ;;  %8231 = vst [vmem:[#allocation26_spill] sm:$0xff] %v7266_v19  ;;  %4641 = vmatprep.subr.mxu1 %v7261_v58  ;;  %5278 = vrcp.f32 %v1662_v54 }
 0x3fe   : > { %v1741_v30 = vmul.f32 %v5269_v44, %v7073_v55  ;;  %4642 = vmatpush3.msra.mxu1 %v7261_v58  ;;  %v8234_v55 = vld [vmem:[#allocation27_spill] sm:$0xff]  ;;  %v8236_v58 = vld [vmem:[#allocation18_spill] sm:$0xff] }
 0x3ff   : > { %v1660_v5 = vpop.xlane.xlu0 %1659  ;;  %4643 = vmatprep.subr.mxu1 %v7266_v19  ;;  %v7280_v54 = vadd.f32 %v5446_v27, %v8234_v55  ;;  %v5448_v27 = vld [vmem:[#allocation7 + $0x10] sm:$0xff] }
 0x400   : > { %v7271_v15 = vpop.xlane.xlu1 %1693  ;;  %5280 = vrcp.f32 %v1660_v5  ;;  %4606 = vmatprep.mubr.f32.mxu1 %v1741_v30  ;;  %4644 = vmatpush3.msra.mxu1 %v7266_v19  ;;  %v7287_v5 = vadd.f32 %v5447_v32, %v8236_v58  ;;  %v8238_v55 = vld [vmem:[#allocation21_spill] sm:$0xff] }
 0x401   : > { %8235 = vst [vmem:[#allocation24_spill] sm:$0xff] %v7280_v54  ;;  %4645 = vmatprep.subr.mxu1 %v7274_v16  ;;  %4607 = vmatmul.mubr.f32.gmra.mxu1 %v1742_v10  ;;  %v7294_v10 = vadd.f32 %v5448_v27, %v8238_v55  ;;  %v8239_v27 = vld [vmem:[#allocation53_spill] sm:$0xff] }
 0x402   : > { %4646 = vmatpush3.msra.mxu1 %v7274_v16  ;;  %v5271_v17 = vpop.eup %5270  ;;  %8237 = vst [vmem:[#allocation25_spill] sm:$0xff] %v7287_v5 }
 0x403   : > { %v7284_v44 = vpop.xlane.xlu0 %1691  ;;  %4647 = vmatprep.subr.mxu1 %v7280_v54  ;;  %v1744_v32 = vmul.f32 %v5271_v17, %v7084_v0 }
 0x404   : > { %v1666_v24 = vpop.xlane.xlu1 %1665  ;;  %4648 = vmatpush3.msra.mxu1 %v7280_v54 }
 0x405   : > { %v5273_v61 = vpop.eup %5272  ;;  %4649 = vmatprep.subr.mxu1 %v7287_v5  ;;  %5282 = vrcp.f32 %v1666_v24 }
 0x406   : > { %v7291_v30 = vpop.eup %5274  ;;  %v1743_v16 = vmul.f32 %v5273_v61, %v7089_v9  ;;  %4650 = vmatpush3.msra.mxu1 %v7287_v5 }
 0x407   : > { %v7298_v19 = vpop.eup %5276  ;;  %2777 = vadd.xlane.f32.xlu0 %v7291_v30  ;;  %v1664_v58 = vpop.xlane.xlu0 %1663  ;;  %4651 = vmatprep.subr.mxu1 %v7294_v10 }
 0x408   : > { %5284 = vrcp.f32 %v1664_v58  ;;  %2775 = vadd.xlane.f32.xlu1 %v7298_v19  ;;  %4652 = vmatpush3.msra.mxu1 %v7294_v10 }
 0x409   : > { %4609 = vmatprep.mubr.f32.mxu1 %v1743_v16  ;;  %4733 = vmatprep.subr.msk.mxu1 %vm996_vm0, %v8239_v27  ;;  %5286 = vrcp.f32 %v7184_v48 }
 0x40a   : > { %4610 = vmatmul.mubr.f32.gmra.mxu1 %v1744_v32  ;;  %v5279_v24 = vpop.eup %5278 }
 0x40b   : > { %v1696_v9 = vpop.xlane.xlu0 %1695  ;;  %v1746_v54 = vmul.f32 %v5279_v24, %v7099_v40  ;;  %v8240_v40 = vld [vmem:[#allocation36_spill] sm:$0xff] }
 0x40d   : > { %v5281_v61 = vpop.eup %5280 }
 0x40e   : > { %v1745_v55 = vmul.f32 %v5281_v61, %v7103_v45  ;;  %v8241_v45 = vld [vmem:[#allocation38_spill] sm:$0xff]  ;;  %v1698_v61 = vpop.xlane.xlu1 %1697 }
 0x40f   : > { %v1670_v5 = vpop.xlane.xlu0 %1669 }
 0x410   : > { %4612 = vmatprep.mubr.f32.mxu1 %v1745_v55  ;;  %5288 = vrcp.f32 %v1670_v5  ;;  %v8242_v5 = vld [vmem:[#allocation70_spill] sm:$0xff]  ;;  %v8245_v55 = vld [vmem:[#allocation23_spill] sm:$0xff] }
 0x411   : > { %4613 = vmatmul.mubr.f32.gmra.mxu1 %v1746_v54 }
 0x412   : > { %v5283_v17 = vpop.eup %5282 }
 0x413   : > { %v1668_v0 = vpop.xlane.xlu0 %1667  ;;  %v1748_v32 = vmul.f32 %v5283_v17, %v7113_v4 }
 0x414   : > { %5290 = vrcp.f32 %v1668_v0 }
 0x415   : > { %v5285_v16 = vpop.eup %5284  ;;  %5292 = vrcp.f32 %v7182_v18 }
 0x416   : > { %v1747_v58 = vmul.f32 %v5285_v16, %v7117_v39  ;;  %5294 = vrcp.f32 %v7188_v57  ;;  %v5287_v48 = vpop.eup %5286 }
 0x417   : > { %5296 = vrcp.f32 %v7186_v1  ;;  %v1751_v1 = vmul.f32 %v5287_v48, %v7034_v46  ;;  %v8247_v48 = vld [vmem:[#allocation45_spill] sm:$0xff] }
 0x418   : > { %4615 = vmatprep.mubr.f32.mxu1 %v1747_v58  ;;  %5298 = vrcp.f32 %v7202_v33 }
 0x419   : > { %2921 = vrot.lane.b32.xlu1 %v8240_v40, %s5638_s24  ;;  %4616 = vmatmul.mubr.f32.gmra.mxu1 %v1748_v32  ;;  %5300 = vrcp.f32 %v7192_v37  ;;  %v2675_v37 = vsub.f32 %v8242_v5, %v7150_v60  ;;  %v8253_v5 = vld [vmem:[#allocation15_spill] sm:$0xff] }
 0x41a   : > { %5302 = vrcp.f32 %v7232_v8  ;;  %v2676_v8 = vsub.f32 %v6975_v49, %v7156_v29  ;;  %v8243_v49 = vld [vmem:[#allocation47_spill] sm:$0xff] }
 0x41b   : > { %5304 = vrcp.f32 %v7215_v63  ;;  %v2715_v46 = vmul.f32 1.442695, %v2675_v37 }
 0x41c   : > { %5306 = vrcp.f32 %v7258_v35  ;;  %v2717_v24 = vmul.f32 1.442695, %v2676_v8  ;;  %v8255_v8 = vld [vmem:[#allocation33_spill] sm:$0xff] }
 0x41d   : > { %2919 = vrot.lane.b32.xlu0 %v8241_v45, %s5638_s24  ;;  %v5289_v39 = vpop.eup %5288  ;;  %5308 = vrcp.f32 %v7245_v38  ;;  %v1700_v38 = vpop.xlane.xlu0 %1699 }
 0x41e   : > { %v1750_v18 = vmul.f32 %v5289_v39, %v7129_v7  ;;  %5310 = vrcp.f32 %v7284_v44 }
 0x41f   : > { %5312 = vrcp.f32 %v7271_v15  ;;  %v8244_v15 = vld [vmem:[#allocation34_spill] sm:$0xff] }
 0x420   : > { %5314 = vrcp.f32 %v1696_v9 }
 0x421   : > { %v5291_v4 = vpop.eup %5290  ;;  %5316 = vpow2.f32 %v2715_v46 }
 0x422   : > { %v1749_v57 = vmul.f32 %v5291_v4, %v7132_v23  ;;  %v5293_v54 = vpop.eup %5292  ;;  %5318 = vpow2.f32 %v2717_v24  ;;  %v2678_v24 = vsub.f32 %v6985_v53, %v7163_v11 }
 0x423   : > { %v5295_v33 = vpop.eup %5294  ;;  %v1752_v23 = vmul.f32 %v5293_v54, %v7021_v13  ;;  %5320 = vrcp.f32 %v1698_v61  ;;  %v8258_v61 = vld [vmem:[#allocation59_spill] sm:$0xff] }
 0x424   : > { %4618 = vmatprep.mubr.f32.mxu1 %v1749_v57  ;;  %v5297_v7 = vpop.eup %5296  ;;  %v1753_v63 = vmul.f32 %v5295_v33, %v7048_v43  ;;  %5322 = vrcp.f32 %v1700_v38  ;;  %v8248_v57 = vld [vmem:[#allocation44_spill] sm:$0xff]  ;;  %v2721_v38 = vmul.f32 1.442695, %v2678_v24 }
 0x425   : > { %4619 = vmatmul.mubr.f32.gmra.mxu1 %v1750_v18  ;;  %v5299_v35 = vpop.eup %5298  ;;  %v1754_v13 = vmul.f32 %v5297_v7, %v7039_v41  ;;  %v8250_v33 = vld [vmem:[#allocation40_spill] sm:$0xff]  ;;  %v8256_v7 = vld [vmem:[#allocation63_spill] sm:$0xff] }
 0x426   : > { %4653 = vmatprep.mubr.f32.mxu1 %v1751_v1  ;;  %v5301_v60 = vpop.eup %5300  ;;  %v1755_v43 = vmul.f32 %v5299_v35, %v7065_v56  ;;  %v8257_v35 = vld [vmem:[#allocation58_spill] sm:$0xff] }
 0x427   : > { %v5303_v29 = vpop.eup %5302  ;;  %v1756_v44 = vmul.f32 %v5301_v60, %v7060_v14  ;;  %v2677_v60 = vsub.f32 %v6988_v22, %v7158_v52  ;;  %v8260_v22 = vld [vmem:[#allocation55_spill] sm:$0xff]  ;;  %v8262_v52 = vld [vmem:[#allocation56_spill] sm:$0xff] }
 0x428   : > { %v5305_v41 = vpop.eup %5304  ;;  %v1757_v56 = vmul.f32 %v5303_v29, %v7081_v34  ;;  %v8246_v34 = vld [vmem:[#allocation19_spill] sm:$0xff] }
 0x429   : > { %4654 = vmatmul.mubr.f32.vlgmr.msra.gmra.mxu1 %v1752_v23  ;;  %v5307_v9 = vpop.eup %5306  ;;  %v1758_v0 = vmul.f32 %v5305_v41, %v7076_v50  ;;  %v2719_v11 = vmul.f32 1.442695, %v2677_v60  ;;  %v8263_v41 = vld [vmem:[#allocation61_spill] sm:$0xff]  ;;  %v8284_v60 = vld [vmem:[#allocation78_spill] sm:$0xff] }
 0x42a   : > { %4734 = vmatpush3.xpose.msk.msra.mxu1 %vm996_vm0, %v8239_v27  ;;  %4656 = vmatprep.mubr.f32.mxu1 %v1753_v63  ;;  %v1702_v27 = vpop.xlane.xlu1 %1701  ;;  %v5309_v17 = vpop.eup %5308  ;;  %v1759_v14 = vmul.f32 %v5307_v9, %v7096_v12 }
 0x42b   : > { %4735 = vmatprep.subr.msk.mxu1 %vm996_vm0, %v8243_v49  ;;  %5324 = vrcp.f32 %v1702_v27  ;;  %v5311_v16 = vpop.eup %5310  ;;  %v1760_v58 = vmul.f32 %v5309_v17, %v7092_v62  ;;  %v8264_v27 = vld [vmem:[#allocation60_spill] sm:$0xff]  ;;  %v8267_v17 = vld [vmem:[#allocation67_spill] sm:$0xff] }
 0x42c   : > { %v5313_v32 = vpop.eup %5312  ;;  %v1761_v40 = vmul.f32 %v5311_v16, %v7110_v51  ;;  %v8269_v16 = vld [vmem:[#allocation43_spill] sm:$0xff] }
 0x42d   : > { %4657 = vmatmul.mubr.f32.gmra.mxu1 %v1754_v13  ;;  %v5315_v45 = vpop.eup %5314  ;;  %v1762_v39 = vmul.f32 %v5313_v32, %v7106_v47  ;;  %v8272_v32 = vld [vmem:[#allocation31_spill] sm:$0xff] }
 0x42e   : > { %4736 = vmatpush3.xpose.msk.msra.mxu1 %vm996_vm0, %v8243_v49  ;;  %4659 = vmatprep.mubr.f32.mxu1 %v1755_v43  ;;  %v7361_v50 = vpop.eup %5316  ;;  %v1763_v62 = vmul.f32 %v5315_v45, %v7123_v59  ;;  %v8249_v59 = vld [vmem:[#allocation42_spill] sm:$0xff]  ;;  %v8274_v45 = vld [vmem:[#allocation37_spill] sm:$0xff] }
 0x42f   : > { %4737 = vmatprep.subr.msk.mxu1 %vm996_vm0, %v8244_v15  ;;  %v7365_v12 = vpop.eup %5318 }
 0x430   : > { %v5321_v4 = vpop.eup %5320 }
 0x431   : > { %4660 = vmatmul.mubr.f32.gmra.mxu1 %v1756_v44  ;;  %v5323_v51 = vpop.eup %5322  ;;  %v1764_v18 = vmul.f32 %v5321_v4, %v7119_v3  ;;  %v8251_v3 = vld [vmem:[#allocation68_spill] sm:$0xff]  ;;  %v8277_v4 = vld [vmem:[#allocation35_spill] sm:$0xff] }
 0x432   : > { %4738 = vmatpush3.xpose.msk.msra.mxu1 %vm996_vm0, %v8244_v15  ;;  %4662 = vmatprep.mubr.f32.mxu1 %v1757_v56  ;;  %v1765_v47 = vmul.f32 %v5323_v51, %v7135_v20  ;;  %v8252_v20 = vld [vmem:[#allocation66_spill] sm:$0xff]  ;;  %v8278_v51 = vld [vmem:[#allocation76_spill] sm:$0xff] }
 0x433   : > { %4739 = vmatprep.subr.msk.mxu1 %vm996_vm0, %v8245_v55  ;;  %v8259_v15 = vld [vmem:[#allocation54_spill] sm:$0xff] }
 0x435   : > { %4663 = vmatmul.mubr.f32.gmra.mxu1 %v1758_v0  ;;  %v8266_v0 = vld [vmem:[#allocation64_spill] sm:$0xff] }
 0x436   : > { %4740 = vmatpush3.xpose.msk.msra.mxu1 %vm996_vm0, %v8245_v55  ;;  %4665 = vmatprep.mubr.f32.mxu1 %v1759_v14  ;;  %v8265_v55 = vld [vmem:[#allocation65_spill] sm:$0xff] }
 0x437   : > { %4741 = vmatprep.subr.msk.mxu1 %vm996_vm0, %v8246_v34  ;;  %v8268_v14 = vld [vmem:[#allocation41_spill] sm:$0xff] }
 0x438   : > { %v5325_v54 = vpop.eup %5324 }
 0x439   : > { %4666 = vmatmul.mubr.f32.gmra.mxu1 %v1760_v58  ;;  %v1766_v1 = vmul.f32 %v5325_v54, %v7125_v28  ;;  %v8254_v28 = vld [vmem:[#allocation62_spill] sm:$0xff] }
 0x43a   : > { %4742 = vmatpush3.xpose.msk.msra.mxu1 %vm996_vm0, %v8246_v34  ;;  %4668 = vmatprep.mubr.f32.mxu1 %v1761_v40  ;;  %v8270_v34 = vld [vmem:[#allocation46_spill] sm:$0xff]  ;;  %v8273_v40 = vld [vmem:[#allocation16_spill] sm:$0xff] }
 0x43b   : > { %4743 = vmatprep.subr.msk.mxu1 %vm996_vm0, %v8247_v48  ;;  %v8271_v58 = vld [vmem:[#allocation22_spill] sm:$0xff] }
 0x43c   : > { %2781 = vadd.xlane.f32.xlu0 %v7365_v12 }
 0x43d   : > { %2779 = vadd.xlane.f32.xlu1 %v7361_v50  ;;  %4669 = vmatmul.mubr.f32.gmra.mxu1 %v1762_v39  ;;  %v8276_v39 = vld [vmem:[#allocation20_spill] sm:$0xff] }
 0x43e   : > { %4744 = vmatpush3.xpose.msk.msra.mxu1 %vm996_vm0, %v8247_v48  ;;  %4671 = vmatprep.mubr.f32.mxu1 %v1763_v62  ;;  %v8275_v48 = vld [vmem:[#allocation17_spill] sm:$0xff]  ;;  %v2680_v62 = vsub.f32 %v6995_v26, %v7170_v2  ;;  %v8280_v2 = vld [vmem:[#allocation30_spill] sm:$0xff] }
 0x43f   : > { %4745 = vmatprep.subr.msk.mxu1 %vm996_vm0, %v8248_v57 }
 0x441   : > { %4672 = vmatmul.mubr.f32.gmra.mxu1 %v1764_v18 }
 0x442   : > { %4746 = vmatpush3.xpose.msk.msra.mxu1 %vm996_vm0, %v8248_v57  ;;  %4674 = vmatprep.mubr.f32.mxu1 %v1765_v47  ;;  %v8279_v57 = vld [vmem:[#allocation71_spill] sm:$0xff] }
 0x443   : > { %4747 = vmatprep.subr.msk.mxu1 %vm996_vm0, %v8249_v59  ;;  %v2679_v18 = vsub.f32 %v8279_v57, %v8278_v51  ;;  %v8289_v57 = vld [vmem:[#allocation49_spill] sm:$0xff] }
 0x445   : > { %4675 = vmatmul.mubr.f32.gmra.mxu1 %v1766_v1  ;;  %v2723_v1 = vmul.f32 1.442695, %v2679_v18  ;;  %v8290_v18 = vld [vmem:[#allocation52_spill] sm:$0xff] }
 0x446   : > { %4748 = vmatpush3.xpose.msk.msra.mxu1 %vm996_vm0, %v8249_v59  ;;  %4765 = vmatprep.mubr.msk.f32.mxu1 %vm996_vm0, %v8250_v33  ;;  %v2725_v59 = vmul.f32 1.442695, %v2680_v62  ;;  %v8287_v62 = vld [vmem:[#allocation82_spill] sm:$0xff] }
 0x447   : > { %4749 = vmatprep.subr.msk.mxu1 %vm996_vm0, %v8251_v3 }
 0x44a   : > { %4750 = vmatpush3.xpose.msk.msra.mxu1 %vm996_vm0, %v8251_v3 }
 0x44b   : > { %4751 = vmatprep.subr.msk.mxu1 %vm996_vm0, %v8252_v20 }
 0x44d   : > { %v7404_v23 = vpop.xlane.xlu0 %2765 }
 0x44e   : > { %2917 = vrot.lane.b32.xlu1 %v8253_v5, %s5638_s24  ;;  %4752 = vmatpush3.xpose.msk.msra.mxu1 %vm996_vm0, %v8252_v20 }
 0x44f   : > { %4753 = vmatprep.subr.msk.mxu1 %vm996_vm0, %v8254_v28  ;;  %v2764_v37 = vpop.xlane.xlu1 %2763 }
 0x450   : > { %5326 = vrcp.f32 %v2764_v37 }
 0x451   : > { %5328 = vpow2.f32 %v2721_v38 }
 0x452   : > { %4754 = vmatpush3.xpose.msk.msra.mxu1 %vm996_vm0, %v8254_v28  ;;  %2915 = vrot.lane.b32.xlu0 %v8255_v8, %s5638_s24  ;;  %5330 = vpow2.f32 %v2719_v11  ;;  %v8281_v28 = vld [vmem:[#allocation32_spill] sm:$0xff] }
 0x453   : > { %4755 = vmatprep.subr.msk.mxu1 %vm996_vm0, %v8256_v7  ;;  %v7410_v63 = vpop.xlane.xlu0 %2769  ;;  %5332 = vpow2.f32 %v2725_v59 }
 0x454   : > { %5334 = vpow2.f32 %v2723_v1 }
 0x456   : > { %4756 = vmatpush3.xpose.msk.msra.mxu1 %vm996_vm0, %v8256_v7  ;;  %v8282_v7 = vld [vmem:[#allocation81_spill] sm:$0xff] }
 0x457   : > { %4757 = vmatprep.subr.msk.mxu1 %vm996_vm0, %v8257_v35  ;;  %v7414_v46 = vpop.xlane.xlu1 %2767 }
 0x45a   : > { %4758 = vmatpush3.xpose.msk.msra.mxu1 %vm996_vm0, %v8257_v35  ;;  %v8283_v35 = vld [vmem:[#allocation72_spill] sm:$0xff] }
 0x45b   : > { %4759 = vmatprep.subr.msk.mxu1 %vm996_vm0, %v8258_v61  ;;  %v7422_v49 = vpop.xlane.xlu0 %2773  ;;  %v7424_v13 = vpop.xlane.xlu1 %2771  ;;  %v2682_v24 = vsub.f32 %v8283_v35, %v8282_v7 }
 0x45d   : > { %v5327_v43 = vpop.eup %5326  ;;  %v2729_v11 = vmul.f32 1.442695, %v2682_v24 }
 0x45e   : > { %4760 = vmatpush3.xpose.msk.msra.mxu1 %vm996_vm0, %v8258_v61  ;;  %v2859_v29 = vmul.f32 %v5327_v43, %v7153_v25  ;;  %v8261_v25 = vld [vmem:[#allocation57_spill] sm:$0xff]  ;;  %v7447_v56 = vpop.eup %5328 }
 0x45f   : > { %4761 = vmatprep.subr.msk.mxu1 %vm996_vm0, %v8259_v15  ;;  %v2926_v53 = vpop.permute.xlu1 %2925  ;;  %v2924_v44 = vpop.permute.xlu0 %2923  ;;  %v8285_v43 = vld [vmem:[#allocation73_spill] sm:$0xff]  ;;  %5336 = vpow2.f32 %v2729_v11 }
 0x460   : > { %4801 = vmatprep.subr.mxu0 %v2926_v53  ;;  %4821 = vmatprep.mubr.f32.mxu0 %v2859_v29  ;;  %v7449_v9 = vpop.eup %5330  ;;  %v2681_v29 = vsub.f32 %v8285_v43, %v8284_v60 }
 0x461   : > { %4802 = vmatpush3.msra.mxu0 %v2926_v53  ;;  %v7487_v20 = vpop.eup %5332 }
 0x462   : > { %4762 = vmatpush3.xpose.msk.msra.mxu1 %vm996_vm0, %v8259_v15  ;;  %4803 = vmatprep.subr.mxu0 %v2924_v44  ;;  %v7489_v26 = vpop.eup %5334 }
 0x463   : > { %4763 = vmatprep.subr.msk.mxu1 %vm996_vm0, %v8260_v22  ;;  %4804 = vmatpush3.msra.mxu0 %v2924_v44  ;;  %v2727_v44 = vmul.f32 1.442695, %v2681_v29 }
 0x465   : > { %5338 = vpow2.f32 %v2727_v44 }
 0x466   : > { %4764 = vmatpush3.xpose.msk.msra.mxu1 %vm996_vm0, %v8260_v22  ;;  %5340 = vrcp.f32 %v7404_v23 }
 0x467   : > { %5342 = vrcp.f32 %v7414_v46 }
 0x468   : > { %5344 = vrcp.f32 %v7410_v63 }
 0x469   : > { %4766 = vmatmul.mubr.msk.f32.vlgmr.msra.gmra.mxu1 %vm996_vm0, %v8261_v25  ;;  %5346 = vrcp.f32 %v7424_v13 }
 0x46a   : > { %4768 = vmatprep.mubr.msk.f32.mxu1 %vm996_vm0, %v8262_v52  ;;  %5348 = vrcp.f32 %v7422_v49 }
 0x46d   : > { %4769 = vmatmul.mubr.msk.f32.gmra.mxu1 %vm996_vm0, %v8263_v41 }
 0x46e   : > { %4771 = vmatprep.mubr.msk.f32.mxu1 %vm996_vm0, %v8264_v27 }
 0x471   : > { %4772 = vmatmul.mubr.msk.f32.gmra.mxu1 %vm996_vm0, %v8265_v55  ;;  %2785 = vadd.xlane.f32.xlu0 %v7447_v56 }
 0x472   : > { %2783 = vadd.xlane.f32.xlu1 %v7449_v9  ;;  %4774 = vmatprep.mubr.msk.f32.mxu1 %vm996_vm0, %v8266_v0 }
 0x475   : > { %4775 = vmatmul.mubr.msk.f32.gmra.mxu1 %vm996_vm0, %v8267_v17 }
 0x476   : > { %4777 = vmatprep.mubr.msk.f32.mxu1 %vm996_vm0, %v8268_v14  ;;  %v7527_v14 = vpop.eup %5336 }
 0x479   : > { %4778 = vmatmul.mubr.msk.f32.gmra.mxu1 %vm996_vm0, %v8269_v16  ;;  %v7529_v16 = vpop.eup %5338 }
 0x47a   : > { %4780 = vmatprep.mubr.msk.f32.mxu1 %vm996_vm0, %v8270_v34 }
 0x47d   : > { %4781 = vmatmul.mubr.msk.f32.gmra.mxu1 %vm996_vm0, %v8271_v58 }
 0x47e   : > { %4783 = vmatprep.mubr.msk.f32.mxu1 %vm996_vm0, %v8272_v32 }
 0x481   : > { %4784 = vmatmul.mubr.msk.f32.gmra.mxu1 %vm996_vm0, %v8273_v40 }
 0x482   : > { %4786 = vmatprep.mubr.msk.f32.mxu1 %vm996_vm0, %v8274_v45 }
 0x483   : > { %2913 = vrot.lane.b32.xlu1 %v8275_v48, %s5638_s24 }
 0x485   : > { %4787 = vmatmul.mubr.msk.f32.gmra.mxu1 %vm996_vm0, %v8276_v39 }
 0x487   : > { %2911 = vrot.lane.b32.xlu0 %v8277_v4, %s5638_s24  ;;  %v8286_v4 = vld [vmem:[#allocation51_spill] sm:$0xff] }
 0x490   : > { %v7483_v54 = vpop.xlane.xlu0 %2777 }
 0x491   : > { %v7485_v47 = vpop.xlane.xlu1 %2775 }
 0x492   : > { %5350 = vrcp.f32 %v7485_v47 }
 0x493   : > { %5352 = vrcp.f32 %v7483_v54  ;;  %v8303_v54 = vld [vmem:[#allocation74_spill] sm:$0xff] }
 0x494   : > { %v2920_v3 = vpop.permute.xlu0 %2919 }
 0x495   : > { %v2922_v33 = vpop.permute.xlu1 %2921 }
 0x496   : > { %4805 = vmatprep.subr.mxu0 %v2922_v33 }
 0x497   : > { %4806 = vmatpush3.msra.mxu0 %v2922_v33 }
 0x498   : > { %4807 = vmatprep.subr.mxu0 %v2920_v3 }
 0x499   : > { %4808 = vmatpush3.msra.mxu0 %v2920_v3 }
 0x4a6   : > { %2789 = vadd.xlane.f32.xlu0 %v7487_v20 }
 0x4a7   : > { %2787 = vadd.xlane.f32.xlu1 %v7489_v26 }
 0x4a9   : > { %v7495_v5 = vpop.f32.mrf.mxu1 }
 0x4ab   : > { %v7499_v37 = vpop.f32.mrf.mxu1 }
 0x4b1   : > { %v7501_v8 = vpop.f32.mrf.mxu1 }
 0x4b3   : > { %v7505_v61 = vpop.f32.mrf.mxu1 }
 0x4b8   : > { %2909 = vrot.lane.b32.xlu1 %v8280_v2, %s5638_s24 }
 0x4b9   : > { %v7513_v53 = vpop.f32.mrf.mxu1 }
 0x4bb   : > { %v7515_v25 = vpop.f32.mrf.mxu1 }
 0x4bc   : > { %2907 = vrot.lane.b32.xlu0 %v8281_v28, %s5638_s24 }
 0x4c1   : > { %v7517_v41 = vpop.f32.mrf.mxu1 }
 0x4c3   : > { %v7519_v27 = vpop.f32.mrf.mxu1 }
 0x4c5   : > { %v7509_v38 = vpop.xlane.xlu0 %2781 }
 0x4c6   : > { %v7511_v15 = vpop.xlane.xlu1 %2779 }
 0x4c7   : > { %5354 = vrcp.f32 %v7511_v15  ;;  %v8304_v15 = vld [vmem:[#allocation77_spill] sm:$0xff] }
 0x4c8   : > { %5356 = vrcp.f32 %v7509_v38 }
 0x4c9   : > { %v2916_v52 = vpop.permute.xlu0 %2915 }
 0x4ca   : > { %v2918_v22 = vpop.permute.xlu1 %2917  ;;  %v7521_v55 = vpop.f32.mrf.mxu1 }
 0x4cb   : > { %4809 = vmatprep.subr.mxu0 %v2918_v22 }
 0x4cc   : > { %4810 = vmatpush3.msra.mxu0 %v2918_v22  ;;  %v7523_v0 = vpop.f32.mrf.mxu1 }
 0x4cd   : > { %4811 = vmatprep.subr.mxu0 %v2916_v52 }
 0x4ce   : > { %4812 = vmatpush3.msra.mxu0 %v2916_v52 }
 0x4d1   : > { %v7525_v17 = vpop.f32.mrf.mxu1 }
 0x4d3   : > { %v7533_v34 = vpop.f32.mrf.mxu1 }
 0x4d9   : > { %v7535_v58 = vpop.f32.mrf.mxu1 }
 0x4db   : > { %2793 = vadd.xlane.f32.xlu0 %v7527_v14  ;;  %v7537_v32 = vpop.f32.mrf.mxu1 }
 0x4dc   : > { %2791 = vadd.xlane.f32.xlu1 %v7529_v16 }
 0x4e5   : > { %v7539_v40 = vpop.f32.mrf.mxu1 }
 0x4e7   : > { %v7541_v45 = vpop.f32.mrf.mxu1 }
 0x4e9   : > { %v7543_v48 = vpop.f32.mrf.mxu1 }
 0x4eb   : > { %v7547_v39 = vpop.f32.mrf.mxu1 }
 0x4ed   : > { %3146 = vrot.lane.b32.xlu1 %v6725_v42, %s5638_s24  ;;  %v7553_v51 = vpop.f32.mrf.mxu1 }
 0x4ee   : > { %8288 = vst [vmem:[#allocation29_spill] sm:$0xff] %v7553_v51 }
 0x4ef   : > { %v7559_v59 = vpop.f32.mrf.mxu1 }
 0x4f1   : > { %3142 = vrot.lane.b32.xlu1 %v8286_v4, %s5638_s24  ;;  %3144 = vrot.lane.b32.xlu0 %v8287_v62, %s5638_s24  ;;  %v7561_v1 = vpop.f32.mrf.mxu1 }
 0x4f2   : > { %8291 = vst [vmem:[#allocation39_spill] sm:$0xff] %v7561_v1 }
 0x4f3   : > { %v7563_v3 = vpop.f32.mrf.mxu1 }
 0x4f4   : > { %8292 = vst [vmem:[#allocation28_spill] sm:$0xff] %v7563_v3 }
 0x4f5   : > { %3138 = vrot.lane.b32.xlu1 %v8289_v57, %s5638_s24  ;;  %3140 = vrot.lane.b32.xlu0 %v8290_v18, %s5638_s24  ;;  %v7565_v7 = vpop.f32.mrf.mxu1 }
 0x4f6   : > { %8293 = vst [vmem:[#allocation27_spill] sm:$0xff] %v7565_v7 }
 0x4f7   : > { %v7567_v35 = vpop.f32.mrf.mxu1 }
 0x4f8   : > { %8294 = vst [vmem:[#allocation18_spill] sm:$0xff] %v7567_v35  ;;  %v3472_v35 = vld [vmem:[#allocation8 + $0x18] sm:$0xff] }
 0x4f9   : > { %v7569_v24 = vpop.f32.mrf.mxu1 }
 0x4fa   : > { %v2786_v42 = vpop.xlane.xlu0 %2785  ;;  %8295 = vst [vmem:[#allocation21_spill] sm:$0xff] %v7569_v24 }
 0x4fb   : > { %v2784_v33 = vpop.xlane.xlu1 %2783  ;;  %v7571_v60 = vpop.f32.mrf.mxu1 }
 0x4fc   : > { %8296 = vst [vmem:[#allocation53_spill] sm:$0xff] %v7571_v60  ;;  %5358 = vrcp.f32 %v2784_v33  ;;  %v8306_v33 = vld [vmem:[#allocation79_spill] sm:$0xff] }
 0x4fd   : > { %v7573_v43 = vpop.f32.mrf.mxu1  ;;  %5360 = vrcp.f32 %v2786_v42  ;;  %v8307_v42 = vld [vmem:[#allocation80_spill] sm:$0xff] }
 0x4fe   : > { %v2912_v28 = vpop.permute.xlu0 %2911  ;;  %8297 = vst [vmem:[#allocation36_spill] sm:$0xff] %v7573_v43 }
 0x4ff   : > { %v2914_v2 = vpop.permute.xlu1 %2913  ;;  %v7575_v29 = vpop.f32.mrf.mxu1 }
 0x500   : > { %4813 = vmatprep.subr.mxu0 %v2914_v2  ;;  %8298 = vst [vmem:[#allocation38_spill] sm:$0xff] %v7575_v29 }
 0x501   : > { %4814 = vmatpush3.msra.mxu0 %v2914_v2  ;;  %v7577_v11 = vpop.f32.mrf.mxu1  ;;  %v5341_v2 = vpop.eup %5340 }
 0x502   : > { %4815 = vmatprep.subr.mxu0 %v2912_v28  ;;  %8299 = vst [vmem:[#allocation70_spill] sm:$0xff] %v7577_v11  ;;  %v2860_v11 = vmul.f32 %v5341_v2, %v8303_v54 }
 0x503   : > { %4816 = vmatpush3.msra.mxu0 %v2912_v28  ;;  %v7579_v44 = vpop.f32.mrf.mxu1  ;;  %v5343_v28 = vpop.eup %5342 }
 0x504   : > { %8300 = vst [vmem:[#allocation47_spill] sm:$0xff] %v7579_v44  ;;  %v5345_v44 = vpop.eup %5344  ;;  %v2861_v43 = vmul.f32 %v5343_v28, %v8304_v15 }
 0x505   : > { %v7581_v22 = vpop.f32.mrf.mxu1  ;;  %v5347_v29 = vpop.eup %5346 }
 0x506   : > { %8301 = vst [vmem:[#allocation34_spill] sm:$0xff] %v7581_v22  ;;  %v5349_v2 = vpop.eup %5348 }
 0x507   : > { %v7584_v52 = vpop.f32.mrf.mxu1  ;;  %v5351_v54 = vpop.eup %5350 }
 0x508   : > { %8302 = vst [vmem:[#allocation23_spill] sm:$0xff] %v7584_v52  ;;  %v5353_v15 = vpop.eup %5352 }
 0x529   : > { %v7587_v4 = vpop.f32.mrf.mxu1 }
 0x52a   : > { %2637 = vmax.xlane.f32.xlu0 %v7587_v4 }
 0x52b   : > { %v7591_v62 = vpop.f32.mrf.mxu1 }
 0x52c   : > { %2635 = vmax.xlane.f32.xlu1 %v7591_v62 }
 0x52d   : > { %v7595_v57 = vpop.f32.mrf.mxu1 }
 0x52e   : > { %2641 = vmax.xlane.f32.xlu0 %v7595_v57 }
 0x52f   : > { %v7599_v23 = vpop.f32.mrf.mxu1  ;;  %v2790_v46 = vpop.xlane.xlu0 %2789 }
 0x530   : > { %2639 = vmax.xlane.f32.xlu1 %v7599_v23  ;;  %v2788_v63 = vpop.xlane.xlu1 %2787 }
 0x531   : > { %v7603_v18 = vpop.f32.mrf.mxu1  ;;  %5362 = vrcp.f32 %v2788_v63  ;;  %v5355_v63 = vpop.eup %5354 }
 0x532   : > { %2645 = vmax.xlane.f32.xlu0 %v7603_v18  ;;  %5364 = vrcp.f32 %v2790_v46  ;;  %v5357_v46 = vpop.eup %5356 }
 0x533   : > { %v7607_v13 = vpop.f32.mrf.mxu1  ;;  %v2908_v22 = vpop.permute.xlu0 %2907 }
 0x534   : > { %2643 = vmax.xlane.f32.xlu1 %v7607_v13  ;;  %v2910_v49 = vpop.permute.xlu1 %2909 }
 0x535   : > { %v7611_v47 = vpop.f32.mrf.mxu1  ;;  %4817 = vmatprep.subr.mxu0 %v2910_v49 }
 0x536   : > { %2649 = vmax.xlane.f32.xlu0 %v7611_v47  ;;  %4818 = vmatpush3.msra.mxu0 %v2910_v49  ;;  %v8305_v49 = vld [vmem:[#allocation75_spill] sm:$0xff] }
 0x537   : > { %v7615_v52 = vpop.f32.mrf.mxu1  ;;  %4819 = vmatprep.subr.mxu0 %v2908_v22  ;;  %v2862_v60 = vmul.f32 %v5345_v44, %v8305_v49  ;;  %v2865_v44 = vmul.f32 %v5351_v54, %v7298_v19  ;;  %v2868_v54 = vmul.f32 %v5357_v46, %v7365_v12 }
 0x538   : > { %2647 = vmax.xlane.f32.xlu1 %v7615_v52  ;;  %4820 = vmatpush3.msra.mxu0 %v2908_v22  ;;  %v2863_v22 = vmul.f32 %v5347_v29, %v8306_v33  ;;  %v2866_v29 = vmul.f32 %v5353_v15, %v7291_v30  ;;  %v5359_v33 = vpop.eup %5358 }
 0x539   : > { %v7620_v24 = vpop.f32.mrf.mxu1  ;;  %4822 = vmatmul.mubr.f32.vlgmr.msra.gmra.mxu0 %v2860_v11  ;;  %v2864_v11 = vmul.f32 %v5349_v2, %v8307_v42  ;;  %v2867_v2 = vmul.f32 %v5355_v63, %v7361_v50  ;;  %v5361_v42 = vpop.eup %5360  ;;  %v2869_v30 = vmul.f32 %v5359_v33, %v7449_v9 }
 0x53a   : > { %2653 = vmax.xlane.f32.xlu0 %v7620_v24  ;;  %4824 = vmatprep.mubr.f32.mxu0 %v2861_v43  ;;  %v2870_v50 = vmul.f32 %v5361_v42, %v7447_v56 }
 0x53b   : > { %v7623_v38 = vpop.f32.mrf.mxu1 }
 0x53c   : > { %2651 = vmax.xlane.f32.xlu1 %v7623_v38 }
 0x53d   : > { %v7628_v28 = vpop.f32.mrf.mxu1  ;;  %4825 = vmatmul.mubr.f32.gmra.mxu0 %v2862_v60 }
 0x53e   : > { %2657 = vmax.xlane.f32.xlu0 %v7628_v28  ;;  %4827 = vmatprep.mubr.f32.mxu0 %v2863_v22 }
 0x53f   : > { %v7631_v43 = vpop.f32.mrf.mxu1 }
 0x540   : > { %2655 = vmax.xlane.f32.xlu1 %v7631_v43 }
 0x541   : > { %v7636_v49 = vpop.f32.mrf.mxu1  ;;  %4828 = vmatmul.mubr.f32.gmra.mxu0 %v2864_v11  ;;  %v5363_v11 = vpop.eup %5362 }
 0x542   : > { %2661 = vmax.xlane.f32.xlu0 %v7636_v49  ;;  %4830 = vmatprep.mubr.f32.mxu0 %v2865_v44  ;;  %v5365_v15 = vpop.eup %5364  ;;  %v2871_v44 = vmul.f32 %v5363_v11, %v7489_v26 }
 0x543   : > { %v7639_v60 = vpop.f32.mrf.mxu1  ;;  %v2872_v63 = vmul.f32 %v5365_v15, %v7487_v20 }
 0x544   : > { %2659 = vmax.xlane.f32.xlu1 %v7639_v60 }
 0x545   : > { %v7644_v22 = vpop.f32.mrf.mxu1  ;;  %4831 = vmatmul.mubr.f32.gmra.mxu0 %v2866_v29 }
 0x546   : > { %2665 = vmax.xlane.f32.xlu0 %v7644_v22  ;;  %4833 = vmatprep.mubr.f32.mxu0 %v2867_v2 }
 0x547   : > { %v7647_v19 = vpop.f32.mrf.mxu1 }
 0x548   : > { %2663 = vmax.xlane.f32.xlu1 %v7647_v19 }
 0x549   : > { %4834 = vmatmul.mubr.f32.gmra.mxu0 %v2868_v54 }
 0x54a   : > { %4836 = vmatprep.mubr.f32.mxu0 %v2869_v30 }
 0x54d   : > { %4837 = vmatmul.mubr.f32.gmra.mxu0 %v2870_v50 }
 0x54e   : > { %4839 = vmatprep.mubr.f32.mxu0 %v2871_v44 }
 0x551   : > { %4840 = vmatmul.mubr.f32.gmra.mxu0 %v2872_v63 }
 0x559   : > { %3134 = vrot.lane.b32.xlu1 %v7235_v21, %s5638_s24 }
 0x55c   : > { %3136 = vrot.lane.b32.xlu0 %v7226_v6, %s5638_s24 }
 0x560   : > { %3132 = vrot.lane.b32.xlu0 %v7240_v31, %s5638_s24 }
 0x564   : > { %v2794_v12 = vpop.xlane.xlu0 %2793 }
 0x565   : > { %5366 = vrcp.f32 %v2794_v12  ;;  %v2792_v56 = vpop.xlane.xlu1 %2791 }
 0x566   : > { %5368 = vrcp.f32 %v2792_v56 }
 0x568   : > { %v3145_v9 = vpop.permute.xlu0 %3144 }
 0x569   : > { %v3147_v26 = vpop.permute.xlu1 %3146 }
 0x56a   : > { %4845 = vmatprep.subr.mxu1 %v3147_v26 }
 0x56b   : > { %4846 = vmatpush3.msra.mxu1 %v3147_v26 }
 0x56c   : > { %4847 = vmatprep.subr.mxu1 %v3145_v9  ;;  %v3141_v29 = vpop.permute.xlu0 %3140 }
 0x56d   : > { %4848 = vmatpush3.msra.mxu1 %v3145_v9  ;;  %v3143_v20 = vpop.permute.xlu1 %3142 }
 0x56e   : > { %4849 = vmatprep.subr.mxu1 %v3143_v20 }
 0x56f   : > { %4850 = vmatpush3.msra.mxu1 %v3143_v20 }
 0x570   : > { %4851 = vmatprep.subr.mxu1 %v3141_v29 }
 0x571   : > { %4852 = vmatpush3.msra.mxu1 %v3141_v29  ;;  %v3139_v6 = vpop.permute.xlu1 %3138 }
 0x572   : > { %v5367_v21 = vpop.eup %5366  ;;  %4853 = vmatprep.subr.mxu1 %v3139_v6 }
 0x573   : > { %v5369_v31 = vpop.eup %5368  ;;  %4854 = vmatpush3.msra.mxu1 %v3139_v6  ;;  %v2874_v46 = vmul.f32 %v5367_v21, %v7527_v14 }
 0x574   : > { %v2873_v2 = vmul.f32 %v5369_v31, %v7529_v16 }
 0x576   : > { %4842 = vmatprep.mubr.f32.mxu0 %v2873_v2 }
 0x577   : > { %4843 = vmatmul.mubr.f32.gmra.mxu0 %v2874_v46 }
 0x5b3   : > { %v2638_v33 = vpop.xlane.xlu0 %2637 }
 0x5b4   : > { %v2684_v54 = vsub.f32 %v7587_v4, %v2638_v33 }
 0x5b5   : > { %v2636_v42 = vpop.xlane.xlu1 %2635 }
 0x5b6   : > { %v2733_v30 = vmul.f32 1.442695, %v2684_v54  ;;  %v2683_v11 = vsub.f32 %v7591_v62, %v2636_v42 }
 0x5b7   : > { %v2642_v50 = vpop.xlane.xlu0 %2641 }
 0x5b8   : > { %5370 = vpow2.f32 %v2733_v30  ;;  %v2731_v15 = vmul.f32 1.442695, %v2683_v11  ;;  %v2686_v44 = vsub.f32 %v7595_v57, %v2642_v50 }
 0x5b9   : > { %v2640_v63 = vpop.xlane.xlu1 %2639 }
 0x5ba   : > { %5372 = vpow2.f32 %v2731_v15  ;;  %v2737_v12 = vmul.f32 1.442695, %v2686_v44  ;;  %v2685_v14 = vsub.f32 %v7599_v23, %v2640_v63 }
 0x5bb   : > { %v2646_v16 = vpop.xlane.xlu0 %2645 }
 0x5bc   : > { %5374 = vpow2.f32 %v2737_v12  ;;  %v2735_v56 = vmul.f32 1.442695, %v2685_v14  ;;  %v2688_v9 = vsub.f32 %v7603_v18, %v2646_v16 }
 0x5bd   : > { %v2644_v4 = vpop.xlane.xlu1 %2643 }
 0x5be   : > { %5376 = vpow2.f32 %v2735_v56  ;;  %v2741_v26 = vmul.f32 1.442695, %v2688_v9  ;;  %v2687_v62 = vsub.f32 %v7607_v13, %v2644_v4  ;;  %v8308_v9 = vld [vmem:[#allocation50_spill] sm:$0xff] }
 0x5bf   : > { %v2650_v20 = vpop.xlane.xlu0 %2649 }
 0x5c0   : > { %5378 = vpow2.f32 %v2741_v26  ;;  %v2739_v29 = vmul.f32 1.442695, %v2687_v62  ;;  %v2690_v57 = vsub.f32 %v7611_v47, %v2650_v20 }
 0x5c1   : > { %v2648_v6 = vpop.xlane.xlu1 %2647 }
 0x5c2   : > { %5380 = vpow2.f32 %v2739_v29  ;;  %v2745_v21 = vmul.f32 1.442695, %v2690_v57  ;;  %v2689_v23 = vsub.f32 %v7615_v52, %v2648_v6  ;;  %v8309_v6 = vld [vmem:[#allocation69_spill] sm:$0xff] }
 0x5c3   : > { %v2654_v31 = vpop.xlane.xlu0 %2653 }
 0x5c4   : > { %5382 = vpow2.f32 %v2745_v21  ;;  %v2743_v46 = vmul.f32 1.442695, %v2689_v23  ;;  %v2692_v4 = vsub.f32 %v7620_v24, %v2654_v31 }
 0x5c5   : > { %v7671_v2 = vpop.eup %5370  ;;  %v2652_v18 = vpop.xlane.xlu1 %2651 }
 0x5c6   : > { %5384 = vpow2.f32 %v2743_v46  ;;  %2797 = vadd.xlane.f32.xlu0 %v7671_v2  ;;  %v2691_v26 = vsub.f32 %v7623_v38, %v2652_v18  ;;  %v2749_v62 = vmul.f32 1.442695, %v2692_v4 }
 0x5c7   : > { %v7674_v13 = vpop.eup %5372  ;;  %v2658_v33 = vpop.xlane.xlu0 %2657 }
 0x5c8   : > { %2795 = vadd.xlane.f32.xlu1 %v7674_v13  ;;  %v2747_v20 = vmul.f32 1.442695, %v2691_v26  ;;  %5386 = vpow2.f32 %v2749_v62  ;;  %v2694_v24 = vsub.f32 %v7628_v28, %v2658_v33 }
 0x5c9   : > { %v7677_v47 = vpop.eup %5374  ;;  %v2656_v54 = vpop.xlane.xlu1 %2655 }
 0x5ca   : > { %2801 = vadd.xlane.f32.xlu0 %v7677_v47  ;;  %5388 = vpow2.f32 %v2747_v20  ;;  %v2693_v38 = vsub.f32 %v7631_v43, %v2656_v54  ;;  %v2753_v21 = vmul.f32 1.442695, %v2694_v24  ;;  %v8312_v43 = vld [vmem:[#allocation24_spill] sm:$0xff] }
 0x5cb   : > { %v7680_v52 = vpop.eup %5376  ;;  %v2662_v42 = vpop.xlane.xlu0 %2661 }
 0x5cc   : > { %2799 = vadd.xlane.f32.xlu1 %v7680_v52  ;;  %v2751_v23 = vmul.f32 1.442695, %v2693_v38  ;;  %5390 = vpow2.f32 %v2753_v21 }
 0x5cd   : > { %v7683_v30 = vpop.eup %5378  ;;  %v2660_v11 = vpop.xlane.xlu1 %2659 }
 0x5ce   : > { %2805 = vadd.xlane.f32.xlu0 %v7683_v30  ;;  %5392 = vpow2.f32 %v2751_v23  ;;  %v2695_v4 = vsub.f32 %v7639_v60, %v2660_v11 }
 0x5cf   : > { %v7686_v50 = vpop.eup %5380  ;;  %v7688_v15 = vpop.xlane.xlu0 %2665 }
 0x5d0   : > { %2803 = vadd.xlane.f32.xlu1 %v7686_v50  ;;  %v2755_v24 = vmul.f32 1.442695, %v2695_v4  ;;  %v2698_v23 = vsub.f32 %v7644_v22, %v7688_v15  ;;  %v3484_v15 = vld [vmem:[#allocation8 + $0x78] sm:$0xff] }
 0x5d1   : > { %v7691_v44 = vpop.eup %5382  ;;  %v7693_v63 = vpop.xlane.xlu1 %2663  ;;  %4901 = vmatprep.subr.mxu0 %v3484_v15 }
 0x5d2   : > { %2809 = vadd.xlane.f32.xlu0 %v7691_v44  ;;  %v2761_v4 = vmul.f32 1.442695, %v2698_v23  ;;  %4902 = vmatpush3.msra.mxu0 %v3484_v15  ;;  %v3479_v23 = vld [vmem:[#allocation8 + $0x50] sm:$0xff]  ;;  %v3476_v15 = vld [vmem:[#allocation8 + $0x38] sm:$0xff] }
 0x5d3   : > { %v7696_v12 = vpop.eup %5384  ;;  %v3137_v14 = vpop.permute.xlu0 %3136 }
 0x5d4   : > { %4855 = vmatprep.subr.mxu1 %v3137_v14  ;;  %2807 = vadd.xlane.f32.xlu1 %v7696_v12 }
 0x5d5   : > { %4856 = vmatpush3.msra.mxu1 %v3137_v14  ;;  %v3135_v16 = vpop.permute.xlu1 %3134  ;;  %v7705_v29 = vpop.eup %5386  ;;  %v8311_v14 = vld [vmem:[#allocation48_spill] sm:$0xff] }
 0x5d6   : > { %4857 = vmatprep.subr.mxu1 %v3135_v16 }
 0x5d7   : > { %v3133_v56 = vpop.permute.xlu0 %3132  ;;  %4858 = vmatpush3.msra.mxu1 %v3135_v16  ;;  %v7708_v57 = vpop.eup %5388 }
 0x5d8   : > { %4859 = vmatprep.subr.mxu1 %v3133_v56 }
 0x5d9   : > { %4860 = vmatpush3.msra.mxu1 %v3133_v56  ;;  %v7717_v31 = vpop.eup %5390 }
 0x5db   : > { %v7720_v46 = vpop.eup %5392 }
 0x5e5   : > { %3130 = vrot.lane.b32.xlu1 %v8308_v9, %s5638_s24  ;;  %v2696_v9 = vsub.f32 %v7636_v49, %v2662_v42 }
 0x5e8   : > { %3128 = vrot.lane.b32.xlu0 %v7254_v36, %s5638_s24  ;;  %v8310_v36 = vld [vmem:[#allocation26_spill] sm:$0xff] }
 0x5f9   : > { %v7754_v42 = vpop.f32.mrf.mxu0 }
 0x5fb   : > { %v7756_v11 = vpop.f32.mrf.mxu0 }
 0x607   : > { %2813 = vadd.xlane.f32.xlu0 %v7705_v29 }
 0x609   : > { %2811 = vadd.xlane.f32.xlu1 %v7708_v57 }
 0x61a   : > { %3126 = vrot.lane.b32.xlu1 %v8309_v6, %s5638_s24  ;;  %v2757_v6 = vmul.f32 1.442695, %v2696_v9 }
 0x61d   : > { %3124 = vrot.lane.b32.xlu0 %v8310_v36, %s5638_s24 }
 0x63c   : > { %2817 = vadd.xlane.f32.xlu0 %v7717_v31 }
 0x63e   : > { %2815 = vadd.xlane.f32.xlu1 %v7720_v46 }
 0x64f   : > { %v7723_v18 = vpop.xlane.xlu0 %2797  ;;  %3122 = vrot.lane.b32.xlu1 %v8311_v14, %s5638_s24  ;;  %v7760_v14 = vpop.f32.mrf.mxu0 }
 0x651   : > { %v2796_v28 = vpop.xlane.xlu1 %2795 }
 0x652   : > { %5394 = vrcp.f32 %v2796_v28  ;;  %3120 = vrot.lane.b32.xlu0 %v8312_v43, %s5638_s24  ;;  %v2697_v28 = vsub.f32 %v7647_v19, %v7693_v63  ;;  %v3483_v19 = vld [vmem:[#allocation8 + $0x70] sm:$0xff]  ;;  %v3482_v63 = vld [vmem:[#allocation8 + $0x68] sm:$0xff] }
 0x653   : > { %v7729_v33 = vpop.xlane.xlu0 %2801  ;;  %5396 = vpow2.f32 %v2757_v6  ;;  %v7768_v6 = vpop.f32.mrf.mxu0  ;;  %4903 = vmatprep.subr.mxu0 %v3483_v19 }
 0x654   : > { %5398 = vpow2.f32 %v2755_v24  ;;  %4904 = vmatpush3.msra.mxu0 %v3483_v19 }
 0x655   : > { %v7731_v54 = vpop.xlane.xlu1 %2799  ;;  %5400 = vpow2.f32 %v2761_v4  ;;  %v7770_v22 = vpop.f32.mrf.mxu0  ;;  %4905 = vmatprep.subr.mxu0 %v3482_v63 }
 0x656   : > { %4906 = vmatpush3.msra.mxu0 %v3482_v63  ;;  %v3475_v63 = vld [vmem:[#allocation8 + $0x30] sm:$0xff] }
 0x657   : > { %v7733_v16 = vpop.xlane.xlu0 %2805  ;;  %v3041_v24 = vpop.f32.mrf.mxu0 }
 0x659   : > { %v7735_v56 = vpop.xlane.xlu1 %2803 }
 0x65b   : > { %v7739_v26 = vpop.xlane.xlu0 %2809 }
 0x65d   : > { %v7741_v62 = vpop.xlane.xlu1 %2807 }
 0x65f   : > { %v5395_v20 = vpop.eup %5394  ;;  %v3129_v21 = vpop.permute.xlu0 %3128 }
 0x660   : > { %v2875_v36 = vmul.f32 %v5395_v20, %v7674_v13  ;;  %v7744_v49 = vpop.eup %5396  ;;  %v8313_v13 = vld [vmem:[#allocation25_spill] sm:$0xff]  ;;  %v2759_v20 = vmul.f32 1.442695, %v2697_v28  ;;  %v3478_v28 = vld [vmem:[#allocation8 + $0x48] sm:$0xff] }
 0x661   : > { %v3131_v38 = vpop.permute.xlu1 %3130  ;;  %v7747_v60 = vpop.eup %5398 }
 0x662   : > { %4861 = vmatprep.subr.mxu1 %v3131_v38  ;;  %4877 = vmatprep.mubr.f32.mxu1 %v2875_v36  ;;  %5402 = vpow2.f32 %v2759_v20  ;;  %v7772_v4 = vpop.eup %5400 }
 0x663   : > { %4862 = vmatpush3.msra.mxu1 %v3131_v38  ;;  %v3481_v38 = vld [vmem:[#allocation8 + $0x60] sm:$0xff]  ;;  %5404 = vrcp.f32 %v7723_v18 }
 0x664   : > { %4863 = vmatprep.subr.mxu1 %v3129_v21  ;;  %4907 = vmatprep.subr.mxu0 %v3481_v38  ;;  %5406 = vrcp.f32 %v7731_v54 }
 0x665   : > { %4864 = vmatpush3.msra.mxu1 %v3129_v21  ;;  %v3480_v21 = vld [vmem:[#allocation8 + $0x58] sm:$0xff]  ;;  %4908 = vmatpush3.msra.mxu0 %v3481_v38  ;;  %v3474_v38 = vld [vmem:[#allocation8 + $0x28] sm:$0xff]  ;;  %5408 = vrcp.f32 %v7729_v33 }
 0x666   : > { %4909 = vmatprep.subr.mxu0 %v3480_v21  ;;  %5410 = vrcp.f32 %v7735_v56 }
 0x667   : > { %4910 = vmatpush3.msra.mxu0 %v3480_v21  ;;  %5412 = vrcp.f32 %v7733_v16 }
 0x668   : > { %4911 = vmatprep.subr.mxu0 %v3479_v23  ;;  %5414 = vrcp.f32 %v7741_v62 }
 0x669   : > { %4912 = vmatpush3.msra.mxu0 %v3479_v23  ;;  %v3473_v23 = vld [vmem:[#allocation8 + $0x20] sm:$0xff]  ;;  %5416 = vrcp.f32 %v7739_v26 }
 0x66a   : > { %4913 = vmatprep.subr.mxu0 %v3478_v28 }
 0x66b   : > { %4914 = vmatpush3.msra.mxu0 %v3478_v28  ;;  %v3471_v28 = vld [vmem:[#allocation8 + $0x10] sm:$0xff] }
 0x671   : > { %2821 = vadd.xlane.f32.xlu0 %v7744_v49 }
 0x673   : > { %2819 = vadd.xlane.f32.xlu1 %v7747_v60 }
 0x684   : > { %3118 = vrot.lane.b32.xlu1 %v8313_v13, %s5638_s24  ;;  %v4832_v13 = vpop.f32.mrf.mxu0 }
 0x686   : > { %v3051_v20 = vpop.f32.mrf.mxu0 }
 0x687   : > { %3116 = vrot.lane.b32.xlu0 %v7294_v10, %s5638_s24 }
 0x688   : > { %v4835_v19 = vpop.f32.mrf.mxu0 }
 0x68a   : > { %v3061_v21 = vpop.f32.mrf.mxu0 }
 0x68c   : > { %v4838_v7 = vpop.f32.mrf.mxu0 }
 0x68e   : > { %v3071_v1 = vpop.f32.mrf.mxu0 }
 0x690   : > { %v7764_v43 = vpop.xlane.xlu0 %2813 }
 0x692   : > { %v7766_v9 = vpop.xlane.xlu1 %2811 }
 0x693   : > { %5418 = vrcp.f32 %v7766_v9 }
 0x694   : > { %v3125_v36 = vpop.permute.xlu0 %3124  ;;  %5420 = vrcp.f32 %v7764_v43 }
 0x696   : > { %v3127_v10 = vpop.permute.xlu1 %3126 }
 0x697   : > { %4865 = vmatprep.subr.mxu1 %v3127_v10 }
 0x698   : > { %4866 = vmatpush3.msra.mxu1 %v3127_v10  ;;  %v3477_v10 = vld [vmem:[#allocation8 + $0x40] sm:$0xff] }
 0x699   : > { %4867 = vmatprep.subr.mxu1 %v3125_v36  ;;  %4915 = vmatprep.subr.mxu0 %v3477_v10 }
 0x69a   : > { %4868 = vmatpush3.msra.mxu1 %v3125_v36  ;;  %v7775_v36 = vpop.eup %5402  ;;  %4916 = vmatpush3.msra.mxu0 %v3477_v10  ;;  %v3470_v10 = vld [vmem:[#allocation8 + $0x8] sm:$0xff] }
 0x69b   : > { %4917 = vmatprep.subr.mxu0 %v3476_v15 }
 0x69c   : > { %4918 = vmatpush3.msra.mxu0 %v3476_v15  ;;  %v5098_v15 = vpack.i.bf16 %v7754_v42, %v7756_v11  ;;  %v5113_v42 = vpack.i.bf16 %v4832_v13, %v3051_v20 }
 0x69d   : > { %4919 = vmatprep.subr.mxu0 %v3475_v63 }
 0x69e   : > { %4920 = vmatpush3.msra.mxu0 %v3475_v63  ;;  %v3469_v63 = vld [vmem:[#allocation8] sm:$0xff] }
 0x69f   : > { %4921 = vmatprep.subr.mxu0 %v3474_v38 }
 0x6a0   : > { %4922 = vmatpush3.msra.mxu0 %v3474_v38  ;;  %v5103_v38 = vpack.i.bf16 %v7760_v14, %v7768_v6 }
 0x6a1   : > { %4923 = vmatprep.subr.mxu0 %v3473_v23 }
 0x6a2   : > { %4924 = vmatpush3.msra.mxu0 %v3473_v23  ;;  %v4841_v23 = vpop.f32.mrf.mxu0 }
 0x6a3   : > { %4925 = vmatprep.subr.mxu0 %v3472_v35 }
 0x6a4   : > { %4926 = vmatpush3.msra.mxu0 %v3472_v35  ;;  %v5108_v35 = vpack.i.bf16 %v7770_v22, %v3041_v24  ;;  %v3081_v3 = vpop.f32.mrf.mxu0 }
 0x6a5   : > { %4927 = vmatprep.subr.mxu0 %v3471_v28 }
 0x6a6   : > { %2825 = vadd.xlane.f32.xlu0 %v7772_v4  ;;  %4928 = vmatpush3.msra.mxu0 %v3471_v28  ;;  %v5118_v28 = vpack.i.bf16 %v4835_v19, %v3061_v21  ;;  %v4844_v11 = vpop.f32.mrf.mxu0 }
 0x6a7   : > { %4929 = vmatprep.subr.mxu0 %v3470_v10 }
 0x6a8   : > { %2823 = vadd.xlane.f32.xlu1 %v7775_v36  ;;  %4930 = vmatpush3.msra.mxu0 %v3470_v10  ;;  %v5128_v10 = vpack.i.bf16 %v4841_v23, %v3081_v3  ;;  %v3091_v51 = vpop.f32.mrf.mxu0  ;;  %v5405_v3 = vpop.eup %5404 }
 0x6a9   : > { %4931 = vmatprep.subr.mxu0 %v3469_v63  ;;  %v5133_v14 = vpack.i.bf16 %v4844_v11, %v3091_v51  ;;  %v5407_v20 = vpop.eup %5406  ;;  %v2876_v33 = vmul.f32 %v5405_v3, %v7671_v2 }
 0x6aa   : > { %4932 = vmatpush3.msra.mxu0 %v3469_v63  ;;  %v5409_v54 = vpop.eup %5408  ;;  %v2877_v16 = vmul.f32 %v5407_v20, %v7680_v52 }
 0x6ab   : > { %v5411_v56 = vpop.eup %5410  ;;  %v2878_v26 = vmul.f32 %v5409_v54, %v7677_v47 }
 0x6ac   : > { %v5413_v62 = vpop.eup %5412  ;;  %v2879_v9 = vmul.f32 %v5411_v56, %v7686_v50 }
 0x6ad   : > { %v5415_v19 = vpop.eup %5414  ;;  %v2880_v2 = vmul.f32 %v5413_v62, %v7683_v30 }
 0x6ae   : > { %v5417_v43 = vpop.eup %5416  ;;  %v2881_v21 = vmul.f32 %v5415_v19, %v7696_v12 }
 0x6af   : > { %v5419_v52 = vpop.eup %5418  ;;  %v2882_v63 = vmul.f32 %v5417_v43, %v7691_v44 }
 0x6b0   : > { %v2883_v47 = vmul.f32 %v5419_v52, %v7708_v57 }
 0x6b9   : > { %5099 = vrot.lane.b32.xlu1 %v5098_v15, %s5638_s24  ;;  %v5123_v15 = vpack.i.bf16 %v4838_v7, %v3071_v1 }
 0x6bc   : > { %5104 = vrot.lane.b32.xlu0 %v5103_v38, %s5638_s24  ;;  %v5421_v38 = vpop.eup %5420 }
 0x6bd   : > { %5109 = vrot.lane.b32.xlu1 %v5108_v35, %s5638_s24  ;;  %v2884_v50 = vmul.f32 %v5421_v38, %v7705_v29 }
 0x6c0   : > { %5119 = vrot.lane.b32.xlu0 %v5118_v28, %s5638_s24 }
 0x6c1   : > { %5114 = vrot.lane.b32.xlu1 %v5113_v42, %s5638_s24 }
 0x6c4   : > { %5129 = vrot.lane.b32.xlu0 %v5128_v10, %s5638_s24 }
 0x6c5   : > { %5124 = vrot.lane.b32.xlu1 %v5123_v15, %s5638_s24  ;;  %v2818_v6 = vpop.xlane.xlu0 %2817 }
 0x6c7   : > { %v2816_v22 = vpop.xlane.xlu1 %2815 }
 0x6c8   : > { %5422 = vrcp.f32 %v2816_v22 }
 0x6c9   : > { %5134 = vrot.lane.b32.xlu1 %v5133_v14, %s5638_s24  ;;  %v3121_v13 = vpop.permute.xlu0 %3120  ;;  %5424 = vrcp.f32 %v2818_v6 }
 0x6cb   : > { %v3123_v24 = vpop.permute.xlu1 %3122 }
 0x6cc   : > { %4869 = vmatprep.subr.mxu1 %v3123_v24 }
 0x6cd   : > { %4870 = vmatpush3.msra.mxu1 %v3123_v24 }
 0x6ce   : > { %4871 = vmatprep.subr.mxu1 %v3121_v13 }
 0x6cf   : > { %4872 = vmatpush3.msra.mxu1 %v3121_v13 }
 0x6d5   : > { %v5423_v23 = vpop.eup %5422 }
 0x6d6   : > { %v5425_v35 = vpop.eup %5424  ;;  %v2885_v28 = vmul.f32 %v5423_v23, %v7720_v46 }
 0x6d7   : > { %v2886_v12 = vmul.f32 %v5425_v35, %v7717_v31 }
 0x6fa   : > { %v2822_v51 = vpop.xlane.xlu0 %2821 }
 0x6fc   : > { %v2820_v1 = vpop.xlane.xlu1 %2819 }
 0x6fd   : > { %5426 = vrcp.f32 %v2820_v1 }
 0x6fe   : > { %v3117_v18 = vpop.permute.xlu0 %3116  ;;  %5428 = vrcp.f32 %v2822_v51 }
 0x700   : > { %v3119_v7 = vpop.permute.xlu1 %3118 }
 0x701   : > { %4873 = vmatprep.subr.mxu1 %v3119_v7 }
 0x702   : > { %4874 = vmatpush3.msra.mxu1 %v3119_v7 }
 0x703   : > { %4875 = vmatprep.subr.mxu1 %v3117_v18 }
 0x704   : > { %4876 = vmatpush3.msra.mxu1 %v3117_v18 }
 0x705   : > { %4878 = vmatmul.mubr.f32.vlgmr.msra.gmra.mxu1 %v2876_v33 }
 0x706   : > { %4880 = vmatprep.mubr.f32.mxu1 %v2877_v16 }
 0x709   : > { %4881 = vmatmul.mubr.f32.gmra.mxu1 %v2878_v26 }
 0x70a   : > { %4883 = vmatprep.mubr.f32.mxu1 %v2879_v9  ;;  %v5427_v30 = vpop.eup %5426 }
 0x70b   : > { %v5429_v42 = vpop.eup %5428  ;;  %v2887_v11 = vmul.f32 %v5427_v30, %v7747_v60 }
 0x70c   : > { %v2888_v44 = vmul.f32 %v5429_v42, %v7744_v49 }
 0x70d   : > { %4884 = vmatmul.mubr.f32.gmra.mxu1 %v2880_v2 }
 0x70e   : > { %4886 = vmatprep.mubr.f32.mxu1 %v2881_v21 }
 0x711   : > { %4887 = vmatmul.mubr.f32.gmra.mxu1 %v2882_v63 }
 0x712   : > { %4889 = vmatprep.mubr.f32.mxu1 %v2883_v47 }
 0x715   : > { %4890 = vmatmul.mubr.f32.gmra.mxu1 %v2884_v50 }
 0x716   : > { %4892 = vmatprep.mubr.f32.mxu1 %v2885_v28 }
 0x719   : > { %4893 = vmatmul.mubr.f32.gmra.mxu1 %v2886_v12 }
 0x71a   : > { %4895 = vmatprep.mubr.f32.mxu1 %v2887_v11 }
 0x71d   : > { %4896 = vmatmul.mubr.f32.gmra.mxu1 %v2888_v44 }
 0x72f   : > { %v2826_v57 = vpop.xlane.xlu0 %2825 }
 0x730   : > { %5430 = vrcp.f32 %v2826_v57 }
 0x731   : > { %v2824_v10 = vpop.xlane.xlu1 %2823 }
 0x732   : > { %5432 = vrcp.f32 %v2824_v10 }
 0x733   : > { %v5105_v29 = vpop.permute.xlu0 %5104 }
 0x734   : > { %v5106_v46 = vunpack.i.l.bf16 %v5105_v29  ;;  %v5107_v22 = vunpack.i.h.bf16 %v5105_v29 }
 0x735   : > { %v5100_v15 = vpop.permute.xlu1 %5099 }
 0x736   : > { %v5102_v14 = vunpack.i.h.bf16 %v5100_v15  ;;  %v5101_v6 = vunpack.i.l.bf16 %v5100_v15  ;;  %v3439_v13 = vsel %vm996_vm0, %v7505_v61, %v5106_v46  ;;  %v3440_v3 = vsel %vm996_vm0, %v7501_v8, %v5107_v22 }
 0x737   : > { %v5120_v18 = vpop.permute.xlu0 %5119 }
 0x738   : > { %v3437_v31 = vsel %vm996_vm0, %v7499_v37, %v5101_v6  ;;  %v3438_v60 = vsel %vm996_vm0, %v7495_v5, %v5102_v14  ;;  %v5121_v56 = vunpack.i.l.bf16 %v5120_v18  ;;  %v7857_v6 = vld [vmem:[%s8013_s4] ss:$0 sm:$0xff] }
 0x739   : > { %v5110_v24 = vpop.permute.xlu1 %5109  ;;  %4933 = vmatprep.mubr.f32.mxu0 %v3437_v31 }
 0x73a   : > { %v5111_v49 = vunpack.i.l.bf16 %v5110_v24  ;;  %4934 = vmatmul.mubr.f32.vlgmr.msra.gmra.mxu0 %v3438_v60  ;;  %v5112_v51 = vunpack.i.h.bf16 %v5110_v24 }
 0x73b   : > { %4936 = vmatprep.mubr.f32.mxu0 %v3439_v13  ;;  %v5130_v9 = vpop.permute.xlu0 %5129 }
 0x73c   : > { %v3441_v5 = vsel %vm996_vm0, %v7515_v25, %v5111_v49  ;;  %v3442_v61 = vsel %vm996_vm0, %v7513_v53, %v5112_v51  ;;  %v5122_v25 = vunpack.i.h.bf16 %v5120_v18  ;;  %v3445_v53 = vsel %vm996_vm0, %v7523_v0, %v5121_v56 }
 0x73d   : > { %v5115_v1 = vpop.permute.xlu1 %5114  ;;  %v5431_v7 = vpop.eup %5430  ;;  %v5131_v2 = vunpack.i.l.bf16 %v5130_v9  ;;  %v5132_v21 = vunpack.i.h.bf16 %v5130_v9 }
 0x73e   : > { %v5116_v20 = vunpack.i.l.bf16 %v5115_v1  ;;  %4937 = vmatmul.mubr.f32.gmra.mxu0 %v3440_v3  ;;  %v5117_v54 = vunpack.i.h.bf16 %v5115_v1  ;;  %v2890_v16 = vmul.f32 %v5431_v7, %v7772_v4  ;;  %v3446_v19 = vsel %vm996_vm0, %v7521_v55, %v5122_v25 }
 0x73f   : > { %v5433_v37 = vpop.eup %5432  ;;  %4939 = vmatprep.mubr.f32.mxu0 %v3441_v5  ;;  %v3449_v0 = vsel %vm996_vm0, %v7537_v32, %v5131_v2  ;;  %v3450_v55 = vsel %vm996_vm0, %v7535_v58, %v5132_v21 }
 0x740   : > { %v2889_v33 = vmul.f32 %v5433_v37, %v7775_v36  ;;  %v3443_v8 = vsel %vm996_vm0, %v7519_v27, %v5116_v20  ;;  %v3444_v62 = vsel %vm996_vm0, %v7517_v41, %v5117_v54 }
 0x741   : > { %v5125_v26 = vpop.permute.xlu1 %5124 }
 0x742   : > { %4898 = vmatprep.mubr.f32.mxu1 %v2889_v33  ;;  %4940 = vmatmul.mubr.f32.gmra.mxu0 %v3442_v61  ;;  %v5126_v36 = vunpack.i.l.bf16 %v5125_v26  ;;  %v5127_v4 = vunpack.i.h.bf16 %v5125_v26 }
 0x743   : > { %4899 = vmatmul.mubr.f32.gmra.mxu1 %v2890_v16  ;;  %4942 = vmatprep.mubr.f32.mxu0 %v3443_v8 }
 0x744   : > { %v3447_v27 = vsel %vm996_vm0, %v7533_v34, %v5126_v36  ;;  %v3448_v41 = vsel %vm996_vm0, %v7525_v17, %v5127_v4 }
 0x745   : > { %v5135_v43 = vpop.permute.xlu1 %5134 }
 0x746   : > { %4943 = vmatmul.mubr.f32.gmra.mxu0 %v3444_v62  ;;  %v5136_v52 = vunpack.i.l.bf16 %v5135_v43  ;;  %v5137_v63 = vunpack.i.h.bf16 %v5135_v43 }
 0x747   : > { %4945 = vmatprep.mubr.f32.mxu0 %v3445_v53 }
 0x748   : > { %v3451_v34 = vsel %vm996_vm0, %v7541_v45, %v5136_v52  ;;  %v3452_v38 = vsel %vm996_vm0, %v7539_v40, %v5137_v63 }
 0x74a   : > { %4946 = vmatmul.mubr.f32.gmra.mxu0 %v3446_v19 }
 0x74b   : > { %4948 = vmatprep.mubr.f32.mxu0 %v3447_v27 }
 0x74e   : > { %4949 = vmatmul.mubr.f32.gmra.mxu0 %v3448_v41 }
 0x74f   : > { %4951 = vmatprep.mubr.f32.mxu0 %v3449_v0 }
 0x752   : > { %4952 = vmatmul.mubr.f32.gmra.mxu0 %v3450_v55 }
 0x753   : > { %4954 = vmatprep.mubr.f32.mxu0 %v3451_v34 }
 0x756   : > { %4955 = vmatmul.mubr.f32.gmra.mxu0 %v3452_v38 }
 0x7c5   : > { %v4879_v17 = vpop.f32.mrf.mxu1 }
 0x7c7   : > { %v3230_v47 = vpop.f32.mrf.mxu1 }
 0x7c8   : > { %v5138_v23 = vpack.i.bf16 %v4879_v17, %v3230_v47 }
 0x7c9   : > { %v4882_v50 = vpop.f32.mrf.mxu1 }
 0x7ca   : > { %5139 = vrot.lane.b32.xlu0 %v5138_v23, %s5638_s24 }
 0x7cb   : > { %v3240_v32 = vpop.f32.mrf.mxu1 }
 0x7cc   : > { %v5143_v35 = vpack.i.bf16 %v4882_v50, %v3240_v32 }
 0x7cd   : > { %v4885_v28 = vpop.f32.mrf.mxu1 }
 0x7ce   : > { %5144 = vrot.lane.b32.xlu1 %v5143_v35, %s5638_s24  ;;  %v8314_v35 = vld [vmem:[#allocation29_spill] sm:$0xff] }
 0x7cf   : > { %v3250_v58 = vpop.f32.mrf.mxu1 }
 0x7d0   : > { %v5148_v30 = vpack.i.bf16 %v4885_v28, %v3250_v58 }
 0x7d1   : > { %v4888_v12 = vpop.f32.mrf.mxu1 }
 0x7d2   : > { %5149 = vrot.lane.b32.xlu0 %v5148_v30, %s5638_s24 }
 0x7d3   : > { %v3260_v45 = vpop.f32.mrf.mxu1 }
 0x7d4   : > { %v5153_v42 = vpack.i.bf16 %v4888_v12, %v3260_v45 }
 0x7d5   : > { %v4891_v40 = vpop.f32.mrf.mxu1 }
 0x7d6   : > { %5154 = vrot.lane.b32.xlu1 %v5153_v42, %s5638_s24 }
 0x7d7   : > { %v3270_v11 = vpop.f32.mrf.mxu1 }
 0x7d8   : > { %v5158_v44 = vpack.i.bf16 %v4891_v40, %v3270_v11 }
 0x7d9   : > { %v4894_v57 = vpop.f32.mrf.mxu1 }
 0x7da   : > { %5159 = vrot.lane.b32.xlu0 %v5158_v44, %s5638_s24 }
 0x7db   : > { %v3280_v10 = vpop.f32.mrf.mxu1 }
 0x7dc   : > { %v5163_v29 = vpack.i.bf16 %v4894_v57, %v3280_v10  ;;  %v8318_v10 = vld [vmem:[#allocation27_spill] sm:$0xff] }
 0x7dd   : > { %v4897_v15 = vpop.f32.mrf.mxu1 }
 0x7de   : > { %5164 = vrot.lane.b32.xlu1 %v5163_v29, %s5638_s24 }
 0x7df   : > { %v3290_v46 = vpop.f32.mrf.mxu1 }
 0x7e0   : > { %v5168_v14 = vpack.i.bf16 %v4897_v15, %v3290_v46 }
 0x7e2   : > { %5169 = vrot.lane.b32.xlu0 %v5168_v14, %s5638_s24 }
 0x7fa   : > { %v4935_v31 = vpop.f32.mrf.mxu0 }
 0x7fb   : > { %v3564_v60 = vadd.f32 %v4935_v31, %v7857_v6  ;;  %v8319_v31 = vld [vmem:[#allocation53_spill] sm:$0xff] }
 0x7fc   : > { %v3558_v22 = vpop.f32.mrf.mxu0 }
 0x7fd   : > { %3718 = vst [vmem:[%s7862_s15 + $0x8] sm:$0xff] %v3564_v60  ;;  %v3559_v24 = vadd.f32 %v7857_v6, %v3558_v22  ;;  %v8320_v22 = vld [vmem:[#allocation21_spill] sm:$0xff] }
 0x7fe   : > { %v4938_v49 = vpop.f32.mrf.mxu0 }
 0x7ff   : > { %3717 = vst [vmem:[%s7862_s15] sm:$0xff] %v3559_v24  ;;  %v3574_v13 = vadd.f32 %v4938_v49, %v7857_v6 }
 0x800   : > { %v3568_v51 = vpop.f32.mrf.mxu0 }
 0x801   : > { %3720 = vst [vmem:[%s7862_s15 + $0x18] sm:$0xff] %v3574_v13  ;;  %v3569_v1 = vadd.f32 %v7857_v6, %v3568_v51 }
 0x802   : > { %v4941_v3 = vpop.f32.mrf.mxu0 }
 0x803   : > { %3719 = vst [vmem:[%s7862_s15 + $0x10] sm:$0xff] %v3569_v1  ;;  %v3584_v7 = vadd.f32 %v4941_v3, %v7857_v6  ;;  %v4900_v20 = vpop.f32.mrf.mxu1  ;;  %v8321_v1 = vld [vmem:[#allocation38_spill] sm:$0xff] }
 0x804   : > { %v3578_v5 = vpop.f32.mrf.mxu0 }
 0x805   : > { %3722 = vst [vmem:[%s7862_s15 + $0x28] sm:$0xff] %v3584_v7  ;;  %v3579_v37 = vadd.f32 %v7857_v6, %v3578_v5  ;;  %v3300_v18 = vpop.f32.mrf.mxu1  ;;  %v8322_v7 = vld [vmem:[#allocation36_spill] sm:$0xff] }
 0x806   : > { %v5173_v33 = vpack.i.bf16 %v4900_v20, %v3300_v18  ;;  %v4944_v54 = vpop.f32.mrf.mxu0 }
 0x807   : > { %3721 = vst [vmem:[%s7862_s15 + $0x20] sm:$0xff] %v3579_v37  ;;  %v3594_v61 = vadd.f32 %v4944_v54, %v7857_v6 }
 0x808   : > { %5174 = vrot.lane.b32.xlu1 %v5173_v33, %s5638_s24  ;;  %v3588_v16 = vpop.f32.mrf.mxu0  ;;  %v8323_v33 = vld [vmem:[#allocation47_spill] sm:$0xff] }
 0x809   : > { %3724 = vst [vmem:[%s7862_s15 + $0x38] sm:$0xff] %v3594_v61  ;;  %v3589_v56 = vadd.f32 %v7857_v6, %v3588_v16  ;;  %v8324_v61 = vld [vmem:[#allocation70_spill] sm:$0xff] }
 0x80a   : > { %v4947_v8 = vpop.f32.mrf.mxu0 }
 0x80b   : > { %3723 = vst [vmem:[%s7862_s15 + $0x30] sm:$0xff] %v3589_v56  ;;  %v3604_v26 = vadd.f32 %v4947_v8, %v7857_v6 }
 0x80c   : > { %v3598_v25 = vpop.f32.mrf.mxu0 }
 0x80d   : > { %3726 = vst [vmem:[%s7862_s15 + $0x48] sm:$0xff] %v3604_v26  ;;  %v3599_v62 = vadd.f32 %v7857_v6, %v3598_v25  ;;  %v8325_v25 = vld [vmem:[#allocation23_spill] sm:$0xff] }
 0x80e   : > { %v4950_v36 = vpop.f32.mrf.mxu0 }
 0x80f   : > { %3725 = vst [vmem:[%s7862_s15 + $0x40] sm:$0xff] %v3599_v62  ;;  %v3614_v53 = vadd.f32 %v4950_v36, %v7857_v6  ;;  %v8326_v36 = vld [vmem:[#allocation34_spill] sm:$0xff] }
 0x810   : > { %v3608_v9 = vpop.f32.mrf.mxu0 }
 0x811   : > { %3728 = vst [vmem:[%s7862_s15 + $0x58] sm:$0xff] %v3614_v53  ;;  %v3609_v4 = vadd.f32 %v7857_v6, %v3608_v9 }
 0x812   : > { %v4953_v19 = vpop.f32.mrf.mxu0 }
 0x813   : > { %3727 = vst [vmem:[%s7862_s15 + $0x50] sm:$0xff] %v3609_v4  ;;  %v3624_v2 = vadd.f32 %v4953_v19, %v7857_v6 }
 0x814   : > { %v3618_v27 = vpop.f32.mrf.mxu0 }
 0x815   : > { %3730 = vst [vmem:[%s7862_s15 + $0x68] sm:$0xff] %v3624_v2  ;;  %v3619_v43 = vadd.f32 %v7857_v6, %v3618_v27 }
 0x816   : > { %v4956_v21 = vpop.f32.mrf.mxu0 }
 0x817   : > { %3729 = vst [vmem:[%s7862_s15 + $0x60] sm:$0xff] %v3619_v43  ;;  %v3634_v41 = vadd.f32 %v4956_v21, %v7857_v6 }
 0x818   : > { %v3628_v52 = vpop.f32.mrf.mxu0 }
 0x819   : > { %3732 = vst [vmem:[%s7862_s15 + $0x78] sm:$0xff] %v3634_v41  ;;  %v3629_v0 = vadd.f32 %v7857_v6, %v3628_v52 }
 0x81b   : > { %3731 = vst [vmem:[%s7862_s15 + $0x70] sm:$0xff] %v3629_v0 }
 0x83c   : > { %v5140_v63 = vpop.permute.xlu0 %5139 }
 0x83d   : > { %v5142_v55 = vunpack.i.h.bf16 %v5140_v63  ;;  %v5141_v34 = vunpack.i.l.bf16 %v5140_v63 }
 0x83f   : > { %v3453_v38 = vsel %vm996_vm0, %v7547_v39, %v5141_v34  ;;  %v3454_v17 = vsel %vm996_vm0, %v7543_v48, %v5142_v55  ;;  %v8315_v39 = vld [vmem:[#allocation28_spill] sm:$0xff]  ;;  %v8316_v48 = vld [vmem:[#allocation39_spill] sm:$0xff] }
 0x840   : > { %v5145_v47 = vpop.permute.xlu1 %5144  ;;  %4957 = vmatprep.mubr.f32.mxu0 %v3453_v38 }
 0x841   : > { %v5147_v23 = vunpack.i.h.bf16 %v5145_v47  ;;  %v5146_v50 = vunpack.i.l.bf16 %v5145_v47  ;;  %4958 = vmatmul.mubr.f32.gmra.mxu0 %v3454_v17 }
 0x843   : > { %v3455_v32 = vsel %vm996_vm0, %v7559_v59, %v5146_v50  ;;  %v3456_v28 = vsel %vm996_vm0, %v8314_v35, %v5147_v23  ;;  %v8317_v59 = vld [vmem:[#allocation18_spill] sm:$0xff] }
 0x844   : > { %v5150_v58 = vpop.permute.xlu0 %5149  ;;  %4960 = vmatprep.mubr.f32.mxu0 %v3455_v32 }
 0x845   : > { %v5152_v30 = vunpack.i.h.bf16 %v5150_v58  ;;  %v5151_v12 = vunpack.i.l.bf16 %v5150_v58  ;;  %4961 = vmatmul.mubr.f32.gmra.mxu0 %v3456_v28 }
 0x847   : > { %v3457_v45 = vsel %vm996_vm0, %v8315_v39, %v5151_v12  ;;  %v3458_v42 = vsel %vm996_vm0, %v8316_v48, %v5152_v30 }
 0x848   : > { %v5155_v40 = vpop.permute.xlu1 %5154  ;;  %4963 = vmatprep.mubr.f32.mxu0 %v3457_v45 }
 0x849   : > { %v5157_v11 = vunpack.i.h.bf16 %v5155_v40  ;;  %v5156_v44 = vunpack.i.l.bf16 %v5155_v40  ;;  %4964 = vmatmul.mubr.f32.gmra.mxu0 %v3458_v42 }
 0x84b   : > { %v3459_v57 = vsel %vm996_vm0, %v8317_v59, %v5156_v44  ;;  %v3460_v29 = vsel %vm996_vm0, %v8318_v10, %v5157_v11 }
 0x84c   : > { %v5160_v15 = vpop.permute.xlu0 %5159  ;;  %4966 = vmatprep.mubr.f32.mxu0 %v3459_v57 }
 0x84d   : > { %v5162_v46 = vunpack.i.h.bf16 %v5160_v15  ;;  %v5161_v14 = vunpack.i.l.bf16 %v5160_v15  ;;  %4967 = vmatmul.mubr.f32.gmra.mxu0 %v3460_v29 }
 0x84f   : > { %v3461_v60 = vsel %vm996_vm0, %v8319_v31, %v5161_v14  ;;  %v3462_v24 = vsel %vm996_vm0, %v8320_v22, %v5162_v46 }
 0x850   : > { %v5165_v49 = vpop.permute.xlu1 %5164  ;;  %4969 = vmatprep.mubr.f32.mxu0 %v3461_v60 }
 0x851   : > { %v5167_v13 = vunpack.i.h.bf16 %v5165_v49  ;;  %v5166_v51 = vunpack.i.l.bf16 %v5165_v49  ;;  %4970 = vmatmul.mubr.f32.gmra.mxu0 %v3462_v24 }
 0x853   : > { %v3463_v3 = vsel %vm996_vm0, %v8321_v1, %v5166_v51  ;;  %v3464_v20 = vsel %vm996_vm0, %v8322_v7, %v5167_v13 }
 0x854   : > { %v5170_v5 = vpop.permute.xlu0 %5169  ;;  %4972 = vmatprep.mubr.f32.mxu0 %v3463_v3 }
 0x855   : > { %v5172_v37 = vunpack.i.h.bf16 %v5170_v5  ;;  %v5171_v18 = vunpack.i.l.bf16 %v5170_v5  ;;  %4973 = vmatmul.mubr.f32.gmra.mxu0 %v3464_v20 }
 0x857   : > { %v3465_v54 = vsel %vm996_vm0, %v8323_v33, %v5171_v18  ;;  %v3466_v16 = vsel %vm996_vm0, %v8324_v61, %v5172_v37 }
 0x858   : > { %4975 = vmatprep.mubr.f32.mxu0 %v3465_v54 }
 0x859   : > { %4976 = vmatmul.mubr.f32.gmra.mxu0 %v3466_v16 }
 0x87a   : > { %v5175_v56 = vpop.permute.xlu1 %5174 }
 0x87b   : > { %v5177_v8 = vunpack.i.h.bf16 %v5175_v56  ;;  %v5176_v26 = vunpack.i.l.bf16 %v5175_v56 }
 0x87d   : > { %v3467_v62 = vsel %vm996_vm0, %v8325_v25, %v5176_v26  ;;  %v3468_v53 = vsel %vm996_vm0, %v8326_v36, %v5177_v8 }
 0x87e   : > { %4978 = vmatprep.mubr.f32.mxu0 %v3467_v62 }
 0x87f   : > { %4979 = vmatmul.mubr.f32.gmra.mxu0 %v3468_v53 }
 0x901   : > { %v4959_v9 = vpop.f32.mrf.mxu0 }
 0x902   : > { %v3644_v4 = vadd.f32 %v4959_v9, %v7857_v6 }
 0x903   : > { %v3638_v19 = vpop.f32.mrf.mxu0 }
 0x904   : > { %3734 = vst [vmem:[%s7862_s15 + $0x88] sm:$0xff] %v3644_v4  ;;  %v3639_v2 = vadd.f32 %v7857_v6, %v3638_v19 }
 0x905   : > { %v4962_v27 = vpop.f32.mrf.mxu0 }
 0x906   : > { %3733 = vst [vmem:[%s7862_s15 + $0x80] sm:$0xff] %v3639_v2  ;;  %v3654_v43 = vadd.f32 %v4962_v27, %v7857_v6 }
 0x907   : > { %v3648_v21 = vpop.f32.mrf.mxu0 }
 0x908   : > { %3736 = vst [vmem:[%s7862_s15 + $0x98] sm:$0xff] %v3654_v43  ;;  %v3649_v41 = vadd.f32 %v7857_v6, %v3648_v21 }
 0x909   : > { %v4965_v52 = vpop.f32.mrf.mxu0 }
 0x90a   : > { %3735 = vst [vmem:[%s7862_s15 + $0x90] sm:$0xff] %v3649_v41  ;;  %v3664_v0 = vadd.f32 %v4965_v52, %v7857_v6 }
 0x90b   : > { %v3658_v63 = vpop.f32.mrf.mxu0 }
 0x90c   : > { %3738 = vst [vmem:[%s7862_s15 + $0xa8] sm:$0xff] %v3664_v0  ;;  %v3659_v55 = vadd.f32 %v7857_v6, %v3658_v63 }
 0x90d   : > { %v4968_v34 = vpop.f32.mrf.mxu0 }
 0x90e   : > { %3737 = vst [vmem:[%s7862_s15 + $0xa0] sm:$0xff] %v3659_v55  ;;  %v3674_v38 = vadd.f32 %v4968_v34, %v7857_v6 }
 0x90f   : > { %v3668_v17 = vpop.f32.mrf.mxu0 }
 0x910   : > { %3740 = vst [vmem:[%s7862_s15 + $0xb8] sm:$0xff] %v3674_v38  ;;  %v3669_v47 = vadd.f32 %v7857_v6, %v3668_v17 }
 0x911   : > { %v4971_v23 = vpop.f32.mrf.mxu0 }
 0x912   : > { %3739 = vst [vmem:[%s7862_s15 + $0xb0] sm:$0xff] %v3669_v47  ;;  %v3684_v50 = vadd.f32 %v4971_v23, %v7857_v6 }
 0x913   : > { %v3678_v32 = vpop.f32.mrf.mxu0 }
 0x914   : > { %3742 = vst [vmem:[%s7862_s15 + $0xc8] sm:$0xff] %v3684_v50  ;;  %v3679_v35 = vadd.f32 %v7857_v6, %v3678_v32 }
 0x915   : > { %v4974_v28 = vpop.f32.mrf.mxu0 }
 0x916   : > { %3741 = vst [vmem:[%s7862_s15 + $0xc0] sm:$0xff] %v3679_v35  ;;  %v3694_v58 = vadd.f32 %v4974_v28, %v7857_v6 }
 0x917   : > { %v3688_v30 = vpop.f32.mrf.mxu0 }
 0x918   : > { %3744 = vst [vmem:[%s7862_s15 + $0xd8] sm:$0xff] %v3694_v58  ;;  %v3689_v12 = vadd.f32 %v7857_v6, %v3688_v30 }
 0x919   : > { %v4977_v39 = vpop.f32.mrf.mxu0 }
 0x91a   : > { %3743 = vst [vmem:[%s7862_s15 + $0xd0] sm:$0xff] %v3689_v12  ;;  %v3704_v45 = vadd.f32 %v4977_v39, %v7857_v6 }
 0x91b   : > { %v3698_v48 = vpop.f32.mrf.mxu0 }
 0x91c   : > { %3746 = vst [vmem:[%s7862_s15 + $0xe8] sm:$0xff] %v3704_v45  ;;  %v3699_v42 = vadd.f32 %v7857_v6, %v3698_v48 }
 0x91e   : > { %3745 = vst [vmem:[%s7862_s15 + $0xe0] sm:$0xff] %v3699_v42 }
 0x93f   : > { %v4980_v40 = vpop.f32.mrf.mxu0 }
 0x940   : > { %v3714_v11 = vadd.f32 %v4980_v40, %v7857_v6 }
 0x941   : > { %v3708_v44 = vpop.f32.mrf.mxu0 }
 0x942   : > { %3748 = vst [vmem:[%s7862_s15 + $0xf8] sm:$0xff] %v3714_v11  ;;  %v3709_v59 = vadd.f32 %v7857_v6, %v3708_v44 }
 0x944   : > { %3747 = vst [vmem:[%s7862_s15 + $0xf0] sm:$0xff] %v3709_v59 }
 0x945   : > { %5568 = shalt.err (!%p5565_p9)
}
 0x946   : > { %s5569_s8 = scalar_lea.hbm %s7962_s11, 4096  ;;  %s5573_s26 = scalar_lea.hbm %s8014_s5, 16384 }
 0x947   : > { %p5570_p1 = scmp.ne.s32.totalorder %s7962_s11, %s5569_s8  ;;  %p5574_p10 = scmp.lt.s32.totalorder %s7962_s11, %s8014_s5 }
 0x948   : > { %p5575_p12 = scmp.lt.s32.totalorder %s5573_s26, %s5569_s8 }
 0x949   : > { %p5571_p8 = pnand %p5570_p1, %p8327_p6 }
 0x94a   : > { %p5576_p2 = por %p5575_p12, %p5574_p10 }
 0x94b   : > { %p5572_p5 = pneg %p5571_p8 }
 0x94d   : > { %p5577_p4 = pnand %p5576_p2, %p5572_p5 }
 0x94f   : > { %5580 = shalt.err (!%p5577_p4)
}
 0x950   : > { %s5640_s17 = smov 128   ;;  %s5641_s13 = smov 8  }
 0x951   : > { %5027 = dma.vmem_to_hbm [thread:$0]  (%p8327_p6), %s7964_s30, 4096, %s7962_s11, %s3750_s22, %s5640_s17, %s5640_s17, %s5641_s13  }
 0x952 PF: > { %p5054_p11 = scmp.ge.s32.totalorder %s5627_s21, 2  ;;  %s3779_s14 = sand.u32 1, %s5615_s18  }
 0x953   : > { %p8328_p13 = scmp.ne.s32.totalorder %s8082_s25, 0  ;;  %s3780_s16 = scalar_lea.sflag [#allocation4], %s3779_s14 }
 0x955   : > { %p5044_p3 = pnand %p5054_p11, %p8328_p13 }
 0x957   : > { %p5045_p0 = pneg %p5044_p3 }
 0x959   : > { %5610 = dma.done.wait (%p5045_p0), %s3780_s16, 4096  }
 0x95a   : > { %5612 = vsyncadd (%p5045_p0), %s3780_s16, 4294963200  ;;  %p20_p7 = scmp.ge.s32.totalorder %s5754_s6, 6   ;;  %s8329_s18 = smov %s5619_s19 }
 0x95b   : > { %s8330_s19 = smov %s5623_s20  ;;  %s8331_s20 = smov %s5764_s10 }
 0x95c   : > { %s8332_s21 = smov %s5754_s6  ;;  %22 = sbr.rel (!%p20_p7) target bundleno = 7 (0x7), region = 97 }
 0x961   :  { %3785 = vsyncpa [#allocation3], 1 }
 0x962   :  { %3787 = vsyncpa [#allocation3 + $0x1], 1 }
 0x963   :  { %3788 = vsyncpa [#allocation6], 1 }
 0x964   :  { %3789 = vsyncpa [#allocation9], 1 }
 0x965   :  { %3790 = vsyncpa [#allocation4], 1 }
 0x966   :  { %3792 = vsyncpa [#allocation4 + $0x1], 1 }

</bundles_post_ra>
